<compile_context>
chip_gen: v7x
topology: tpu7x:2x2x1
jax: 0.10.0
libtpu: 0.0.40
codegen_flags: <defaults>
</compile_context>

<pallas_src>
import math

import jax
import jax.numpy as jnp
from jax import lax
from jax.experimental import pallas as pl
from jax.experimental.pallas import tpu as pltpu

VMEM = pltpu.MemorySpace.VMEM

INPUT_DIM = 32
# (out_feats, num_heads, pool_ratio, feat_drop, attn_drop, negative_slope, n_steps)
HIDDENS = [
    (32, 1, 0.5, 0.0, 0.0, 0.2, 2),
    (32, 1, 0.5, 0.0, 0.0, 0.2, 2),
]
NUM_CLASSES = 3
MXU_DTYPE = jnp.bfloat16      # matmul-operand dtype; accumulation stays f32
GRU_PAD = 128                 # 3*D (=96) padded to one full lane tile


def _round_up(x, m):
    return ((x + m - 1) // m) * m


# ----------------------------------------------------------------------------
# In-kernel helpers
# ----------------------------------------------------------------------------
def _dot(a, b):
    return jnp.dot(a.astype(MXU_DTYPE), b.astype(MXU_DTYPE),
                   preferred_element_type=jnp.float32)


def _dot_nt(a, b):            # a @ b.T without materializing a transpose
    return lax.dot_general(a.astype(MXU_DTYPE), b.astype(MXU_DTYPE),
                           (((1,), (1,)), ((), ())),
                           preferred_element_type=jnp.float32)


def _eye_mask(n):
    return (lax.broadcasted_iota(jnp.int32, (n, n), 0) ==
            lax.broadcasted_iota(jnp.int32, (n, n), 1))


def _col_to_row(col, n):      # (n,1) -> (1,n) via identity-mask reduce (no transpose op)
    return jnp.sum(jnp.where(_eye_mask(n), jnp.broadcast_to(col, (n, n)), 0.0),
                   axis=0, keepdims=True)


def _row_to_col(row, n):      # (1,n) -> (n,1)
    return jnp.sum(jnp.where(_eye_mask(n), jnp.broadcast_to(row, (n, n)), 0.0),
                   axis=1, keepdims=True)


def _gru_gat_block(f_in, A00, A11, A22, Adiff, whh_ref, wi_ref, aux_ref, wgat_ref,
                   *, n, d, num_heads, n_steps, neg_slope):
    """3x GatedGraphConv (fused, lane-stacked) + masked write-back + GATConv."""
    dpad = GRU_PAD
    hd = num_heads * d

    lane = lax.broadcasted_iota(jnp.int32, (n, dpad), 1)
    sel = [jnp.where((lane >= j * d) & (lane < (j + 1) * d), 1.0, 0.0)
           for j in range(3)]

    zpad = jnp.zeros((n, dpad - 3 * d), jnp.float32)
    h3 = jnp.concatenate([f_in, f_in, f_in, zpad], axis=1)            # (n, 128)
    A_cat = jnp.concatenate([A00, A11, A22], axis=1)                  # (n, 3n)

    whh = whh_ref[...]                                                # (128, 512)
    wi = wi_ref[...]                                                  # (128, 384)
    # hoist bias broadcasts out of the unrolled step loop
    bl = jnp.broadcast_to(aux_ref[0:1, :], (n, dpad))
    b_r = jnp.broadcast_to(aux_ref[1:2, :], (n, dpad))
    b_z = jnp.broadcast_to(aux_ref[2:3, :], (n, dpad))
    b_in = jnp.broadcast_to(aux_ref[3:4, :], (n, dpad))
    b_hn = jnp.broadcast_to(aux_ref[4:5, :], (n, dpad))

    for _ in range(n_steps):
        gh = _dot(h3, whh)                                            # (n, 512)
        m3 = gh[:, 0:dpad] + bl                                       # messages
        ms = jnp.concatenate([m3 * sel[0], m3 * sel[1], m3 * sel[2]], axis=0)
        a3 = _dot(A_cat, ms)                                          # (n, 128)
        gi = _dot(a3, wi)                                             # (n, 384)
        r = jax.nn.sigmoid(gi[:, 0:dpad] + gh[:, dpad:2 * dpad] + b_r)
        z = jax.nn.sigmoid(gi[:, dpad:2 * dpad] + gh[:, 2 * dpad:3 * dpad] + b_z)
        c = jnp.tanh(gi[:, 2 * dpad:3 * dpad] + b_in
                     + r * (gh[:, 3 * dpad:4 * dpad] + b_hn))
        h3 = (1.0 - z) * c + z * h3

    def incidence_mask(M):     # node has any in- or out-edge in M  -> (n,1) bool
        deg_in = jnp.sum(M, axis=1, keepdims=True)
        deg_out = _row_to_col(jnp.sum(M, axis=0, keepdims=True), n)
        return (deg_in + deg_out) > 0.0

    # edge-subgraph write-backs (order 00, 11, 22; later overwrites, as reference)
    f = f_in
    f = jnp.where(incidence_mask(A00), h3[:, 0:d], f)
    f = jnp.where(incidence_mask(A11), h3[:, d:2 * d], f)
    f = jnp.where(incidence_mask(A22), h3[:, 2 * d:3 * d], f)

    # --- GATConv on the "diff" edge-subgraph (attn_l/attn_r folded into wgat) ---
    ze = _dot(f, wgat_ref[...])                                       # (n, 128)
    emask = Adiff > 0.0
    heads_out, alphas = [], []
    for h in range(num_heads):
        zh = ze[:, h * d:(h + 1) * d]
        er = ze[:, hd + h:hd + h + 1]                                 # (n,1) dst term
        el = _col_to_row(ze[:, hd + num_heads + h:hd + num_heads + h + 1], n)  # (1,n)
        e = er + el                                                   # e[dst, src]
        e = jnp.where(e > 0.0, e, neg_slope * e)                      # LeakyReLU
        e = jnp.where(emask, e, -1e30)
        mx = jnp.max(e, axis=1, keepdims=True)
        p = jnp.where(emask, jnp.exp(e - mx), 0.0)
        s = jnp.sum(p, axis=1, keepdims=True)
        alpha = p * pl.reciprocal(jnp.maximum(s, 1e-30), approx=True)
        rst = _dot(alpha, zh) + aux_ref[5:6, h * d:(h + 1) * d]
        rst = jnp.where(rst > 0.0, rst, jnp.exp(jnp.minimum(rst, 0.0)) - 1.0)  # ELU
        heads_out.append(rst)
        alphas.append(alpha)
    gat_out = heads_out[0] if num_heads == 1 else jnp.concatenate(heads_out, axis=1)
    f_new = jnp.where(incidence_mask(Adiff), gat_out, f)
    return f_new, alphas


# ----------------------------------------------------------------------------
# Whole-network fused kernel (both layers + SAGPool + global pool + classifier)
# ----------------------------------------------------------------------------
def _make_fused_kernel(*, n, d, num_heads, k, steps0, steps1, neg0, neg1,
                       num_classes, out_rows):
    hd = num_heads * d

    def kernel(feat_ref, a00_ref, a11_ref, a22_ref, adiff_ref,
               whh0_ref, wi0_ref, aux0_ref, wgat0_ref,
               whh1_ref, wi1_ref, aux1_ref, wgat1_ref,
               wcls_ref, out_ref):
        f0 = feat_ref[...]
        A00, A11 = a00_ref[...], a11_ref[...]
        A22, Adiff = a22_ref[...], adiff_ref[...]

        # ------------------------------ layer 0 ------------------------------
        f_new, _ = _gru_gat_block(f0, A00, A11, A22, Adiff,
                                  whh0_ref, wi0_ref, aux0_ref, wgat0_ref,
                                  n=n, d=d, num_heads=num_heads,
                                  n_steps=steps0, neg_slope=neg0)

        # -------- SAGPool: GraphConv(norm='both') score + in-kernel top-k -----
        Afull = A00 + A11 + A22 + Adiff
        deg_in = jnp.sum(Afull, axis=1, keepdims=True)                # (n,1) dst
        deg_out = jnp.sum(Afull, axis=0, keepdims=True)               # (1,n) src
        norm_in = lax.rsqrt(jnp.maximum(deg_in, 1.0))
        norm_out = lax.rsqrt(jnp.maximum(deg_out, 1.0))
        wp = aux0_ref[6:7, 0:hd]                                      # (1,hd)
        bp = aux0_ref[6:7, hd:hd + 1]                                 # (1,1)
        fw = jnp.sum(f_new * wp, axis=1, keepdims=True)               # f_new @ wp
        score = norm_in * _dot(Afull * norm_out, fw) + bp             # (n,1)

        # rank[i] = #{j: score[j] > score[i]} + #{j<i: score[j]==score[i]}
        score_row = _col_to_row(score, n)                             # (1,n)
        ri = lax.broadcasted_iota(jnp.int32, (n, n), 0)
        ci = lax.broadcasted_iota(jnp.int32, (n, n), 1)
        sj = jnp.broadcast_to(score, (n, n))                          # score[j] (row)
        si = jnp.broadcast_to(score_row, (n, n))                      # score[i] (col)
        outranks = (sj > si) | ((sj == si) & (ri < ci))
        rank = jnp.sum(outranks.astype(jnp.float32), axis=0, keepdims=True)  # (1,n)
        P = (jnp.broadcast_to(rank, (k, n)) ==
             lax.broadcasted_iota(jnp.int32, (k, n), 0).astype(jnp.float32)
             ).astype(jnp.float32)                                    # (k,n) one-hot

        gated = f_new * jnp.tanh(score)
        f1 = _dot(P, gated)                                           # feats[perm]*g
        A_all = jnp.concatenate([A00, A11, A22, Adiff], axis=1)       # (n,4n)
        PA = _dot(P, A_all)                                           # (k,4n)
        A00p = _dot_nt(PA[:, 0:n], P)                                 # P A P^T
        A11p = _dot_nt(PA[:, n:2 * n], P)
        A22p = _dot_nt(PA[:, 2 * n:3 * n], P)
        Adiffp = _dot_nt(PA[:, 3 * n:4 * n], P)

        # ------------------------------ layer 1 ------------------------------
        f2, alphas = _gru_gat_block(f1, A00p, A11p, A22p, Adiffp,
                                    whh1_ref, wi1_ref, aux1_ref, wgat1_ref,
                                    n=k, d=d, num_heads=num_heads,
                                    n_steps=steps1, neg_slope=neg1)

        # ------------- GlobalAttentionPooling + classifier -------------------
        wg = aux1_ref[6:7, 0:d]
        bg = aux1_ref[6:7, d:d + 1]
        logits = jnp.sum(f2 * wg, axis=1, keepdims=True) + bg         # (k,1)
        mx = jnp.max(logits, axis=0, keepdims=True)
        pg = jnp.exp(logits - mx)
        gate = pg * pl.reciprocal(jnp.sum(pg, axis=0, keepdims=True), approx=True)
        res = jnp.sum(gate * f2, axis=0, keepdims=True)               # (1, hd)
        pred = _dot(res, wcls_ref[0:hd, :]) + wcls_ref[hd:hd + 1, :]  # (1, C)

        # ---------------- single lane-dense (out_rows, 128) slab -------------
        pernode = jnp.concatenate([f2, alphas[0], A00p, A11p, A22p, Adiffp], axis=1)
        pn_w = hd + 5 * k
        if out_rows > k:
            pernode = jnp.concatenate(
                [pernode, jnp.zeros((out_rows - k, pn_w), jnp.float32)], axis=0)
        glob = jnp.concatenate([res, pred], axis=1)                   # (1, hd+C)
        g_w = hd + num_classes
        glob = jnp.concatenate(
            [glob, jnp.zeros((out_rows - 1, g_w), jnp.float32)], axis=0)
        pad_w = 128 - pn_w - g_w
        slab = jnp.concatenate(
            [pernode, glob, jnp.zeros((out_rows, pad_w), jnp.float32)], axis=1)
        out_ref[...] = slab

    return kernel


# ----------------------------------------------------------------------------
# Parameters (GRU weights pre-fused: per-gate, block-diagonal, 128-lane padded)
# ----------------------------------------------------------------------------
def _block_diag3(ws):
    d = ws[0].shape[0]
    z = jnp.zeros((d, d), jnp.float32)
    return jnp.concatenate([
        jnp.concatenate([ws[0], z, z], axis=1),
        jnp.concatenate([z, ws[1], z], axis=1),
        jnp.concatenate([z, z, ws[2]], axis=1),
    ], axis=0)


def init_params(key):
    keys = iter(jax.random.split(key, 512))

    def nxt(shape, scale=0.1):
        return scale * jax.random.normal(next(keys), shape, dtype=jnp.float32)

    layers = []
    for i, (D, H, _ratio, _fd, _ad, _ns, _steps) in enumerate(HIDDENS):
        din = INPUT_DIM if i == 0 else HIDDENS[i - 1][0] * HIDDENS[i - 1][1]
        hd = H * D
        d3 = 3 * D
        dpad = GRU_PAD

        wl, bl = [], []
        wir, wiz, win = [], [], []
        whr, whz, whn = [], [], []
        bir, biz, binn = [], [], []
        bhr, bhz, bhn = [], [], []
        for _j in range(3):          # three per-edge-type GatedGraphConvs
            wl.append(nxt((D, D))); bl.append(nxt((1, D)))
            wir.append(nxt((D, D))); wiz.append(nxt((D, D))); win.append(nxt((D, D)))
            whr.append(nxt((D, D))); whz.append(nxt((D, D))); whn.append(nxt((D, D)))
            bir.append(nxt((1, D))); biz.append(nxt((1, D))); binn.append(nxt((1, D)))
            bhr.append(nxt((1, D))); bhz.append(nxt((1, D))); bhn.append(nxt((1, D)))

        def pad_block(ws):           # (3D,3D) block-diag -> (128,128) zero-padded
            return jnp.pad(_block_diag3(ws), ((0, dpad - d3), (0, dpad - d3)))

        def pad_row(b):              # (1,3D) -> (1,128)
            return jnp.pad(b, ((0, 0), (0, dpad - d3)))

        whh = jnp.concatenate([pad_block(wl), pad_block(whr),
                               pad_block(whz), pad_block(whn)], axis=1)   # (128,512)
        wi = jnp.concatenate([pad_block(wir), pad_block(wiz),
                              pad_block(win)], axis=1)                    # (128,384)

        # GAT: fold attn_l / attn_r into the fc projection (extra lanes)
        wfc = nxt((din, hd))
        attn_l = nxt((H, D))
        attn_r = nxt((H, D))
        gat_bias = jnp.zeros((1, hd), jnp.float32)
        er_cols = jnp.stack([wfc[:, h * D:(h + 1) * D] @ attn_r[h] for h in range(H)],
                            axis=1)                                       # (din, H)
        el_cols = jnp.stack([wfc[:, h * D:(h + 1) * D] @ attn_l[h] for h in range(H)],
                            axis=1)
        wgat = jnp.concatenate([wfc, er_cols, el_cols], axis=1)
        wgat = jnp.pad(wgat, ((0, 0), (0, 128 - (hd + 2 * H))))           # (din,128)

        last = (i == len(HIDDENS) - 1)
        if not last:                 # SAGPool GraphConv(hd, 1) weight row + bias
            pw = nxt((hd, 1)); pb = jnp.zeros((1, 1), jnp.float32)
            row6 = jnp.concatenate([pw.T, pb], axis=1)
        else:                        # GlobalAttentionPooling gate Linear(D, 1)
            gw = nxt((D, 1)); gb = jnp.zeros((1, 1), jnp.float32)
            row6 = jnp.concatenate([gw.T, gb], axis=1)
        row6 = jnp.pad(row6, ((0, 0), (0, 128 - row6.shape[1])))
        gb_row = jnp.pad(gat_bias, ((0, 0), (0, 128 - hd)))

        aux = jnp.concatenate([
            pad_row(jnp.concatenate(bl, 1)),
            pad_row(jnp.concatenate(bir, 1) + jnp.concatenate(bhr, 1)),
            pad_row(jnp.concatenate(biz, 1) + jnp.concatenate(bhz, 1)),
            pad_row(jnp.concatenate(binn, 1)),
            pad_row(jnp.concatenate(bhn, 1)),
            gb_row,
            row6,
            jnp.zeros((1, 128), jnp.float32),
        ], axis=0)                                                        # (8,128)

        layers.append(dict(whh=whh, wi=wi, aux=aux, wgat=wgat))

    hd_last = HIDDENS[-1][0] * HIDDENS[-1][1]
    wc = nxt((hd_last, NUM_CLASSES))
    bc = jnp.zeros((1, NUM_CLASSES), jnp.float32)
    wcls = jnp.concatenate([wc, bc], axis=0)                              # (hd+1, C)
    return dict(layers=layers, wcls=wcls)


# ----------------------------------------------------------------------------
# Forward: ONE pallas_call for the whole network, host only unpacks the slab
# ----------------------------------------------------------------------------
def forward(params, adjs, feats):
    assert len(HIDDENS) == 2
    D0, H0, ratio0, _, _, neg0, steps0 = HIDDENS[0]
    D1, H1, _r1, _, _, neg1, steps1 = HIDDENS[1]
    n, din = feats.shape
    assert H0 == 1 and H1 == 1 and D0 == din and D1 == D0 * H0
    d = D0
    hd = H0 * D0
    k = max(1, int(math.ceil(ratio0 * n)))
    out_rows = max(8, _round_up(k, 8))
    pn_w = hd + 5 * k
    g_w = hd + NUM_CLASSES
    assert pn_w + g_w <= 128, "output slab packing exceeds one lane tile"

    kern = _make_fused_kernel(n=n, d=d, num_heads=H0, k=k,
                              steps0=steps0, steps1=steps1,
                              neg0=neg0, neg1=neg1,
                              num_classes=NUM_CLASSES, out_rows=out_rows)
    l0, l1 = params['layers']
    inputs = [feats, adjs[0], adjs[1], adjs[2], adjs[3],
              l0['whh'], l0['wi'], l0['aux'], l0['wgat'],
              l1['whh'], l1['wi'], l1['aux'], l1['wgat'],
              params['wcls']]
    slab = pl.pallas_call(
        kern,
        out_shape=jax.ShapeDtypeStruct((out_rows, 128), jnp.float32),
        in_specs=[pl.BlockSpec(memory_space=VMEM)] * len(inputs),
        out_specs=pl.BlockSpec(memory_space=VMEM),
    )(*inputs)

    # unpack the lane-dense slab
    off = 0
    feats_out = slab[:k, off:off + hd]; off += hd
    atten = slab[:k, off:off + k][None]; off += k                      # (H=1,k,k)
    A00p = slab[:k, off:off + k]; off += k
    A11p = slab[:k, off:off + k]; off += k
    A22p = slab[:k, off:off + k]; off += k
    Adiffp = slab[:k, off:off + k]; off += k
    res = slab[0:1, off:off + hd]; off += hd
    lbl_pred = slab[0:1, off:off + NUM_CLASSES]

    adjs_out = (A00p, A11p, A22p, Adiffp)
    diff_mask = (jnp.sum(Adiffp, axis=0) + jnp.sum(Adiffp, axis=1)) > 0.0
    return (adjs_out, feats_out), res, lbl_pred, (atten, (Adiffp, diff_mask))


# ----------------------------------------------------------------------------
if __name__ == "__main__":
    N, E = 16, 64
    key = jax.random.PRNGKey(0)
    k_src, k_dst, k_lst, k_feat, k_par = jax.random.split(key, 5)
    src = jax.random.randint(k_src, (E,), 0, N)
    dst = jax.random.randint(k_dst, (E,), 0, N)
    lst = jax.random.choice(k_lst, jnp.array([0, 11, 22, 5, 7], jnp.int32), (E,))
    feats = 0.5 * jax.random.normal(k_feat, (N, INPUT_DIM), dtype=jnp.float32)

    def build_adj(sel_mask):
        return jnp.zeros((N, N), jnp.float32).at[dst, src].max(
            sel_mask.astype(jnp.float32))

    A00 = build_adj(lst == 0)
    A11 = build_adj(lst == 11)
    A22 = build_adj(lst == 22)
    Adiff = build_adj((lst != 0) & (lst != 11) & (lst != 22))
    adjs = (A00, A11, A22, Adiff)

    params = init_params(k_par)
    fwd = jax.jit(forward)
    (g_out, feats_out), res, lbl_pred, (atten, _subdiff) = fwd(params, adjs, feats)
    jax.block_until_ready((feats_out, res, lbl_pred, atten))
    print("KERNEL_OK")
</pallas_src>

<mosaic_0001>
module attributes {stable_mosaic.version = 11 : i64} {
  func.func @kernel(%arg0: memref<16x32xf32, #tpu.memory_space<vmem>>, %arg1: memref<16x16xf32, #tpu.memory_space<vmem>>, %arg2: memref<16x16xf32, #tpu.memory_space<vmem>>, %arg3: memref<16x16xf32, #tpu.memory_space<vmem>>, %arg4: memref<16x16xf32, #tpu.memory_space<vmem>>, %arg5: memref<128x512xf32, #tpu.memory_space<vmem>>, %arg6: memref<128x384xf32, #tpu.memory_space<vmem>>, %arg7: memref<8x128xf32, #tpu.memory_space<vmem>>, %arg8: memref<32x128xf32, #tpu.memory_space<vmem>>, %arg9: memref<128x512xf32, #tpu.memory_space<vmem>>, %arg10: memref<128x384xf32, #tpu.memory_space<vmem>>, %arg11: memref<8x128xf32, #tpu.memory_space<vmem>>, %arg12: memref<32x128xf32, #tpu.memory_space<vmem>>, %arg13: memref<33x3xf32, #tpu.memory_space<vmem>>, %arg14: memref<8x128xf32, #tpu.memory_space<vmem>>) attributes {dimension_semantics = [], scalar_prefetch = 0 : i64, scratch_operands = 0 : i64, tpu.core_type = #tpu.core_type<tc>} {
    %c0 = arith.constant 0 : index
    %c0_0 = arith.constant 0 : index
    %0 = vector.load %arg0[%c0, %c0_0] : memref<16x32xf32, #tpu.memory_space<vmem>>, vector<16x32xf32>
    %c0_1 = arith.constant 0 : index
    %c0_2 = arith.constant 0 : index
    %1 = vector.load %arg1[%c0_1, %c0_2] : memref<16x16xf32, #tpu.memory_space<vmem>>, vector<16x16xf32>
    %c0_3 = arith.constant 0 : index
    %c0_4 = arith.constant 0 : index
    %2 = vector.load %arg2[%c0_3, %c0_4] : memref<16x16xf32, #tpu.memory_space<vmem>>, vector<16x16xf32>
    %c0_5 = arith.constant 0 : index
    %c0_6 = arith.constant 0 : index
    %3 = vector.load %arg3[%c0_5, %c0_6] : memref<16x16xf32, #tpu.memory_space<vmem>>, vector<16x16xf32>
    %c0_7 = arith.constant 0 : index
    %c0_8 = arith.constant 0 : index
    %4 = vector.load %arg4[%c0_7, %c0_8] : memref<16x16xf32, #tpu.memory_space<vmem>>, vector<16x16xf32>
    %5 = tpu.iota {dimensions = array<i32: 1>} : vector<16x128xi32>
    %c0_i32 = arith.constant 0 : i32
    %6 = vector.broadcast %c0_i32 : i32 to vector<16x128xi32>
    %7 = arith.cmpi sge, %5, %6 : vector<16x128xi32>
    %c32_i32 = arith.constant 32 : i32
    %8 = vector.broadcast %c32_i32 : i32 to vector<16x128xi32>
    %9 = arith.cmpi slt, %5, %8 : vector<16x128xi32>
    %10 = arith.andi %7, %9 : vector<16x128xi1>
    %cst = arith.constant 1.000000e+00 : f32
    %cst_9 = arith.constant 0.000000e+00 : f32
    %11 = vector.broadcast %cst : f32 to vector<16x128xf32>
    %12 = vector.broadcast %cst_9 : f32 to vector<16x128xf32>
    %13 = arith.select %10, %11, %12 : vector<16x128xi1>, vector<16x128xf32>
    %c32_i32_10 = arith.constant 32 : i32
    %14 = vector.broadcast %c32_i32_10 : i32 to vector<16x128xi32>
    %15 = arith.cmpi sge, %5, %14 : vector<16x128xi32>
    %c64_i32 = arith.constant 64 : i32
    %16 = vector.broadcast %c64_i32 : i32 to vector<16x128xi32>
    %17 = arith.cmpi slt, %5, %16 : vector<16x128xi32>
    %18 = arith.andi %15, %17 : vector<16x128xi1>
    %cst_11 = arith.constant 1.000000e+00 : f32
    %cst_12 = arith.constant 0.000000e+00 : f32
    %19 = vector.broadcast %cst_11 : f32 to vector<16x128xf32>
    %20 = vector.broadcast %cst_12 : f32 to vector<16x128xf32>
    %21 = arith.select %18, %19, %20 : vector<16x128xi1>, vector<16x128xf32>
    %c64_i32_13 = arith.constant 64 : i32
    %22 = vector.broadcast %c64_i32_13 : i32 to vector<16x128xi32>
    %23 = arith.cmpi sge, %5, %22 : vector<16x128xi32>
    %c96_i32 = arith.constant 96 : i32
    %24 = vector.broadcast %c96_i32 : i32 to vector<16x128xi32>
    %25 = arith.cmpi slt, %5, %24 : vector<16x128xi32>
    %26 = arith.andi %23, %25 : vector<16x128xi1>
    %cst_14 = arith.constant 1.000000e+00 : f32
    %cst_15 = arith.constant 0.000000e+00 : f32
    %27 = vector.broadcast %cst_14 : f32 to vector<16x128xf32>
    %28 = vector.broadcast %cst_15 : f32 to vector<16x128xf32>
    %29 = arith.select %26, %27, %28 : vector<16x128xi1>, vector<16x128xf32>
    %cst_16 = arith.constant 0.000000e+00 : f32
    %30 = vector.broadcast %cst_16 : f32 to vector<16x32xf32>
    %31 = tpu.concatenate %0, %0, %0, %30 in 1 : vector<16x32xf32>, vector<16x32xf32>, vector<16x32xf32>, vector<16x32xf32> -> vector<16x128xf32>
    %32 = tpu.concatenate %1, %2, %3 in 1 : vector<16x16xf32>, vector<16x16xf32>, vector<16x16xf32> -> vector<16x48xf32>
    %c0_17 = arith.constant 0 : index
    %c0_18 = arith.constant 0 : index
    %33 = vector.load %arg5[%c0_17, %c0_18] : memref<128x512xf32, #tpu.memory_space<vmem>>, vector<128x512xf32>
    %c0_19 = arith.constant 0 : index
    %c0_20 = arith.constant 0 : index
    %34 = vector.load %arg6[%c0_19, %c0_20] : memref<128x384xf32, #tpu.memory_space<vmem>>, vector<128x384xf32>
    %c0_21 = arith.constant 0 : index
    %c0_22 = arith.constant 0 : index
    %35 = vector.load %arg7[%c0_21, %c0_22] : memref<8x128xf32, #tpu.memory_space<vmem>>, vector<1x128xf32>
    %36 = vector.shape_cast %35 : vector<1x128xf32> to vector<1x128xf32>
    %37 = vector.broadcast %36 : vector<1x128xf32> to vector<16x128xf32>
    %c1 = arith.constant 1 : index
    %c0_23 = arith.constant 0 : index
    %38 = vector.load %arg7[%c1, %c0_23] : memref<8x128xf32, #tpu.memory_space<vmem>>, vector<1x128xf32>
    %39 = vector.shape_cast %38 : vector<1x128xf32> to vector<1x128xf32>
    %40 = vector.broadcast %39 : vector<1x128xf32> to vector<16x128xf32>
    %c2 = arith.constant 2 : index
    %c0_24 = arith.constant 0 : index
    %41 = vector.load %arg7[%c2, %c0_24] : memref<8x128xf32, #tpu.memory_space<vmem>>, vector<1x128xf32>
    %42 = vector.shape_cast %41 : vector<1x128xf32> to vector<1x128xf32>
    %43 = vector.broadcast %42 : vector<1x128xf32> to vector<16x128xf32>
    %c3 = arith.constant 3 : index
    %c0_25 = arith.constant 0 : index
    %44 = vector.load %arg7[%c3, %c0_25] : memref<8x128xf32, #tpu.memory_space<vmem>>, vector<1x128xf32>
    %45 = vector.shape_cast %44 : vector<1x128xf32> to vector<1x128xf32>
    %46 = vector.broadcast %45 : vector<1x128xf32> to vector<16x128xf32>
    %c4 = arith.constant 4 : index
    %c0_26 = arith.constant 0 : index
    %47 = vector.load %arg7[%c4, %c0_26] : memref<8x128xf32, #tpu.memory_space<vmem>>, vector<1x128xf32>
    %48 = vector.shape_cast %47 : vector<1x128xf32> to vector<1x128xf32>
    %49 = vector.broadcast %48 : vector<1x128xf32> to vector<16x128xf32>
    %50 = arith.truncf %31 : vector<16x128xf32> to vector<16x128xbf16>
    %51 = arith.truncf %33 : vector<128x512xf32> to vector<128x512xbf16>
    %cst_27 = arith.constant dense<0.000000e+00> : vector<16x512xf32>
    %52 = tpu.matmul %50, %51, %cst_27 {dimension_numbers = #tpu.dot_dimension_numbers<[1], [0], [0], [1], [0, 0, 1, 1], [], []>} : vector<16x128xbf16>, vector<128x512xbf16>, vector<16x512xf32> -> vector<16x512xf32>
    %53 = vector.extract_strided_slice %52 {offsets = [0, 0], sizes = [16, 128], strides = [1, 1]} : vector<16x512xf32> to vector<16x128xf32>
    %54 = arith.addf %53, %37 : vector<16x128xf32>
    %55 = arith.mulf %54, %13 : vector<16x128xf32>
    %56 = arith.mulf %54, %21 : vector<16x128xf32>
    %57 = arith.mulf %54, %29 : vector<16x128xf32>
    %58 = tpu.concatenate %55, %56, %57 in 0 : vector<16x128xf32>, vector<16x128xf32>, vector<16x128xf32> -> vector<48x128xf32>
    %59 = arith.truncf %32 : vector<16x48xf32> to vector<16x48xbf16>
    %60 = arith.truncf %58 : vector<48x128xf32> to vector<48x128xbf16>
    %cst_28 = arith.constant dense<0.000000e+00> : vector<16x128xf32>
    %61 = tpu.matmul %59, %60, %cst_28 {dimension_numbers = #tpu.dot_dimension_numbers<[1], [0], [0], [1], [0, 0, 1, 1], [], []>} : vector<16x48xbf16>, vector<48x128xbf16>, vector<16x128xf32> -> vector<16x128xf32>
    %62 = arith.truncf %61 : vector<16x128xf32> to vector<16x128xbf16>
    %63 = arith.truncf %34 : vector<128x384xf32> to vector<128x384xbf16>
    %cst_29 = arith.constant dense<0.000000e+00> : vector<16x384xf32>
    %64 = tpu.matmul %62, %63, %cst_29 {dimension_numbers = #tpu.dot_dimension_numbers<[1], [0], [0], [1], [0, 0, 1, 1], [], []>} : vector<16x128xbf16>, vector<128x384xbf16>, vector<16x384xf32> -> vector<16x384xf32>
    %65 = vector.extract_strided_slice %64 {offsets = [0, 0], sizes = [16, 128], strides = [1, 1]} : vector<16x384xf32> to vector<16x128xf32>
    %66 = vector.extract_strided_slice %52 {offsets = [0, 128], sizes = [16, 128], strides = [1, 1]} : vector<16x512xf32> to vector<16x128xf32>
    %67 = arith.addf %65, %66 : vector<16x128xf32>
    %68 = arith.addf %67, %40 : vector<16x128xf32>
    %69 = arith.negf %68 : vector<16x128xf32>
    %70 = math.exp %69 : vector<16x128xf32>
    %cst_30 = arith.constant 1.000000e+00 : f32
    %71 = vector.broadcast %cst_30 : f32 to vector<16x128xf32>
    %72 = arith.addf %71, %70 : vector<16x128xf32>
    %73 = arith.divf %71, %72 : vector<16x128xf32>
    %74 = vector.extract_strided_slice %64 {offsets = [0, 128], sizes = [16, 128], strides = [1, 1]} : vector<16x384xf32> to vector<16x128xf32>
    %75 = vector.extract_strided_slice %52 {offsets = [0, 256], sizes = [16, 128], strides = [1, 1]} : vector<16x512xf32> to vector<16x128xf32>
    %76 = arith.addf %74, %75 : vector<16x128xf32>
    %77 = arith.addf %76, %43 : vector<16x128xf32>
    %78 = arith.negf %77 : vector<16x128xf32>
    %79 = math.exp %78 : vector<16x128xf32>
    %cst_31 = arith.constant 1.000000e+00 : f32
    %80 = vector.broadcast %cst_31 : f32 to vector<16x128xf32>
    %81 = arith.addf %80, %79 : vector<16x128xf32>
    %82 = arith.divf %80, %81 : vector<16x128xf32>
    %83 = vector.extract_strided_slice %64 {offsets = [0, 256], sizes = [16, 128], strides = [1, 1]} : vector<16x384xf32> to vector<16x128xf32>
    %84 = arith.addf %83, %46 : vector<16x128xf32>
    %85 = vector.extract_strided_slice %52 {offsets = [0, 384], sizes = [16, 128], strides = [1, 1]} : vector<16x512xf32> to vector<16x128xf32>
    %86 = arith.addf %85, %49 : vector<16x128xf32>
    %87 = arith.mulf %73, %86 : vector<16x128xf32>
    %88 = arith.addf %84, %87 : vector<16x128xf32>
    %89 = math.tanh %88 : vector<16x128xf32>
    %cst_32 = arith.constant 1.000000e+00 : f32
    %90 = vector.broadcast %cst_32 : f32 to vector<16x128xf32>
    %91 = arith.subf %90, %82 : vector<16x128xf32>
    %92 = arith.mulf %91, %89 : vector<16x128xf32>
    %93 = arith.mulf %82, %31 : vector<16x128xf32>
    %94 = arith.addf %92, %93 : vector<16x128xf32>
    %95 = arith.truncf %94 : vector<16x128xf32> to vector<16x128xbf16>
    %96 = arith.truncf %33 : vector<128x512xf32> to vector<128x512xbf16>
    %cst_33 = arith.constant dense<0.000000e+00> : vector<16x512xf32>
    %97 = tpu.matmul %95, %96, %cst_33 {dimension_numbers = #tpu.dot_dimension_numbers<[1], [0], [0], [1], [0, 0, 1, 1], [], []>} : vector<16x128xbf16>, vector<128x512xbf16>, vector<16x512xf32> -> vector<16x512xf32>
    %98 = vector.extract_strided_slice %97 {offsets = [0, 0], sizes = [16, 128], strides = [1, 1]} : vector<16x512xf32> to vector<16x128xf32>
    %99 = arith.addf %98, %37 : vector<16x128xf32>
    %100 = arith.mulf %99, %13 : vector<16x128xf32>
    %101 = arith.mulf %99, %21 : vector<16x128xf32>
    %102 = arith.mulf %99, %29 : vector<16x128xf32>
    %103 = tpu.concatenate %100, %101, %102 in 0 : vector<16x128xf32>, vector<16x128xf32>, vector<16x128xf32> -> vector<48x128xf32>
    %104 = arith.truncf %32 : vector<16x48xf32> to vector<16x48xbf16>
    %105 = arith.truncf %103 : vector<48x128xf32> to vector<48x128xbf16>
    %cst_34 = arith.constant dense<0.000000e+00> : vector<16x128xf32>
    %106 = tpu.matmul %104, %105, %cst_34 {dimension_numbers = #tpu.dot_dimension_numbers<[1], [0], [0], [1], [0, 0, 1, 1], [], []>} : vector<16x48xbf16>, vector<48x128xbf16>, vector<16x128xf32> -> vector<16x128xf32>
    %107 = arith.truncf %106 : vector<16x128xf32> to vector<16x128xbf16>
    %108 = arith.truncf %34 : vector<128x384xf32> to vector<128x384xbf16>
    %cst_35 = arith.constant dense<0.000000e+00> : vector<16x384xf32>
    %109 = tpu.matmul %107, %108, %cst_35 {dimension_numbers = #tpu.dot_dimension_numbers<[1], [0], [0], [1], [0, 0, 1, 1], [], []>} : vector<16x128xbf16>, vector<128x384xbf16>, vector<16x384xf32> -> vector<16x384xf32>
    %110 = vector.extract_strided_slice %109 {offsets = [0, 0], sizes = [16, 128], strides = [1, 1]} : vector<16x384xf32> to vector<16x128xf32>
    %111 = vector.extract_strided_slice %97 {offsets = [0, 128], sizes = [16, 128], strides = [1, 1]} : vector<16x512xf32> to vector<16x128xf32>
    %112 = arith.addf %110, %111 : vector<16x128xf32>
    %113 = arith.addf %112, %40 : vector<16x128xf32>
    %114 = arith.negf %113 : vector<16x128xf32>
    %115 = math.exp %114 : vector<16x128xf32>
    %cst_36 = arith.constant 1.000000e+00 : f32
    %116 = vector.broadcast %cst_36 : f32 to vector<16x128xf32>
    %117 = arith.addf %116, %115 : vector<16x128xf32>
    %118 = arith.divf %116, %117 : vector<16x128xf32>
    %119 = vector.extract_strided_slice %109 {offsets = [0, 128], sizes = [16, 128], strides = [1, 1]} : vector<16x384xf32> to vector<16x128xf32>
    %120 = vector.extract_strided_slice %97 {offsets = [0, 256], sizes = [16, 128], strides = [1, 1]} : vector<16x512xf32> to vector<16x128xf32>
    %121 = arith.addf %119, %120 : vector<16x128xf32>
    %122 = arith.addf %121, %43 : vector<16x128xf32>
    %123 = arith.negf %122 : vector<16x128xf32>
    %124 = math.exp %123 : vector<16x128xf32>
    %cst_37 = arith.constant 1.000000e+00 : f32
    %125 = vector.broadcast %cst_37 : f32 to vector<16x128xf32>
    %126 = arith.addf %125, %124 : vector<16x128xf32>
    %127 = arith.divf %125, %126 : vector<16x128xf32>
    %128 = vector.extract_strided_slice %109 {offsets = [0, 256], sizes = [16, 128], strides = [1, 1]} : vector<16x384xf32> to vector<16x128xf32>
    %129 = arith.addf %128, %46 : vector<16x128xf32>
    %130 = vector.extract_strided_slice %97 {offsets = [0, 384], sizes = [16, 128], strides = [1, 1]} : vector<16x512xf32> to vector<16x128xf32>
    %131 = arith.addf %130, %49 : vector<16x128xf32>
    %132 = arith.mulf %118, %131 : vector<16x128xf32>
    %133 = arith.addf %129, %132 : vector<16x128xf32>
    %134 = math.tanh %133 : vector<16x128xf32>
    %cst_38 = arith.constant 1.000000e+00 : f32
    %135 = vector.broadcast %cst_38 : f32 to vector<16x128xf32>
    %136 = arith.subf %135, %127 : vector<16x128xf32>
    %137 = arith.mulf %136, %134 : vector<16x128xf32>
    %138 = arith.mulf %127, %94 : vector<16x128xf32>
    %139 = arith.addf %137, %138 : vector<16x128xf32>
    %cst_39 = arith.constant dense<0.000000e+00> : vector<16xf32>
    %140 = vector.multi_reduction <add>, %1, %cst_39 [1] : vector<16x16xf32> to vector<16xf32>
    %141 = vector.shape_cast %140 : vector<16xf32> to vector<16x1xf32>
    %cst_40 = arith.constant dense<0.000000e+00> : vector<16xf32>
    %142 = vector.multi_reduction <add>, %1, %cst_40 [0] : vector<16x16xf32> to vector<16xf32>
    %143 = vector.shape_cast %142 : vector<16xf32> to vector<1x16xf32>
    %144 = tpu.iota {dimensions = array<i32: 0>} : vector<16x16xi32>
    %145 = tpu.iota {dimensions = array<i32: 1>} : vector<16x16xi32>
    %146 = arith.cmpi eq, %144, %145 : vector<16x16xi32>
    %147 = vector.shape_cast %143 : vector<1x16xf32> to vector<1x16xf32>
    %148 = vector.broadcast %147 : vector<1x16xf32> to vector<16x16xf32>
    %cst_41 = arith.constant 0.000000e+00 : f32
    %149 = vector.broadcast %cst_41 : f32 to vector<16x16xf32>
    %150 = arith.select %146, %148, %149 : vector<16x16xi1>, vector<16x16xf32>
    %cst_42 = arith.constant dense<0.000000e+00> : vector<16xf32>
    %151 = vector.multi_reduction <add>, %150, %cst_42 [1] : vector<16x16xf32> to vector<16xf32>
    %152 = vector.shape_cast %151 : vector<16xf32> to vector<16x1xf32>
    %153 = arith.addf %141, %152 : vector<16x1xf32>
    %cst_43 = arith.constant 0.000000e+00 : f32
    %154 = vector.broadcast %cst_43 : f32 to vector<16x1xf32>
    %155 = arith.cmpf ogt, %153, %154 : vector<16x1xf32>
    %156 = vector.extract_strided_slice %139 {offsets = [0, 0], sizes = [16, 32], strides = [1, 1]} : vector<16x128xf32> to vector<16x32xf32>
    %157 = vector.shape_cast %155 : vector<16x1xi1> to vector<16x1xi1>
    %158 = vector.broadcast %157 : vector<16x1xi1> to vector<16x32xi1>
    %159 = arith.select %158, %156, %0 : vector<16x32xi1>, vector<16x32xf32>
    %cst_44 = arith.constant dense<0.000000e+00> : vector<16xf32>
    %160 = vector.multi_reduction <add>, %2, %cst_44 [1] : vector<16x16xf32> to vector<16xf32>
    %161 = vector.shape_cast %160 : vector<16xf32> to vector<16x1xf32>
    %cst_45 = arith.constant dense<0.000000e+00> : vector<16xf32>
    %162 = vector.multi_reduction <add>, %2, %cst_45 [0] : vector<16x16xf32> to vector<16xf32>
    %163 = vector.shape_cast %162 : vector<16xf32> to vector<1x16xf32>
    %164 = tpu.iota {dimensions = array<i32: 0>} : vector<16x16xi32>
    %165 = tpu.iota {dimensions = array<i32: 1>} : vector<16x16xi32>
    %166 = arith.cmpi eq, %164, %165 : vector<16x16xi32>
    %167 = vector.shape_cast %163 : vector<1x16xf32> to vector<1x16xf32>
    %168 = vector.broadcast %167 : vector<1x16xf32> to vector<16x16xf32>
    %cst_46 = arith.constant 0.000000e+00 : f32
    %169 = vector.broadcast %cst_46 : f32 to vector<16x16xf32>
    %170 = arith.select %166, %168, %169 : vector<16x16xi1>, vector<16x16xf32>
    %cst_47 = arith.constant dense<0.000000e+00> : vector<16xf32>
    %171 = vector.multi_reduction <add>, %170, %cst_47 [1] : vector<16x16xf32> to vector<16xf32>
    %172 = vector.shape_cast %171 : vector<16xf32> to vector<16x1xf32>
    %173 = arith.addf %161, %172 : vector<16x1xf32>
    %cst_48 = arith.constant 0.000000e+00 : f32
    %174 = vector.broadcast %cst_48 : f32 to vector<16x1xf32>
    %175 = arith.cmpf ogt, %173, %174 : vector<16x1xf32>
    %176 = vector.extract_strided_slice %139 {offsets = [0, 32], sizes = [16, 32], strides = [1, 1]} : vector<16x128xf32> to vector<16x32xf32>
    %177 = vector.shape_cast %175 : vector<16x1xi1> to vector<16x1xi1>
    %178 = vector.broadcast %177 : vector<16x1xi1> to vector<16x32xi1>
    %179 = arith.select %178, %176, %159 : vector<16x32xi1>, vector<16x32xf32>
    %cst_49 = arith.constant dense<0.000000e+00> : vector<16xf32>
    %180 = vector.multi_reduction <add>, %3, %cst_49 [1] : vector<16x16xf32> to vector<16xf32>
    %181 = vector.shape_cast %180 : vector<16xf32> to vector<16x1xf32>
    %cst_50 = arith.constant dense<0.000000e+00> : vector<16xf32>
    %182 = vector.multi_reduction <add>, %3, %cst_50 [0] : vector<16x16xf32> to vector<16xf32>
    %183 = vector.shape_cast %182 : vector<16xf32> to vector<1x16xf32>
    %184 = tpu.iota {dimensions = array<i32: 0>} : vector<16x16xi32>
    %185 = tpu.iota {dimensions = array<i32: 1>} : vector<16x16xi32>
    %186 = arith.cmpi eq, %184, %185 : vector<16x16xi32>
    %187 = vector.shape_cast %183 : vector<1x16xf32> to vector<1x16xf32>
    %188 = vector.broadcast %187 : vector<1x16xf32> to vector<16x16xf32>
    %cst_51 = arith.constant 0.000000e+00 : f32
    %189 = vector.broadcast %cst_51 : f32 to vector<16x16xf32>
    %190 = arith.select %186, %188, %189 : vector<16x16xi1>, vector<16x16xf32>
    %cst_52 = arith.constant dense<0.000000e+00> : vector<16xf32>
    %191 = vector.multi_reduction <add>, %190, %cst_52 [1] : vector<16x16xf32> to vector<16xf32>
    %192 = vector.shape_cast %191 : vector<16xf32> to vector<16x1xf32>
    %193 = arith.addf %181, %192 : vector<16x1xf32>
    %cst_53 = arith.constant 0.000000e+00 : f32
    %194 = vector.broadcast %cst_53 : f32 to vector<16x1xf32>
    %195 = arith.cmpf ogt, %193, %194 : vector<16x1xf32>
    %196 = vector.extract_strided_slice %139 {offsets = [0, 64], sizes = [16, 32], strides = [1, 1]} : vector<16x128xf32> to vector<16x32xf32>
    %197 = vector.shape_cast %195 : vector<16x1xi1> to vector<16x1xi1>
    %198 = vector.broadcast %197 : vector<16x1xi1> to vector<16x32xi1>
    %199 = arith.select %198, %196, %179 : vector<16x32xi1>, vector<16x32xf32>
    %c0_54 = arith.constant 0 : index
    %c0_55 = arith.constant 0 : index
    %200 = vector.load %arg8[%c0_54, %c0_55] : memref<32x128xf32, #tpu.memory_space<vmem>>, vector<32x128xf32>
    %201 = arith.truncf %199 : vector<16x32xf32> to vector<16x32xbf16>
    %202 = arith.truncf %200 : vector<32x128xf32> to vector<32x128xbf16>
    %cst_56 = arith.constant dense<0.000000e+00> : vector<16x128xf32>
    %203 = tpu.matmul %201, %202, %cst_56 {dimension_numbers = #tpu.dot_dimension_numbers<[1], [0], [0], [1], [0, 0, 1, 1], [], []>} : vector<16x32xbf16>, vector<32x128xbf16>, vector<16x128xf32> -> vector<16x128xf32>
    %cst_57 = arith.constant 0.000000e+00 : f32
    %204 = vector.broadcast %cst_57 : f32 to vector<16x16xf32>
    %205 = arith.cmpf ogt, %4, %204 : vector<16x16xf32>
    %206 = vector.extract_strided_slice %203 {offsets = [0, 0], sizes = [16, 32], strides = [1, 1]} : vector<16x128xf32> to vector<16x32xf32>
    %207 = vector.extract_strided_slice %203 {offsets = [0, 32], sizes = [16, 1], strides = [1, 1]} : vector<16x128xf32> to vector<16x1xf32>
    %208 = vector.extract_strided_slice %203 {offsets = [0, 33], sizes = [16, 1], strides = [1, 1]} : vector<16x128xf32> to vector<16x1xf32>
    %209 = tpu.iota {dimensions = array<i32: 0>} : vector<16x16xi32>
    %210 = tpu.iota {dimensions = array<i32: 1>} : vector<16x16xi32>
    %211 = arith.cmpi eq, %209, %210 : vector<16x16xi32>
    %212 = vector.shape_cast %208 : vector<16x1xf32> to vector<16x1xf32>
    %213 = vector.broadcast %212 : vector<16x1xf32> to vector<16x16xf32>
    %cst_58 = arith.constant 0.000000e+00 : f32
    %214 = vector.broadcast %cst_58 : f32 to vector<16x16xf32>
    %215 = arith.select %211, %213, %214 : vector<16x16xi1>, vector<16x16xf32>
    %cst_59 = arith.constant dense<0.000000e+00> : vector<16xf32>
    %216 = vector.multi_reduction <add>, %215, %cst_59 [0] : vector<16x16xf32> to vector<16xf32>
    %217 = vector.shape_cast %216 : vector<16xf32> to vector<1x16xf32>
    %218 = vector.broadcast %207 : vector<16x1xf32> to vector<16x16xf32>
    %219 = vector.broadcast %217 : vector<1x16xf32> to vector<16x16xf32>
    %220 = arith.addf %218, %219 : vector<16x16xf32>
    %cst_60 = arith.constant 0.000000e+00 : f32
    %221 = vector.broadcast %cst_60 : f32 to vector<16x16xf32>
    %222 = arith.cmpf ogt, %220, %221 : vector<16x16xf32>
    %cst_61 = arith.constant 2.000000e-01 : f32
    %223 = vector.broadcast %cst_61 : f32 to vector<16x16xf32>
    %224 = arith.mulf %223, %220 : vector<16x16xf32>
    %225 = arith.select %222, %220, %224 : vector<16x16xi1>, vector<16x16xf32>
    %cst_62 = arith.constant -1.000000e+30 : f32
    %226 = vector.broadcast %cst_62 : f32 to vector<16x16xf32>
    %227 = arith.select %205, %225, %226 : vector<16x16xi1>, vector<16x16xf32>
    %cst_63 = arith.constant dense<0xFF800000> : vector<16xf32>
    %228 = vector.multi_reduction <maximumf>, %227, %cst_63 [1] : vector<16x16xf32> to vector<16xf32>
    %229 = vector.shape_cast %228 : vector<16xf32> to vector<16x1xf32>
    %230 = vector.broadcast %229 : vector<16x1xf32> to vector<16x16xf32>
    %231 = arith.subf %227, %230 : vector<16x16xf32>
    %232 = math.exp %231 : vector<16x16xf32>
    %cst_64 = arith.constant 0.000000e+00 : f32
    %233 = vector.broadcast %cst_64 : f32 to vector<16x16xf32>
    %234 = arith.select %205, %232, %233 : vector<16x16xi1>, vector<16x16xf32>
    %cst_65 = arith.constant dense<0.000000e+00> : vector<16xf32>
    %235 = vector.multi_reduction <add>, %234, %cst_65 [1] : vector<16x16xf32> to vector<16xf32>
    %236 = vector.shape_cast %235 : vector<16xf32> to vector<16x1xf32>
    %cst_66 = arith.constant 1.000000e-30 : f32
    %237 = vector.broadcast %cst_66 : f32 to vector<16x1xf32>
    %238 = arith.maximumf %236, %237 : vector<16x1xf32>
    %239 = tpu.reciprocal %238 {approx = true} : vector<16x1xf32> -> vector<16x1xf32>
    %240 = vector.broadcast %239 : vector<16x1xf32> to vector<16x16xf32>
    %241 = arith.mulf %234, %240 : vector<16x16xf32>
    %242 = arith.truncf %241 : vector<16x16xf32> to vector<16x16xbf16>
    %243 = arith.truncf %206 : vector<16x32xf32> to vector<16x32xbf16>
    %cst_67 = arith.constant dense<0.000000e+00> : vector<16x32xf32>
    %244 = tpu.matmul %242, %243, %cst_67 {dimension_numbers = #tpu.dot_dimension_numbers<[1], [0], [0], [1], [0, 0, 1, 1], [], []>} : vector<16x16xbf16>, vector<16x32xbf16>, vector<16x32xf32> -> vector<16x32xf32>
    %c5 = arith.constant 5 : index
    %c0_68 = arith.constant 0 : index
    %245 = vector.load %arg7[%c5, %c0_68] : memref<8x128xf32, #tpu.memory_space<vmem>>, vector<1x32xf32>
    %246 = vector.broadcast %245 : vector<1x32xf32> to vector<16x32xf32>
    %247 = arith.addf %244, %246 : vector<16x32xf32>
    %cst_69 = arith.constant 0.000000e+00 : f32
    %248 = vector.broadcast %cst_69 : f32 to vector<16x32xf32>
    %249 = arith.cmpf ogt, %247, %248 : vector<16x32xf32>
    %cst_70 = arith.constant 0.000000e+00 : f32
    %250 = vector.broadcast %cst_70 : f32 to vector<16x32xf32>
    %251 = arith.minimumf %247, %250 : vector<16x32xf32>
    %252 = math.exp %251 : vector<16x32xf32>
    %cst_71 = arith.constant 1.000000e+00 : f32
    %253 = vector.broadcast %cst_71 : f32 to vector<16x32xf32>
    %254 = arith.subf %252, %253 : vector<16x32xf32>
    %255 = arith.select %249, %247, %254 : vector<16x32xi1>, vector<16x32xf32>
    %cst_72 = arith.constant dense<0.000000e+00> : vector<16xf32>
    %256 = vector.multi_reduction <add>, %4, %cst_72 [1] : vector<16x16xf32> to vector<16xf32>
    %257 = vector.shape_cast %256 : vector<16xf32> to vector<16x1xf32>
    %cst_73 = arith.constant dense<0.000000e+00> : vector<16xf32>
    %258 = vector.multi_reduction <add>, %4, %cst_73 [0] : vector<16x16xf32> to vector<16xf32>
    %259 = vector.shape_cast %258 : vector<16xf32> to vector<1x16xf32>
    %260 = tpu.iota {dimensions = array<i32: 0>} : vector<16x16xi32>
    %261 = tpu.iota {dimensions = array<i32: 1>} : vector<16x16xi32>
    %262 = arith.cmpi eq, %260, %261 : vector<16x16xi32>
    %263 = vector.shape_cast %259 : vector<1x16xf32> to vector<1x16xf32>
    %264 = vector.broadcast %263 : vector<1x16xf32> to vector<16x16xf32>
    %cst_74 = arith.constant 0.000000e+00 : f32
    %265 = vector.broadcast %cst_74 : f32 to vector<16x16xf32>
    %266 = arith.select %262, %264, %265 : vector<16x16xi1>, vector<16x16xf32>
    %cst_75 = arith.constant dense<0.000000e+00> : vector<16xf32>
    %267 = vector.multi_reduction <add>, %266, %cst_75 [1] : vector<16x16xf32> to vector<16xf32>
    %268 = vector.shape_cast %267 : vector<16xf32> to vector<16x1xf32>
    %269 = arith.addf %257, %268 : vector<16x1xf32>
    %cst_76 = arith.constant 0.000000e+00 : f32
    %270 = vector.broadcast %cst_76 : f32 to vector<16x1xf32>
    %271 = arith.cmpf ogt, %269, %270 : vector<16x1xf32>
    %272 = vector.shape_cast %271 : vector<16x1xi1> to vector<16x1xi1>
    %273 = vector.broadcast %272 : vector<16x1xi1> to vector<16x32xi1>
    %274 = arith.select %273, %255, %199 : vector<16x32xi1>, vector<16x32xf32>
    %275 = arith.addf %1, %2 : vector<16x16xf32>
    %276 = arith.addf %275, %3 : vector<16x16xf32>
    %277 = arith.addf %276, %4 : vector<16x16xf32>
    %cst_77 = arith.constant dense<0.000000e+00> : vector<16xf32>
    %278 = vector.multi_reduction <add>, %277, %cst_77 [1] : vector<16x16xf32> to vector<16xf32>
    %279 = vector.shape_cast %278 : vector<16xf32> to vector<16x1xf32>
    %cst_78 = arith.constant dense<0.000000e+00> : vector<16xf32>
    %280 = vector.multi_reduction <add>, %277, %cst_78 [0] : vector<16x16xf32> to vector<16xf32>
    %281 = vector.shape_cast %280 : vector<16xf32> to vector<1x16xf32>
    %cst_79 = arith.constant 1.000000e+00 : f32
    %282 = vector.broadcast %cst_79 : f32 to vector<16x1xf32>
    %283 = arith.maximumf %279, %282 : vector<16x1xf32>
    %284 = math.rsqrt %283 : vector<16x1xf32>
    %cst_80 = arith.constant 1.000000e+00 : f32
    %285 = vector.broadcast %cst_80 : f32 to vector<1x16xf32>
    %286 = arith.maximumf %281, %285 : vector<1x16xf32>
    %287 = math.rsqrt %286 : vector<1x16xf32>
    %c6 = arith.constant 6 : index
    %c0_81 = arith.constant 0 : index
    %288 = vector.load %arg7[%c6, %c0_81] : memref<8x128xf32, #tpu.memory_space<vmem>>, vector<1x32xf32>
    %c6_82 = arith.constant 6 : index
    %c32 = arith.constant 32 : index
    %289 = vector.load %arg7[%c6_82, %c32] : memref<8x128xf32, #tpu.memory_space<vmem>>, vector<1x1xf32>
    %290 = vector.broadcast %288 : vector<1x32xf32> to vector<16x32xf32>
    %291 = arith.mulf %274, %290 : vector<16x32xf32>
    %cst_83 = arith.constant dense<0.000000e+00> : vector<16xf32>
    %292 = vector.multi_reduction <add>, %291, %cst_83 [1] : vector<16x32xf32> to vector<16xf32>
    %293 = vector.shape_cast %292 : vector<16xf32> to vector<16x1xf32>
    %294 = vector.broadcast %287 : vector<1x16xf32> to vector<16x16xf32>
    %295 = arith.mulf %277, %294 : vector<16x16xf32>
    %296 = arith.truncf %295 : vector<16x16xf32> to vector<16x16xbf16>
    %297 = arith.truncf %293 : vector<16x1xf32> to vector<16x1xbf16>
    %cst_84 = arith.constant dense<0.000000e+00> : vector<16x1xf32>
    %298 = tpu.matmul %296, %297, %cst_84 {dimension_numbers = #tpu.dot_dimension_numbers<[1], [0], [0], [1], [0, 0, 1, 1], [], []>} : vector<16x16xbf16>, vector<16x1xbf16>, vector<16x1xf32> -> vector<16x1xf32>
    %299 = arith.mulf %284, %298 : vector<16x1xf32>
    %300 = vector.broadcast %289 : vector<1x1xf32> to vector<16x1xf32>
    %301 = arith.addf %299, %300 : vector<16x1xf32>
    %302 = tpu.iota {dimensions = array<i32: 0>} : vector<16x16xi32>
    %303 = tpu.iota {dimensions = array<i32: 1>} : vector<16x16xi32>
    %304 = arith.cmpi eq, %302, %303 : vector<16x16xi32>
    %305 = vector.shape_cast %301 : vector<16x1xf32> to vector<16x1xf32>
    %306 = vector.broadcast %305 : vector<16x1xf32> to vector<16x16xf32>
    %cst_85 = arith.constant 0.000000e+00 : f32
    %307 = vector.broadcast %cst_85 : f32 to vector<16x16xf32>
    %308 = arith.select %304, %306, %307 : vector<16x16xi1>, vector<16x16xf32>
    %cst_86 = arith.constant dense<0.000000e+00> : vector<16xf32>
    %309 = vector.multi_reduction <add>, %308, %cst_86 [0] : vector<16x16xf32> to vector<16xf32>
    %310 = vector.shape_cast %309 : vector<16xf32> to vector<1x16xf32>
    %311 = tpu.iota {dimensions = array<i32: 0>} : vector<16x16xi32>
    %312 = tpu.iota {dimensions = array<i32: 1>} : vector<16x16xi32>
    %313 = vector.shape_cast %301 : vector<16x1xf32> to vector<16x1xf32>
    %314 = vector.broadcast %313 : vector<16x1xf32> to vector<16x16xf32>
    %315 = vector.shape_cast %310 : vector<1x16xf32> to vector<1x16xf32>
    %316 = vector.broadcast %315 : vector<1x16xf32> to vector<16x16xf32>
    %317 = arith.cmpf ogt, %314, %316 : vector<16x16xf32>
    %318 = arith.cmpf oeq, %314, %316 : vector<16x16xf32>
    %319 = arith.cmpi slt, %311, %312 : vector<16x16xi32>
    %320 = arith.andi %318, %319 : vector<16x16xi1>
    %321 = arith.ori %317, %320 : vector<16x16xi1>
    %322 = arith.extui %321 : vector<16x16xi1> to vector<16x16xi32>
    %323 = arith.sitofp %322 : vector<16x16xi32> to vector<16x16xf32>
    %cst_87 = arith.constant dense<0.000000e+00> : vector<16xf32>
    %324 = vector.multi_reduction <add>, %323, %cst_87 [0] : vector<16x16xf32> to vector<16xf32>
    %325 = vector.shape_cast %324 : vector<16xf32> to vector<1x16xf32>
    %326 = vector.shape_cast %325 : vector<1x16xf32> to vector<1x16xf32>
    %327 = vector.broadcast %326 : vector<1x16xf32> to vector<8x16xf32>
    %328 = tpu.iota {dimensions = array<i32: 0>} : vector<8x16xi32>
    %329 = arith.sitofp %328 : vector<8x16xi32> to vector<8x16xf32>
    %330 = arith.cmpf oeq, %327, %329 : vector<8x16xf32>
    %331 = arith.extui %330 : vector<8x16xi1> to vector<8x16xi32>
    %332 = arith.sitofp %331 : vector<8x16xi32> to vector<8x16xf32>
    %333 = math.tanh %301 : vector<16x1xf32>
    %334 = vector.broadcast %333 : vector<16x1xf32> to vector<16x32xf32>
    %335 = arith.mulf %274, %334 : vector<16x32xf32>
    %336 = arith.truncf %332 : vector<8x16xf32> to vector<8x16xbf16>
    %337 = arith.truncf %335 : vector<16x32xf32> to vector<16x32xbf16>
    %cst_88 = arith.constant dense<0.000000e+00> : vector<8x32xf32>
    %338 = tpu.matmul %336, %337, %cst_88 {dimension_numbers = #tpu.dot_dimension_numbers<[1], [0], [0], [1], [0, 0, 1, 1], [], []>} : vector<8x16xbf16>, vector<16x32xbf16>, vector<8x32xf32> -> vector<8x32xf32>
    %339 = tpu.concatenate %1, %2, %3, %4 in 1 : vector<16x16xf32>, vector<16x16xf32>, vector<16x16xf32>, vector<16x16xf32> -> vector<16x64xf32>
    %340 = arith.truncf %332 : vector<8x16xf32> to vector<8x16xbf16>
    %341 = arith.truncf %339 : vector<16x64xf32> to vector<16x64xbf16>
    %cst_89 = arith.constant dense<0.000000e+00> : vector<8x64xf32>
    %342 = tpu.matmul %340, %341, %cst_89 {dimension_numbers = #tpu.dot_dimension_numbers<[1], [0], [0], [1], [0, 0, 1, 1], [], []>} : vector<8x16xbf16>, vector<16x64xbf16>, vector<8x64xf32> -> vector<8x64xf32>
    %343 = vector.extract_strided_slice %342 {offsets = [0, 0], sizes = [8, 16], strides = [1, 1]} : vector<8x64xf32> to vector<8x16xf32>
    %344 = arith.truncf %343 : vector<8x16xf32> to vector<8x16xbf16>
    %345 = arith.truncf %332 : vector<8x16xf32> to vector<8x16xbf16>
    %cst_90 = arith.constant dense<0.000000e+00> : vector<8x8xf32>
    %346 = tpu.matmul %344, %345, %cst_90 {dimension_numbers = #tpu.dot_dimension_numbers<[1], [1], [0], [0], [0, 0, 1, 0], [], []>} : vector<8x16xbf16>, vector<8x16xbf16>, vector<8x8xf32> -> vector<8x8xf32>
    %347 = vector.extract_strided_slice %342 {offsets = [0, 16], sizes = [8, 16], strides = [1, 1]} : vector<8x64xf32> to vector<8x16xf32>
    %348 = arith.truncf %347 : vector<8x16xf32> to vector<8x16xbf16>
    %349 = arith.truncf %332 : vector<8x16xf32> to vector<8x16xbf16>
    %cst_91 = arith.constant dense<0.000000e+00> : vector<8x8xf32>
    %350 = tpu.matmul %348, %349, %cst_91 {dimension_numbers = #tpu.dot_dimension_numbers<[1], [1], [0], [0], [0, 0, 1, 0], [], []>} : vector<8x16xbf16>, vector<8x16xbf16>, vector<8x8xf32> -> vector<8x8xf32>
    %351 = vector.extract_strided_slice %342 {offsets = [0, 32], sizes = [8, 16], strides = [1, 1]} : vector<8x64xf32> to vector<8x16xf32>
    %352 = arith.truncf %351 : vector<8x16xf32> to vector<8x16xbf16>
    %353 = arith.truncf %332 : vector<8x16xf32> to vector<8x16xbf16>
    %cst_92 = arith.constant dense<0.000000e+00> : vector<8x8xf32>
    %354 = tpu.matmul %352, %353, %cst_92 {dimension_numbers = #tpu.dot_dimension_numbers<[1], [1], [0], [0], [0, 0, 1, 0], [], []>} : vector<8x16xbf16>, vector<8x16xbf16>, vector<8x8xf32> -> vector<8x8xf32>
    %355 = vector.extract_strided_slice %342 {offsets = [0, 48], sizes = [8, 16], strides = [1, 1]} : vector<8x64xf32> to vector<8x16xf32>
    %356 = arith.truncf %355 : vector<8x16xf32> to vector<8x16xbf16>
    %357 = arith.truncf %332 : vector<8x16xf32> to vector<8x16xbf16>
    %cst_93 = arith.constant dense<0.000000e+00> : vector<8x8xf32>
    %358 = tpu.matmul %356, %357, %cst_93 {dimension_numbers = #tpu.dot_dimension_numbers<[1], [1], [0], [0], [0, 0, 1, 0], [], []>} : vector<8x16xbf16>, vector<8x16xbf16>, vector<8x8xf32> -> vector<8x8xf32>
    %359 = tpu.iota {dimensions = array<i32: 1>} : vector<8x128xi32>
    %c0_i32_94 = arith.constant 0 : i32
    %360 = vector.broadcast %c0_i32_94 : i32 to vector<8x128xi32>
    %361 = arith.cmpi sge, %359, %360 : vector<8x128xi32>
    %c32_i32_95 = arith.constant 32 : i32
    %362 = vector.broadcast %c32_i32_95 : i32 to vector<8x128xi32>
    %363 = arith.cmpi slt, %359, %362 : vector<8x128xi32>
    %364 = arith.andi %361, %363 : vector<8x128xi1>
    %cst_96 = arith.constant 1.000000e+00 : f32
    %cst_97 = arith.constant 0.000000e+00 : f32
    %365 = vector.broadcast %cst_96 : f32 to vector<8x128xf32>
    %366 = vector.broadcast %cst_97 : f32 to vector<8x128xf32>
    %367 = arith.select %364, %365, %366 : vector<8x128xi1>, vector<8x128xf32>
    %c32_i32_98 = arith.constant 32 : i32
    %368 = vector.broadcast %c32_i32_98 : i32 to vector<8x128xi32>
    %369 = arith.cmpi sge, %359, %368 : vector<8x128xi32>
    %c64_i32_99 = arith.constant 64 : i32
    %370 = vector.broadcast %c64_i32_99 : i32 to vector<8x128xi32>
    %371 = arith.cmpi slt, %359, %370 : vector<8x128xi32>
    %372 = arith.andi %369, %371 : vector<8x128xi1>
    %cst_100 = arith.constant 1.000000e+00 : f32
    %cst_101 = arith.constant 0.000000e+00 : f32
    %373 = vector.broadcast %cst_100 : f32 to vector<8x128xf32>
    %374 = vector.broadcast %cst_101 : f32 to vector<8x128xf32>
    %375 = arith.select %372, %373, %374 : vector<8x128xi1>, vector<8x128xf32>
    %c64_i32_102 = arith.constant 64 : i32
    %376 = vector.broadcast %c64_i32_102 : i32 to vector<8x128xi32>
    %377 = arith.cmpi sge, %359, %376 : vector<8x128xi32>
    %c96_i32_103 = arith.constant 96 : i32
    %378 = vector.broadcast %c96_i32_103 : i32 to vector<8x128xi32>
    %379 = arith.cmpi slt, %359, %378 : vector<8x128xi32>
    %380 = arith.andi %377, %379 : vector<8x128xi1>
    %cst_104 = arith.constant 1.000000e+00 : f32
    %cst_105 = arith.constant 0.000000e+00 : f32
    %381 = vector.broadcast %cst_104 : f32 to vector<8x128xf32>
    %382 = vector.broadcast %cst_105 : f32 to vector<8x128xf32>
    %383 = arith.select %380, %381, %382 : vector<8x128xi1>, vector<8x128xf32>
    %cst_106 = arith.constant 0.000000e+00 : f32
    %384 = vector.broadcast %cst_106 : f32 to vector<8x32xf32>
    %385 = tpu.concatenate %338, %338, %338, %384 in 1 : vector<8x32xf32>, vector<8x32xf32>, vector<8x32xf32>, vector<8x32xf32> -> vector<8x128xf32>
    %386 = tpu.concatenate %346, %350, %354 in 1 : vector<8x8xf32>, vector<8x8xf32>, vector<8x8xf32> -> vector<8x24xf32>
    %c0_107 = arith.constant 0 : index
    %c0_108 = arith.constant 0 : index
    %387 = vector.load %arg9[%c0_107, %c0_108] : memref<128x512xf32, #tpu.memory_space<vmem>>, vector<128x512xf32>
    %c0_109 = arith.constant 0 : index
    %c0_110 = arith.constant 0 : index
    %388 = vector.load %arg10[%c0_109, %c0_110] : memref<128x384xf32, #tpu.memory_space<vmem>>, vector<128x384xf32>
    %c0_111 = arith.constant 0 : index
    %c0_112 = arith.constant 0 : index
    %389 = vector.load %arg11[%c0_111, %c0_112] : memref<8x128xf32, #tpu.memory_space<vmem>>, vector<1x128xf32>
    %390 = vector.shape_cast %389 : vector<1x128xf32> to vector<1x128xf32>
    %391 = vector.broadcast %390 : vector<1x128xf32> to vector<8x128xf32>
    %c1_113 = arith.constant 1 : index
    %c0_114 = arith.constant 0 : index
    %392 = vector.load %arg11[%c1_113, %c0_114] : memref<8x128xf32, #tpu.memory_space<vmem>>, vector<1x128xf32>
    %393 = vector.shape_cast %392 : vector<1x128xf32> to vector<1x128xf32>
    %394 = vector.broadcast %393 : vector<1x128xf32> to vector<8x128xf32>
    %c2_115 = arith.constant 2 : index
    %c0_116 = arith.constant 0 : index
    %395 = vector.load %arg11[%c2_115, %c0_116] : memref<8x128xf32, #tpu.memory_space<vmem>>, vector<1x128xf32>
    %396 = vector.shape_cast %395 : vector<1x128xf32> to vector<1x128xf32>
    %397 = vector.broadcast %396 : vector<1x128xf32> to vector<8x128xf32>
    %c3_117 = arith.constant 3 : index
    %c0_118 = arith.constant 0 : index
    %398 = vector.load %arg11[%c3_117, %c0_118] : memref<8x128xf32, #tpu.memory_space<vmem>>, vector<1x128xf32>
    %399 = vector.shape_cast %398 : vector<1x128xf32> to vector<1x128xf32>
    %400 = vector.broadcast %399 : vector<1x128xf32> to vector<8x128xf32>
    %c4_119 = arith.constant 4 : index
    %c0_120 = arith.constant 0 : index
    %401 = vector.load %arg11[%c4_119, %c0_120] : memref<8x128xf32, #tpu.memory_space<vmem>>, vector<1x128xf32>
    %402 = vector.shape_cast %401 : vector<1x128xf32> to vector<1x128xf32>
    %403 = vector.broadcast %402 : vector<1x128xf32> to vector<8x128xf32>
    %404 = arith.truncf %385 : vector<8x128xf32> to vector<8x128xbf16>
    %405 = arith.truncf %387 : vector<128x512xf32> to vector<128x512xbf16>
    %cst_121 = arith.constant dense<0.000000e+00> : vector<8x512xf32>
    %406 = tpu.matmul %404, %405, %cst_121 {dimension_numbers = #tpu.dot_dimension_numbers<[1], [0], [0], [1], [0, 0, 1, 1], [], []>} : vector<8x128xbf16>, vector<128x512xbf16>, vector<8x512xf32> -> vector<8x512xf32>
    %407 = vector.extract_strided_slice %406 {offsets = [0, 0], sizes = [8, 128], strides = [1, 1]} : vector<8x512xf32> to vector<8x128xf32>
    %408 = arith.addf %407, %391 : vector<8x128xf32>
    %409 = arith.mulf %408, %367 : vector<8x128xf32>
    %410 = arith.mulf %408, %375 : vector<8x128xf32>
    %411 = arith.mulf %408, %383 : vector<8x128xf32>
    %412 = tpu.concatenate %409, %410, %411 in 0 : vector<8x128xf32>, vector<8x128xf32>, vector<8x128xf32> -> vector<24x128xf32>
    %413 = arith.truncf %386 : vector<8x24xf32> to vector<8x24xbf16>
    %414 = arith.truncf %412 : vector<24x128xf32> to vector<24x128xbf16>
    %cst_122 = arith.constant dense<0.000000e+00> : vector<8x128xf32>
    %415 = tpu.matmul %413, %414, %cst_122 {dimension_numbers = #tpu.dot_dimension_numbers<[1], [0], [0], [1], [0, 0, 1, 1], [], []>} : vector<8x24xbf16>, vector<24x128xbf16>, vector<8x128xf32> -> vector<8x128xf32>
    %416 = arith.truncf %415 : vector<8x128xf32> to vector<8x128xbf16>
    %417 = arith.truncf %388 : vector<128x384xf32> to vector<128x384xbf16>
    %cst_123 = arith.constant dense<0.000000e+00> : vector<8x384xf32>
    %418 = tpu.matmul %416, %417, %cst_123 {dimension_numbers = #tpu.dot_dimension_numbers<[1], [0], [0], [1], [0, 0, 1, 1], [], []>} : vector<8x128xbf16>, vector<128x384xbf16>, vector<8x384xf32> -> vector<8x384xf32>
    %419 = vector.extract_strided_slice %418 {offsets = [0, 0], sizes = [8, 128], strides = [1, 1]} : vector<8x384xf32> to vector<8x128xf32>
    %420 = vector.extract_strided_slice %406 {offsets = [0, 128], sizes = [8, 128], strides = [1, 1]} : vector<8x512xf32> to vector<8x128xf32>
    %421 = arith.addf %419, %420 : vector<8x128xf32>
    %422 = arith.addf %421, %394 : vector<8x128xf32>
    %423 = arith.negf %422 : vector<8x128xf32>
    %424 = math.exp %423 : vector<8x128xf32>
    %cst_124 = arith.constant 1.000000e+00 : f32
    %425 = vector.broadcast %cst_124 : f32 to vector<8x128xf32>
    %426 = arith.addf %425, %424 : vector<8x128xf32>
    %427 = arith.divf %425, %426 : vector<8x128xf32>
    %428 = vector.extract_strided_slice %418 {offsets = [0, 128], sizes = [8, 128], strides = [1, 1]} : vector<8x384xf32> to vector<8x128xf32>
    %429 = vector.extract_strided_slice %406 {offsets = [0, 256], sizes = [8, 128], strides = [1, 1]} : vector<8x512xf32> to vector<8x128xf32>
    %430 = arith.addf %428, %429 : vector<8x128xf32>
    %431 = arith.addf %430, %397 : vector<8x128xf32>
    %432 = arith.negf %431 : vector<8x128xf32>
    %433 = math.exp %432 : vector<8x128xf32>
    %cst_125 = arith.constant 1.000000e+00 : f32
    %434 = vector.broadcast %cst_125 : f32 to vector<8x128xf32>
    %435 = arith.addf %434, %433 : vector<8x128xf32>
    %436 = arith.divf %434, %435 : vector<8x128xf32>
    %437 = vector.extract_strided_slice %418 {offsets = [0, 256], sizes = [8, 128], strides = [1, 1]} : vector<8x384xf32> to vector<8x128xf32>
    %438 = arith.addf %437, %400 : vector<8x128xf32>
    %439 = vector.extract_strided_slice %406 {offsets = [0, 384], sizes = [8, 128], strides = [1, 1]} : vector<8x512xf32> to vector<8x128xf32>
    %440 = arith.addf %439, %403 : vector<8x128xf32>
    %441 = arith.mulf %427, %440 : vector<8x128xf32>
    %442 = arith.addf %438, %441 : vector<8x128xf32>
    %443 = math.tanh %442 : vector<8x128xf32>
    %cst_126 = arith.constant 1.000000e+00 : f32
    %444 = vector.broadcast %cst_126 : f32 to vector<8x128xf32>
    %445 = arith.subf %444, %436 : vector<8x128xf32>
    %446 = arith.mulf %445, %443 : vector<8x128xf32>
    %447 = arith.mulf %436, %385 : vector<8x128xf32>
    %448 = arith.addf %446, %447 : vector<8x128xf32>
    %449 = arith.truncf %448 : vector<8x128xf32> to vector<8x128xbf16>
    %450 = arith.truncf %387 : vector<128x512xf32> to vector<128x512xbf16>
    %cst_127 = arith.constant dense<0.000000e+00> : vector<8x512xf32>
    %451 = tpu.matmul %449, %450, %cst_127 {dimension_numbers = #tpu.dot_dimension_numbers<[1], [0], [0], [1], [0, 0, 1, 1], [], []>} : vector<8x128xbf16>, vector<128x512xbf16>, vector<8x512xf32> -> vector<8x512xf32>
    %452 = vector.extract_strided_slice %451 {offsets = [0, 0], sizes = [8, 128], strides = [1, 1]} : vector<8x512xf32> to vector<8x128xf32>
    %453 = arith.addf %452, %391 : vector<8x128xf32>
    %454 = arith.mulf %453, %367 : vector<8x128xf32>
    %455 = arith.mulf %453, %375 : vector<8x128xf32>
    %456 = arith.mulf %453, %383 : vector<8x128xf32>
    %457 = tpu.concatenate %454, %455, %456 in 0 : vector<8x128xf32>, vector<8x128xf32>, vector<8x128xf32> -> vector<24x128xf32>
    %458 = arith.truncf %386 : vector<8x24xf32> to vector<8x24xbf16>
    %459 = arith.truncf %457 : vector<24x128xf32> to vector<24x128xbf16>
    %cst_128 = arith.constant dense<0.000000e+00> : vector<8x128xf32>
    %460 = tpu.matmul %458, %459, %cst_128 {dimension_numbers = #tpu.dot_dimension_numbers<[1], [0], [0], [1], [0, 0, 1, 1], [], []>} : vector<8x24xbf16>, vector<24x128xbf16>, vector<8x128xf32> -> vector<8x128xf32>
    %461 = arith.truncf %460 : vector<8x128xf32> to vector<8x128xbf16>
    %462 = arith.truncf %388 : vector<128x384xf32> to vector<128x384xbf16>
    %cst_129 = arith.constant dense<0.000000e+00> : vector<8x384xf32>
    %463 = tpu.matmul %461, %462, %cst_129 {dimension_numbers = #tpu.dot_dimension_numbers<[1], [0], [0], [1], [0, 0, 1, 1], [], []>} : vector<8x128xbf16>, vector<128x384xbf16>, vector<8x384xf32> -> vector<8x384xf32>
    %464 = vector.extract_strided_slice %463 {offsets = [0, 0], sizes = [8, 128], strides = [1, 1]} : vector<8x384xf32> to vector<8x128xf32>
    %465 = vector.extract_strided_slice %451 {offsets = [0, 128], sizes = [8, 128], strides = [1, 1]} : vector<8x512xf32> to vector<8x128xf32>
    %466 = arith.addf %464, %465 : vector<8x128xf32>
    %467 = arith.addf %466, %394 : vector<8x128xf32>
    %468 = arith.negf %467 : vector<8x128xf32>
    %469 = math.exp %468 : vector<8x128xf32>
    %cst_130 = arith.constant 1.000000e+00 : f32
    %470 = vector.broadcast %cst_130 : f32 to vector<8x128xf32>
    %471 = arith.addf %470, %469 : vector<8x128xf32>
    %472 = arith.divf %470, %471 : vector<8x128xf32>
    %473 = vector.extract_strided_slice %463 {offsets = [0, 128], sizes = [8, 128], strides = [1, 1]} : vector<8x384xf32> to vector<8x128xf32>
    %474 = vector.extract_strided_slice %451 {offsets = [0, 256], sizes = [8, 128], strides = [1, 1]} : vector<8x512xf32> to vector<8x128xf32>
    %475 = arith.addf %473, %474 : vector<8x128xf32>
    %476 = arith.addf %475, %397 : vector<8x128xf32>
    %477 = arith.negf %476 : vector<8x128xf32>
    %478 = math.exp %477 : vector<8x128xf32>
    %cst_131 = arith.constant 1.000000e+00 : f32
    %479 = vector.broadcast %cst_131 : f32 to vector<8x128xf32>
    %480 = arith.addf %479, %478 : vector<8x128xf32>
    %481 = arith.divf %479, %480 : vector<8x128xf32>
    %482 = vector.extract_strided_slice %463 {offsets = [0, 256], sizes = [8, 128], strides = [1, 1]} : vector<8x384xf32> to vector<8x128xf32>
    %483 = arith.addf %482, %400 : vector<8x128xf32>
    %484 = vector.extract_strided_slice %451 {offsets = [0, 384], sizes = [8, 128], strides = [1, 1]} : vector<8x512xf32> to vector<8x128xf32>
    %485 = arith.addf %484, %403 : vector<8x128xf32>
    %486 = arith.mulf %472, %485 : vector<8x128xf32>
    %487 = arith.addf %483, %486 : vector<8x128xf32>
    %488 = math.tanh %487 : vector<8x128xf32>
    %cst_132 = arith.constant 1.000000e+00 : f32
    %489 = vector.broadcast %cst_132 : f32 to vector<8x128xf32>
    %490 = arith.subf %489, %481 : vector<8x128xf32>
    %491 = arith.mulf %490, %488 : vector<8x128xf32>
    %492 = arith.mulf %481, %448 : vector<8x128xf32>
    %493 = arith.addf %491, %492 : vector<8x128xf32>
    %cst_133 = arith.constant dense<0.000000e+00> : vector<8xf32>
    %494 = vector.multi_reduction <add>, %346, %cst_133 [1] : vector<8x8xf32> to vector<8xf32>
    %495 = vector.shape_cast %494 : vector<8xf32> to vector<8x1xf32>
    %cst_134 = arith.constant dense<0.000000e+00> : vector<8xf32>
    %496 = vector.multi_reduction <add>, %346, %cst_134 [0] : vector<8x8xf32> to vector<8xf32>
    %497 = vector.shape_cast %496 : vector<8xf32> to vector<1x8xf32>
    %498 = tpu.iota {dimensions = array<i32: 0>} : vector<8x8xi32>
    %499 = tpu.iota {dimensions = array<i32: 1>} : vector<8x8xi32>
    %500 = arith.cmpi eq, %498, %499 : vector<8x8xi32>
    %501 = vector.shape_cast %497 : vector<1x8xf32> to vector<1x8xf32>
    %502 = vector.broadcast %501 : vector<1x8xf32> to vector<8x8xf32>
    %cst_135 = arith.constant 0.000000e+00 : f32
    %503 = vector.broadcast %cst_135 : f32 to vector<8x8xf32>
    %504 = arith.select %500, %502, %503 : vector<8x8xi1>, vector<8x8xf32>
    %cst_136 = arith.constant dense<0.000000e+00> : vector<8xf32>
    %505 = vector.multi_reduction <add>, %504, %cst_136 [1] : vector<8x8xf32> to vector<8xf32>
    %506 = vector.shape_cast %505 : vector<8xf32> to vector<8x1xf32>
    %507 = arith.addf %495, %506 : vector<8x1xf32>
    %cst_137 = arith.constant 0.000000e+00 : f32
    %508 = vector.broadcast %cst_137 : f32 to vector<8x1xf32>
    %509 = arith.cmpf ogt, %507, %508 : vector<8x1xf32>
    %510 = vector.extract_strided_slice %493 {offsets = [0, 0], sizes = [8, 32], strides = [1, 1]} : vector<8x128xf32> to vector<8x32xf32>
    %511 = vector.shape_cast %509 : vector<8x1xi1> to vector<8x1xi1>
    %512 = vector.broadcast %511 : vector<8x1xi1> to vector<8x32xi1>
    %513 = arith.select %512, %510, %338 : vector<8x32xi1>, vector<8x32xf32>
    %cst_138 = arith.constant dense<0.000000e+00> : vector<8xf32>
    %514 = vector.multi_reduction <add>, %350, %cst_138 [1] : vector<8x8xf32> to vector<8xf32>
    %515 = vector.shape_cast %514 : vector<8xf32> to vector<8x1xf32>
    %cst_139 = arith.constant dense<0.000000e+00> : vector<8xf32>
    %516 = vector.multi_reduction <add>, %350, %cst_139 [0] : vector<8x8xf32> to vector<8xf32>
    %517 = vector.shape_cast %516 : vector<8xf32> to vector<1x8xf32>
    %518 = tpu.iota {dimensions = array<i32: 0>} : vector<8x8xi32>
    %519 = tpu.iota {dimensions = array<i32: 1>} : vector<8x8xi32>
    %520 = arith.cmpi eq, %518, %519 : vector<8x8xi32>
    %521 = vector.shape_cast %517 : vector<1x8xf32> to vector<1x8xf32>
    %522 = vector.broadcast %521 : vector<1x8xf32> to vector<8x8xf32>
    %cst_140 = arith.constant 0.000000e+00 : f32
    %523 = vector.broadcast %cst_140 : f32 to vector<8x8xf32>
    %524 = arith.select %520, %522, %523 : vector<8x8xi1>, vector<8x8xf32>
    %cst_141 = arith.constant dense<0.000000e+00> : vector<8xf32>
    %525 = vector.multi_reduction <add>, %524, %cst_141 [1] : vector<8x8xf32> to vector<8xf32>
    %526 = vector.shape_cast %525 : vector<8xf32> to vector<8x1xf32>
    %527 = arith.addf %515, %526 : vector<8x1xf32>
    %cst_142 = arith.constant 0.000000e+00 : f32
    %528 = vector.broadcast %cst_142 : f32 to vector<8x1xf32>
    %529 = arith.cmpf ogt, %527, %528 : vector<8x1xf32>
    %530 = vector.extract_strided_slice %493 {offsets = [0, 32], sizes = [8, 32], strides = [1, 1]} : vector<8x128xf32> to vector<8x32xf32>
    %531 = vector.shape_cast %529 : vector<8x1xi1> to vector<8x1xi1>
    %532 = vector.broadcast %531 : vector<8x1xi1> to vector<8x32xi1>
    %533 = arith.select %532, %530, %513 : vector<8x32xi1>, vector<8x32xf32>
    %cst_143 = arith.constant dense<0.000000e+00> : vector<8xf32>
    %534 = vector.multi_reduction <add>, %354, %cst_143 [1] : vector<8x8xf32> to vector<8xf32>
    %535 = vector.shape_cast %534 : vector<8xf32> to vector<8x1xf32>
    %cst_144 = arith.constant dense<0.000000e+00> : vector<8xf32>
    %536 = vector.multi_reduction <add>, %354, %cst_144 [0] : vector<8x8xf32> to vector<8xf32>
    %537 = vector.shape_cast %536 : vector<8xf32> to vector<1x8xf32>
    %538 = tpu.iota {dimensions = array<i32: 0>} : vector<8x8xi32>
    %539 = tpu.iota {dimensions = array<i32: 1>} : vector<8x8xi32>
    %540 = arith.cmpi eq, %538, %539 : vector<8x8xi32>
    %541 = vector.shape_cast %537 : vector<1x8xf32> to vector<1x8xf32>
    %542 = vector.broadcast %541 : vector<1x8xf32> to vector<8x8xf32>
    %cst_145 = arith.constant 0.000000e+00 : f32
    %543 = vector.broadcast %cst_145 : f32 to vector<8x8xf32>
    %544 = arith.select %540, %542, %543 : vector<8x8xi1>, vector<8x8xf32>
    %cst_146 = arith.constant dense<0.000000e+00> : vector<8xf32>
    %545 = vector.multi_reduction <add>, %544, %cst_146 [1] : vector<8x8xf32> to vector<8xf32>
    %546 = vector.shape_cast %545 : vector<8xf32> to vector<8x1xf32>
    %547 = arith.addf %535, %546 : vector<8x1xf32>
    %cst_147 = arith.constant 0.000000e+00 : f32
    %548 = vector.broadcast %cst_147 : f32 to vector<8x1xf32>
    %549 = arith.cmpf ogt, %547, %548 : vector<8x1xf32>
    %550 = vector.extract_strided_slice %493 {offsets = [0, 64], sizes = [8, 32], strides = [1, 1]} : vector<8x128xf32> to vector<8x32xf32>
    %551 = vector.shape_cast %549 : vector<8x1xi1> to vector<8x1xi1>
    %552 = vector.broadcast %551 : vector<8x1xi1> to vector<8x32xi1>
    %553 = arith.select %552, %550, %533 : vector<8x32xi1>, vector<8x32xf32>
    %c0_148 = arith.constant 0 : index
    %c0_149 = arith.constant 0 : index
    %554 = vector.load %arg12[%c0_148, %c0_149] : memref<32x128xf32, #tpu.memory_space<vmem>>, vector<32x128xf32>
    %555 = arith.truncf %553 : vector<8x32xf32> to vector<8x32xbf16>
    %556 = arith.truncf %554 : vector<32x128xf32> to vector<32x128xbf16>
    %cst_150 = arith.constant dense<0.000000e+00> : vector<8x128xf32>
    %557 = tpu.matmul %555, %556, %cst_150 {dimension_numbers = #tpu.dot_dimension_numbers<[1], [0], [0], [1], [0, 0, 1, 1], [], []>} : vector<8x32xbf16>, vector<32x128xbf16>, vector<8x128xf32> -> vector<8x128xf32>
    %cst_151 = arith.constant 0.000000e+00 : f32
    %558 = vector.broadcast %cst_151 : f32 to vector<8x8xf32>
    %559 = arith.cmpf ogt, %358, %558 : vector<8x8xf32>
    %560 = vector.extract_strided_slice %557 {offsets = [0, 0], sizes = [8, 32], strides = [1, 1]} : vector<8x128xf32> to vector<8x32xf32>
    %561 = vector.extract_strided_slice %557 {offsets = [0, 32], sizes = [8, 1], strides = [1, 1]} : vector<8x128xf32> to vector<8x1xf32>
    %562 = vector.extract_strided_slice %557 {offsets = [0, 33], sizes = [8, 1], strides = [1, 1]} : vector<8x128xf32> to vector<8x1xf32>
    %563 = tpu.iota {dimensions = array<i32: 0>} : vector<8x8xi32>
    %564 = tpu.iota {dimensions = array<i32: 1>} : vector<8x8xi32>
    %565 = arith.cmpi eq, %563, %564 : vector<8x8xi32>
    %566 = vector.shape_cast %562 : vector<8x1xf32> to vector<8x1xf32>
    %567 = vector.broadcast %566 : vector<8x1xf32> to vector<8x8xf32>
    %cst_152 = arith.constant 0.000000e+00 : f32
    %568 = vector.broadcast %cst_152 : f32 to vector<8x8xf32>
    %569 = arith.select %565, %567, %568 : vector<8x8xi1>, vector<8x8xf32>
    %cst_153 = arith.constant dense<0.000000e+00> : vector<8xf32>
    %570 = vector.multi_reduction <add>, %569, %cst_153 [0] : vector<8x8xf32> to vector<8xf32>
    %571 = vector.shape_cast %570 : vector<8xf32> to vector<1x8xf32>
    %572 = vector.broadcast %561 : vector<8x1xf32> to vector<8x8xf32>
    %573 = vector.broadcast %571 : vector<1x8xf32> to vector<8x8xf32>
    %574 = arith.addf %572, %573 : vector<8x8xf32>
    %cst_154 = arith.constant 0.000000e+00 : f32
    %575 = vector.broadcast %cst_154 : f32 to vector<8x8xf32>
    %576 = arith.cmpf ogt, %574, %575 : vector<8x8xf32>
    %cst_155 = arith.constant 2.000000e-01 : f32
    %577 = vector.broadcast %cst_155 : f32 to vector<8x8xf32>
    %578 = arith.mulf %577, %574 : vector<8x8xf32>
    %579 = arith.select %576, %574, %578 : vector<8x8xi1>, vector<8x8xf32>
    %cst_156 = arith.constant -1.000000e+30 : f32
    %580 = vector.broadcast %cst_156 : f32 to vector<8x8xf32>
    %581 = arith.select %559, %579, %580 : vector<8x8xi1>, vector<8x8xf32>
    %cst_157 = arith.constant dense<0xFF800000> : vector<8xf32>
    %582 = vector.multi_reduction <maximumf>, %581, %cst_157 [1] : vector<8x8xf32> to vector<8xf32>
    %583 = vector.shape_cast %582 : vector<8xf32> to vector<8x1xf32>
    %584 = vector.broadcast %583 : vector<8x1xf32> to vector<8x8xf32>
    %585 = arith.subf %581, %584 : vector<8x8xf32>
    %586 = math.exp %585 : vector<8x8xf32>
    %cst_158 = arith.constant 0.000000e+00 : f32
    %587 = vector.broadcast %cst_158 : f32 to vector<8x8xf32>
    %588 = arith.select %559, %586, %587 : vector<8x8xi1>, vector<8x8xf32>
    %cst_159 = arith.constant dense<0.000000e+00> : vector<8xf32>
    %589 = vector.multi_reduction <add>, %588, %cst_159 [1] : vector<8x8xf32> to vector<8xf32>
    %590 = vector.shape_cast %589 : vector<8xf32> to vector<8x1xf32>
    %cst_160 = arith.constant 1.000000e-30 : f32
    %591 = vector.broadcast %cst_160 : f32 to vector<8x1xf32>
    %592 = arith.maximumf %590, %591 : vector<8x1xf32>
    %593 = tpu.reciprocal %592 {approx = true} : vector<8x1xf32> -> vector<8x1xf32>
    %594 = vector.broadcast %593 : vector<8x1xf32> to vector<8x8xf32>
    %595 = arith.mulf %588, %594 : vector<8x8xf32>
    %596 = arith.truncf %595 : vector<8x8xf32> to vector<8x8xbf16>
    %597 = arith.truncf %560 : vector<8x32xf32> to vector<8x32xbf16>
    %cst_161 = arith.constant dense<0.000000e+00> : vector<8x32xf32>
    %598 = tpu.matmul %596, %597, %cst_161 {dimension_numbers = #tpu.dot_dimension_numbers<[1], [0], [0], [1], [0, 0, 1, 1], [], []>} : vector<8x8xbf16>, vector<8x32xbf16>, vector<8x32xf32> -> vector<8x32xf32>
    %c5_162 = arith.constant 5 : index
    %c0_163 = arith.constant 0 : index
    %599 = vector.load %arg11[%c5_162, %c0_163] : memref<8x128xf32, #tpu.memory_space<vmem>>, vector<1x32xf32>
    %600 = vector.broadcast %599 : vector<1x32xf32> to vector<8x32xf32>
    %601 = arith.addf %598, %600 : vector<8x32xf32>
    %cst_164 = arith.constant 0.000000e+00 : f32
    %602 = vector.broadcast %cst_164 : f32 to vector<8x32xf32>
    %603 = arith.cmpf ogt, %601, %602 : vector<8x32xf32>
    %cst_165 = arith.constant 0.000000e+00 : f32
    %604 = vector.broadcast %cst_165 : f32 to vector<8x32xf32>
    %605 = arith.minimumf %601, %604 : vector<8x32xf32>
    %606 = math.exp %605 : vector<8x32xf32>
    %cst_166 = arith.constant 1.000000e+00 : f32
    %607 = vector.broadcast %cst_166 : f32 to vector<8x32xf32>
    %608 = arith.subf %606, %607 : vector<8x32xf32>
    %609 = arith.select %603, %601, %608 : vector<8x32xi1>, vector<8x32xf32>
    %cst_167 = arith.constant dense<0.000000e+00> : vector<8xf32>
    %610 = vector.multi_reduction <add>, %358, %cst_167 [1] : vector<8x8xf32> to vector<8xf32>
    %611 = vector.shape_cast %610 : vector<8xf32> to vector<8x1xf32>
    %cst_168 = arith.constant dense<0.000000e+00> : vector<8xf32>
    %612 = vector.multi_reduction <add>, %358, %cst_168 [0] : vector<8x8xf32> to vector<8xf32>
    %613 = vector.shape_cast %612 : vector<8xf32> to vector<1x8xf32>
    %614 = tpu.iota {dimensions = array<i32: 0>} : vector<8x8xi32>
    %615 = tpu.iota {dimensions = array<i32: 1>} : vector<8x8xi32>
    %616 = arith.cmpi eq, %614, %615 : vector<8x8xi32>
    %617 = vector.shape_cast %613 : vector<1x8xf32> to vector<1x8xf32>
    %618 = vector.broadcast %617 : vector<1x8xf32> to vector<8x8xf32>
    %cst_169 = arith.constant 0.000000e+00 : f32
    %619 = vector.broadcast %cst_169 : f32 to vector<8x8xf32>
    %620 = arith.select %616, %618, %619 : vector<8x8xi1>, vector<8x8xf32>
    %cst_170 = arith.constant dense<0.000000e+00> : vector<8xf32>
    %621 = vector.multi_reduction <add>, %620, %cst_170 [1] : vector<8x8xf32> to vector<8xf32>
    %622 = vector.shape_cast %621 : vector<8xf32> to vector<8x1xf32>
    %623 = arith.addf %611, %622 : vector<8x1xf32>
    %cst_171 = arith.constant 0.000000e+00 : f32
    %624 = vector.broadcast %cst_171 : f32 to vector<8x1xf32>
    %625 = arith.cmpf ogt, %623, %624 : vector<8x1xf32>
    %626 = vector.shape_cast %625 : vector<8x1xi1> to vector<8x1xi1>
    %627 = vector.broadcast %626 : vector<8x1xi1> to vector<8x32xi1>
    %628 = arith.select %627, %609, %553 : vector<8x32xi1>, vector<8x32xf32>
    %c6_172 = arith.constant 6 : index
    %c0_173 = arith.constant 0 : index
    %629 = vector.load %arg11[%c6_172, %c0_173] : memref<8x128xf32, #tpu.memory_space<vmem>>, vector<1x32xf32>
    %c6_174 = arith.constant 6 : index
    %c32_175 = arith.constant 32 : index
    %630 = vector.load %arg11[%c6_174, %c32_175] : memref<8x128xf32, #tpu.memory_space<vmem>>, vector<1x1xf32>
    %631 = vector.broadcast %629 : vector<1x32xf32> to vector<8x32xf32>
    %632 = arith.mulf %628, %631 : vector<8x32xf32>
    %cst_176 = arith.constant dense<0.000000e+00> : vector<8xf32>
    %633 = vector.multi_reduction <add>, %632, %cst_176 [1] : vector<8x32xf32> to vector<8xf32>
    %634 = vector.shape_cast %633 : vector<8xf32> to vector<8x1xf32>
    %635 = vector.broadcast %630 : vector<1x1xf32> to vector<8x1xf32>
    %636 = arith.addf %634, %635 : vector<8x1xf32>
    %cst_177 = arith.constant dense<0xFF800000> : vector<1xf32>
    %637 = vector.multi_reduction <maximumf>, %636, %cst_177 [0] : vector<8x1xf32> to vector<1xf32>
    %638 = vector.shape_cast %637 : vector<1xf32> to vector<1x1xf32>
    %639 = vector.broadcast %638 : vector<1x1xf32> to vector<8x1xf32>
    %640 = arith.subf %636, %639 : vector<8x1xf32>
    %641 = math.exp %640 : vector<8x1xf32>
    %cst_178 = arith.constant dense<0.000000e+00> : vector<1xf32>
    %642 = vector.multi_reduction <add>, %641, %cst_178 [0] : vector<8x1xf32> to vector<1xf32>
    %643 = vector.shape_cast %642 : vector<1xf32> to vector<1x1xf32>
    %644 = tpu.reciprocal %643 {approx = true} : vector<1x1xf32> -> vector<1x1xf32>
    %645 = vector.broadcast %644 : vector<1x1xf32> to vector<8x1xf32>
    %646 = arith.mulf %641, %645 : vector<8x1xf32>
    %647 = vector.broadcast %646 : vector<8x1xf32> to vector<8x32xf32>
    %648 = arith.mulf %647, %628 : vector<8x32xf32>
    %cst_179 = arith.constant dense<0.000000e+00> : vector<32xf32>
    %649 = vector.multi_reduction <add>, %648, %cst_179 [0] : vector<8x32xf32> to vector<32xf32>
    %650 = vector.shape_cast %649 : vector<32xf32> to vector<1x32xf32>
    %c0_180 = arith.constant 0 : index
    %c0_181 = arith.constant 0 : index
    %651 = vector.load %arg13[%c0_180, %c0_181] : memref<33x3xf32, #tpu.memory_space<vmem>>, vector<32x3xf32>
    %652 = arith.truncf %650 : vector<1x32xf32> to vector<1x32xbf16>
    %653 = arith.truncf %651 : vector<32x3xf32> to vector<32x3xbf16>
    %cst_182 = arith.constant dense<0.000000e+00> : vector<1x3xf32>
    %654 = tpu.matmul %652, %653, %cst_182 {dimension_numbers = #tpu.dot_dimension_numbers<[1], [0], [0], [1], [0, 0, 1, 1], [], []>} : vector<1x32xbf16>, vector<32x3xbf16>, vector<1x3xf32> -> vector<1x3xf32>
    %c32_183 = arith.constant 32 : index
    %c0_184 = arith.constant 0 : index
    %655 = vector.load %arg13[%c32_183, %c0_184] : memref<33x3xf32, #tpu.memory_space<vmem>>, vector<1x3xf32>
    %656 = arith.addf %654, %655 : vector<1x3xf32>
    %657 = tpu.concatenate %628, %595, %346, %350, %354, %358 in 1 : vector<8x32xf32>, vector<8x8xf32>, vector<8x8xf32>, vector<8x8xf32>, vector<8x8xf32>, vector<8x8xf32> -> vector<8x72xf32>
    %658 = tpu.concatenate %650, %656 in 1 : vector<1x32xf32>, vector<1x3xf32> -> vector<1x35xf32>
    %cst_185 = arith.constant 0.000000e+00 : f32
    %659 = vector.broadcast %cst_185 : f32 to vector<7x35xf32>
    %660 = tpu.concatenate %658, %659 in 0 : vector<1x35xf32>, vector<7x35xf32> -> vector<8x35xf32>
    %cst_186 = arith.constant 0.000000e+00 : f32
    %661 = vector.broadcast %cst_186 : f32 to vector<8x21xf32>
    %662 = tpu.concatenate %657, %660, %661 in 1 : vector<8x72xf32>, vector<8x35xf32>, vector<8x21xf32> -> vector<8x128xf32>
    %c0_187 = arith.constant 0 : index
    %c0_188 = arith.constant 0 : index
    %663 = vector.load %arg14[%c0_187, %c0_188] : memref<8x128xf32, #tpu.memory_space<vmem>>, vector<8x128xf32>
    tpu.vector_store %arg14[%c0_187, %c0_188], %662 {strides = array<i32>} : memref<8x128xf32, #tpu.memory_space<vmem>>, vector<8x128xf32>,
    return
  }
}

</mosaic_0001>

<bundles_post_ra>
// kernel: forward.1
= control target key start
LH: loop header
LB: loop body
LE: loop exit
PB: predicated region body
PF: predicated region fallthrough
CT: control target
= control target key end

     0   :  { %19 = vsyncpa [#allocation3], 0  ;;  %s4870_s0 = inlined_call_operand.vmem [shape: f32[16,32], index: 0, kind: input, shape index: {}]   ;;  %s4871_s1 = inlined_call_operand.vmem [shape: f32[16,16], index: 1, kind: input, shape index: {}]   ;;  %s4872_s2 = inlined_call_operand.vmem [shape: f32[16,16], index: 2, kind: input, shape index: {}]   ;;  %s4873_s3 = inlined_call_operand.hbm [shape: f32[16,16], index: 3, kind: input, shape index: {}]   ;;  %s4874_s4 = inlined_call_operand.hbm [shape: f32[16,16], index: 4, kind: input, shape index: {}]   ;;  %s4875_s5 = inlined_call_operand.hbm [shape: f32[128,512], index: 5, kind: input, shape index: {}]   ;;  %s4876_s6 = inlined_call_operand.hbm [shape: f32[128,384], index: 6, kind: input, shape index: {}]   ;;  %s4877_s7 = inlined_call_operand.hbm [shape: f32[8,128], index: 7, kind: input, shape index: {}]   ;;  %s4878_s8 = inlined_call_operand.vmem [shape: f32[32,128], index: 8, kind: input, shape index: {}]   ;;  %s4879_s9 = inlined_call_operand.hbm [shape: f32[128,512], index: 9, kind: input, shape index: {}]   ;;  %s4880_s10 = inlined_call_operand.hbm [shape: f32[128,384], index: 10, kind: input, shape index: {}]   ;;  %s4881_s11 = inlined_call_operand.hbm [shape: f32[8,128], index: 11, kind: input, shape index: {}]   ;;  %s4882_s12 = inlined_call_operand.hbm [shape: f32[32,128], index: 12, kind: input, shape index: {}]   ;;  %s4883_s13 = inlined_call_operand.vmem [shape: f32[33,3], index: 13, kind: input, shape index: {}]   ;;  %s4884_s14 = inlined_call_operand.vmem [shape: f32[8,128], index: 14, kind: output, shape index: {}]  }
   0x1   :  { %20 = vsyncpa [#allocation5], 0 }
   0x2   :  { %21 = vsyncpa [#allocation8], 0 }
   0x3   :  { %22 = vsyncpa [#allocation11], 0 }
   0x4   :  { %23 = vsyncpa [#allocation14], 0  ;;  %s3514_s29 = smov [#allocation4]   ;;  %s3515_s15 = smov [#allocation7]  }
   0x5   :  { %s47_s30 = sshll.u32 %s3514_s29, 4  ;;  %s71_s16 = sshll.u32 %s3515_s15, 4  ;;  %s48_s30 = int_to_ptr.vmem [resolvable:$true] %s47_s30  ;;  %s3618_s16 = int_to_ptr.vmem [resolvable:$true] %s71_s16 }
   0x6   :  { %s3306_s19 = scalar_lea.hbm %s4874_s4, 256 }
   0x7   :  { %p3307_p0 = scmp.ne.s32.totalorder %s4874_s4, %s3306_s19  ;;  %p3310_p1 = scmp.lt.u32.totalorder %s3306_s19, %s4874_s4 }
   0x9   :  { %p3312_p2 = pnand %p3310_p1, %p3307_p0 }
   0xb   :  { %3315 = shalt.err (!%p3312_p2)
}
   0xc   :  { %s3316_s24 = scalar_lea.vmem %s48_s30, 256  ;;  %p3321_p4 = scmp.lt.s32.totalorder %s48_s30, %s48_s30 }
   0xd   :  { %p3317_p3 = scmp.ne.s32.totalorder %s48_s30, %s3316_s24  ;;  %p3322_p5 = scmp.lt.s32.totalorder %s3316_s24, %s3316_s24 }
   0xf   :  { %p3323_p6 = por %p3322_p5, %p3321_p4 }
  0x11   :  { %p3324_p7 = pnand %p3323_p6, %p3317_p3 }
  0x13   :  { %3327 = shalt.err (!%p3324_p7)
}
  0x14   :  { %s4885_s25 = smov 128   ;;  %s3517_s26 = smov 8  }
  0x15   :  { %53 = dma.hbm_to_vmem [thread:$0]  %s4874_s4, 256, %s48_s30, [#allocation5], %s4885_s25, %s4885_s25, %s3517_s26  }
  0x16   :  { %s3328_s17 = scalar_lea.hbm %s4876_s6, 6144 }
  0x17   :  { %p3329_p8 = scmp.ne.s32.totalorder %s4876_s6, %s3328_s17  ;;  %p3332_p9 = scmp.lt.u32.totalorder %s3328_s17, %s4876_s6 }
  0x19   :  { %p3334_p10 = pnand %p3332_p9, %p3329_p8 }
  0x1b   :  { %3337 = shalt.err (!%p3334_p10)
}
  0x1c   :  { %s3338_s22 = scalar_lea.vmem %s3618_s16, 6144  ;;  %p3343_p12 = scmp.lt.s32.totalorder %s3618_s16, %s3618_s16 }
  0x1d   :  { %p3339_p11 = scmp.ne.s32.totalorder %s3618_s16, %s3338_s22  ;;  %p3344_p13 = scmp.lt.s32.totalorder %s3338_s22, %s3338_s22 }
  0x1f   :  { %p3345_p0 = por %p3344_p13, %p3343_p12 }
  0x21   :  { %p3346_p1 = pnand %p3345_p0, %p3339_p11 }
  0x23   :  { %3349 = shalt.err (!%p3346_p1)
}
  0x24   :  { %s3518_s4 = smov 384   ;;  %s3519_s30 = smov 24  }
  0x25   :  { %77 = dma.hbm_to_vmem [thread:$0]  %s4876_s6, 6144, %s3618_s16, [#allocation8], %s3518_s4, %s3518_s4, %s3519_s30  }
  0x26   :  { %s3520_s27 = smov [#allocation10]   ;;  %s3521_s29 = smov [#allocation13]  }
  0x27   :  { %s95_s28 = sshll.u32 %s3520_s27, 4  ;;  %s120_s15 = sshll.u32 %s3521_s29, 4  ;;  %s96_s28 = int_to_ptr.vmem [resolvable:$true] %s95_s28  ;;  %s121_s15 = int_to_ptr.vmem [resolvable:$true] %s120_s15 }
  0x28   :  { %s3350_s19 = scalar_lea.hbm %s4879_s9, 8192 }
  0x29   :  { %p3351_p2 = scmp.ne.s32.totalorder %s4879_s9, %s3350_s19  ;;  %p3354_p3 = scmp.lt.u32.totalorder %s3350_s19, %s4879_s9 }
  0x2b   :  { %p3356_p4 = pnand %p3354_p3, %p3351_p2 }
  0x2d   :  { %3359 = shalt.err (!%p3356_p4)
}
  0x2e   :  { %s3360_s6 = scalar_lea.vmem %s96_s28, 8192  ;;  %p3365_p6 = scmp.lt.s32.totalorder %s96_s28, %s96_s28 }
  0x2f   :  { %p3361_p5 = scmp.ne.s32.totalorder %s96_s28, %s3360_s6  ;;  %p3366_p7 = scmp.lt.s32.totalorder %s3360_s6, %s3360_s6 }
  0x31   :  { %p3367_p8 = por %p3366_p7, %p3365_p6 }
  0x33   :  { %p3368_p9 = pnand %p3367_p8, %p3361_p5 }
  0x35   :  { %3371 = shalt.err (!%p3368_p9)
}
  0x36   :  { %s3522_s16 = smov 512   ;;  %s3523_s23 = smov 32  }
  0x37   :  { %101 = dma.hbm_to_vmem [thread:$0]  %s4879_s9, 8192, %s96_s28, [#allocation11], %s3522_s16, %s3522_s16, %s3523_s23  }
  0x38   :  { %s3372_s17 = scalar_lea.hbm %s4881_s11, 128 }
  0x39   :  { %p3373_p10 = scmp.ne.s32.totalorder %s4881_s11, %s3372_s17  ;;  %p3376_p11 = scmp.lt.u32.totalorder %s3372_s17, %s4881_s11 }
  0x3b   :  { %p3378_p12 = pnand %p3376_p11, %p3373_p10 }
  0x3d   :  { %3381 = shalt.err (!%p3378_p12)
}
  0x3e   :  { %s3382_s22 = scalar_lea.vmem %s121_s15, 128  ;;  %p3387_p0 = scmp.lt.s32.totalorder %s121_s15, %s121_s15 }
  0x3f   :  { %p3383_p13 = scmp.ne.s32.totalorder %s121_s15, %s3382_s22  ;;  %p3388_p1 = scmp.lt.s32.totalorder %s3382_s22, %s3382_s22 }
  0x41   :  { %p3389_p2 = por %p3388_p1, %p3387_p0 }
  0x43   :  { %p3390_p3 = pnand %p3389_p2, %p3383_p13 }
  0x45   :  { %3393 = shalt.err (!%p3390_p3)
}
  0x46   :  { %123 = dma.hbm_to_vmem [thread:$0]  %s4881_s11, 128, %s121_s15, [#allocation14]  }
  0x47   :  { %s3524_s6 = smov [#allocation2]   ;;  %s3525_s27 = smov [#allocation6]  }
  0x48   :  { %s35_s24 = sshll.u32 %s3524_s6, 4  ;;  %s59_s25 = sshll.u32 %s3525_s27, 4  ;;  %s36_s24 = int_to_ptr.vmem [resolvable:$true] %s35_s24  ;;  %s3682_s25 = int_to_ptr.vmem [resolvable:$true] %s59_s25 }
  0x49   :  { %s3394_s18 = scalar_lea.hbm %s4873_s3, 256 }
  0x4a   :  { %p3395_p4 = scmp.ne.s32.totalorder %s4873_s3, %s3394_s18  ;;  %p3398_p5 = scmp.lt.u32.totalorder %s3394_s18, %s4873_s3 }
  0x4c   :  { %p3400_p6 = pnand %p3398_p5, %p3395_p4 }
  0x4e   :  { %3403 = shalt.err (!%p3400_p6)
}
  0x4f   :  { %s3404_s11 = scalar_lea.vmem %s36_s24, 256  ;;  %p3409_p8 = scmp.lt.s32.totalorder %s36_s24, %s36_s24 }
  0x50   :  { %p3405_p7 = scmp.ne.s32.totalorder %s36_s24, %s3404_s11  ;;  %p3410_p9 = scmp.lt.s32.totalorder %s3404_s11, %s3404_s11 }
  0x52   :  { %p3411_p10 = por %p3410_p9, %p3409_p8 }
  0x54   :  { %p3412_p11 = pnand %p3411_p10, %p3405_p7 }
  0x56   :  { %3415 = shalt.err (!%p3412_p11)
}
  0x57   :  { %s4944_s15 = smov 128   ;;  %s3416_s29 = scalar_lea.hbm %s4875_s5, 8192 }
  0x58   :  { %41 = dma.hbm_to_vmem [thread:$0]  %s4873_s3, 256, %s36_s24, [#allocation3], %s4944_s15, %s4944_s15, %s3517_s26  }
  0x59   :  { %p3417_p12 = scmp.ne.s32.totalorder %s4875_s5, %s3416_s29  ;;  %p3420_p13 = scmp.lt.u32.totalorder %s3416_s29, %s4875_s5 }
  0x5b   :  { %p3422_p0 = pnand %p3420_p13, %p3417_p12 }
  0x5d   :  { %3425 = shalt.err (!%p3422_p0)
}
  0x5e   :  { %s3426_s21 = scalar_lea.vmem %s3682_s25, 8192  ;;  %p3431_p2 = scmp.lt.s32.totalorder %s3682_s25, %s3682_s25 }
  0x5f   :  { %p3427_p1 = scmp.ne.s32.totalorder %s3682_s25, %s3426_s21  ;;  %p3432_p3 = scmp.lt.s32.totalorder %s3426_s21, %s3426_s21 }
  0x61   :  { %p3433_p4 = por %p3432_p3, %p3431_p2 }
  0x63   :  { %p3434_p5 = pnand %p3433_p4, %p3427_p1 }
  0x65   :  { %3437 = shalt.err (!%p3434_p5)
}
  0x66   :  { %65 = dma.hbm_to_vmem [thread:$0]  %s4875_s5, 8192, %s3682_s25, [#allocation5], %s3522_s16, %s3522_s16, %s3523_s23  }
  0x67   :  { %s3526_s22 = smov [#allocation9]   ;;  %s3527_s9 = smov [#allocation12]  }
  0x68   :  { %s84_s11 = sshll.u32 %s3526_s22, 4  ;;  %s107_s28 = sshll.u32 %s3527_s9, 4  ;;  %s85_s11 = int_to_ptr.vmem [resolvable:$true] %s84_s11  ;;  %s3719_s28 = int_to_ptr.vmem [resolvable:$true] %s107_s28 }
  0x69   :  { %s3438_s29 = scalar_lea.hbm %s4877_s7, 128 }
  0x6a   :  { %p3439_p6 = scmp.ne.s32.totalorder %s4877_s7, %s3438_s29  ;;  %p3442_p7 = scmp.lt.u32.totalorder %s3438_s29, %s4877_s7 }
  0x6c   :  { %p3444_p8 = pnand %p3442_p7, %p3439_p6 }
  0x6e   :  { %3447 = shalt.err (!%p3444_p8)
}
  0x6f   :  { %s3448_s5 = scalar_lea.vmem %s85_s11, 128  ;;  %p3453_p10 = scmp.lt.s32.totalorder %s85_s11, %s85_s11 }
  0x70   :  { %p3449_p9 = scmp.ne.s32.totalorder %s85_s11, %s3448_s5  ;;  %p3454_p11 = scmp.lt.s32.totalorder %s3448_s5, %s3448_s5 }
  0x72   :  { %p3455_p12 = por %p3454_p11, %p3453_p10 }
  0x74   :  { %p3456_p13 = pnand %p3455_p12, %p3449_p9 }
  0x76   :  { %3459 = shalt.err (!%p3456_p13)
}
  0x77   :  { %87 = dma.hbm_to_vmem [thread:$0]  %s4877_s7, 128, %s85_s11, [#allocation8]  }
  0x78   :  { %s3460_s24 = scalar_lea.hbm %s4880_s10, 6144 }
  0x79   :  { %p3461_p0 = scmp.ne.s32.totalorder %s4880_s10, %s3460_s24  ;;  %p3464_p1 = scmp.lt.u32.totalorder %s3460_s24, %s4880_s10 }
  0x7b   :  { %p3466_p2 = pnand %p3464_p1, %p3461_p0 }
  0x7d   :  { %3469 = shalt.err (!%p3466_p2)
}
  0x7e   :  { %s3470_s29 = scalar_lea.vmem %s3719_s28, 6144  ;;  %p3475_p4 = scmp.lt.s32.totalorder %s3719_s28, %s3719_s28 }
  0x7f   :  { %p3471_p3 = scmp.ne.s32.totalorder %s3719_s28, %s3470_s29  ;;  %p3476_p5 = scmp.lt.s32.totalorder %s3470_s29, %s3470_s29 }
  0x81   :  { %p3477_p6 = por %p3476_p5, %p3475_p4 }
  0x83   :  { %p3478_p7 = pnand %p3477_p6, %p3471_p3 }
  0x85   :  { %3481 = shalt.err (!%p3478_p7)
}
  0x86   :  { %113 = dma.hbm_to_vmem [thread:$0]  %s4880_s10, 6144, %s3719_s28, [#allocation11], %s3518_s4, %s3518_s4, %s3519_s30  }
  0x87   :  { %s3528_s17 = smov [#allocation15]   ;;  %s3482_s5 = scalar_lea.hbm %s4882_s12, 512 }
  0x88   :  { %s129_s18 = sshll.u32 %s3528_s17, 4  ;;  %p3483_p8 = scmp.ne.s32.totalorder %s4882_s12, %s3482_s5  ;;  %s130_s18 = int_to_ptr.vmem [resolvable:$true] %s129_s18 }
  0x89   :  { %p3486_p9 = scmp.lt.u32.totalorder %s3482_s5, %s4882_s12 }
  0x8b   :  { %p3488_p10 = pnand %p3486_p9, %p3483_p8 }
  0x8d   :  { %3491 = shalt.err (!%p3488_p10)
}
  0x8e   :  { %s3492_s24 = scalar_lea.vmem %s130_s18, 512  ;;  %p3497_p12 = scmp.lt.s32.totalorder %s130_s18, %s130_s18 }
  0x8f   :  { %p3493_p11 = scmp.ne.s32.totalorder %s130_s18, %s3492_s24  ;;  %p3498_p13 = scmp.lt.s32.totalorder %s3492_s24, %s3492_s24 }
  0x91   :  { %p3499_p0 = por %p3498_p13, %p3497_p12 }
  0x93   :  { %p3500_p1 = pnand %p3499_p0, %p3493_p11 }
  0x95   :  { %3503 = shalt.err (!%p3500_p1)
}
  0x96   :  { %135 = dma.hbm_to_vmem [thread:$0]  %s4882_s12, 512, %s130_s18, [#allocation14], %s4944_s15, %s4944_s15, %s3517_s26  }
  0x97   :  { %3504 = dma.done.wait [#allocation3], 256  }
  0x98   :  { %3505 = vsyncadd [#allocation3], 4294967040 }
  0x99   :  { %3506 = dma.done.wait [#allocation5], 8448  }
  0x9a   :  { %3507 = vsyncadd [#allocation5], 4294958848 }
  0x9b   :  { %3508 = dma.done.wait [#allocation8], 6272  }
  0x9c   :  { %3509 = vsyncadd [#allocation8], 4294961024 }
  0x9d   :  { %3510 = dma.done.wait [#allocation11], 14336  }
  0x9e   :  { %3511 = vsyncadd [#allocation11], 4294952960 }
  0x9f   :  { %3512 = dma.done.wait [#allocation14], 640  }
  0xa0   :  { %3513 = vsyncadd [#allocation14], 4294966656  ;;  %v4888_v0 = vmov 0   ;;  %v3773_v1 = vld [vmem:[%s4870_s0] sm:$0xff]  ;;  %v3778_v2 = vld [vmem:[%s4870_s0 + $0x8] sm:$0xff]  ;;  %s3530_s22 = smov 64  }
  0xa1   :  { %436 = vmatprep.mubr.bf16.mxu0 %v4888_v0  ;;  %479 = vmatprep.mubr.bf16.mxu1 %v4888_v0  ;;  %v235_v3 = vld [vmem:[#allocation6 + $0x8] sm:$0xff]  ;;  %v237_v5 = vld [vmem:[#allocation6 + $0x18] sm:$0xff]  ;;  %v234_v9 = vld [vmem:[#allocation6] sm:$0xff]  ;;  %s3531_s7 = smov 16   ;;  %vm204_vm0 = vcmask 261120   ;;  %vm207_vm1 = vcmask 523264  }
  0xa2   :  { %192 = vrot.lane.b32.xlu0 %v3773_v1, %s3523_s23  ;;  %198 = vrot.lane.b32.xlu1 %v3773_v1, %s3530_s22  ;;  %v239_v4 = vld [vmem:[#allocation6 + $0x28] sm:$0xff]  ;;  %v241_v6 = vld [vmem:[#allocation6 + $0x38] sm:$0xff]  ;;  %v238_v10 = vld [vmem:[#allocation6 + $0x20] sm:$0xff]  ;;  %vm4924_vm2 = vcmask 785408   ;;  %vm3533_vm4 = vmmov 0   ;;  %vm229_vm12 = vcmask 130048  }
  0xa3   :  { %v3784_v7 = vpack.c.bf16 %v239_v4, %v235_v3  ;;  %v3786_v8 = vpack.c.bf16 %v241_v6, %v237_v5  ;;  %v236_v11 = vld [vmem:[#allocation6 + $0x10] sm:$0xff]  ;;  %v3788_v12 = vpack.c.bf16 %v238_v10, %v234_v9  ;;  %v243_v14 = vld [vmem:[#allocation6 + $0x48] sm:$0xff]  ;;  %v245_v18 = vld [vmem:[#allocation6 + $0x58] sm:$0xff]  ;;  %vm4923_vm13 = vcmask 392192   ;;  %s3538_s17 = smov 112   ;;  %s3539_s18 = smov 80  }
  0xa4   :  { %v240_v13 = vld [vmem:[#allocation6 + $0x30] sm:$0xff]  ;;  %v247_v15 = vld [vmem:[#allocation6 + $0x68] sm:$0xff]  ;;  %v249_v19 = vld [vmem:[#allocation6 + $0x78] sm:$0xff]  ;;  %s3540_s3 = smov 40   ;;  %s3541_s24 = smov 56  }
  0xa5   :  { %404 = vmatprep.subr.bf16.mxu0 %v3784_v7  ;;  %447 = vmatprep.subr.bf16.mxu1 %v3786_v8  ;;  %v3792_v16 = vpack.c.bf16 %v240_v13, %v236_v11  ;;  %v3794_v17 = vpack.c.bf16 %v247_v15, %v243_v14  ;;  %v242_v20 = vld [vmem:[#allocation6 + $0x40] sm:$0xff]  ;;  %v3800_v21 = vpack.c.bf16 %v249_v19, %v245_v18  ;;  %v244_v23 = vld [vmem:[#allocation6 + $0x50] sm:$0xff]  ;;  %v251_v27 = vld [vmem:[#allocation6 + $0x88] sm:$0xff]  ;;  %s3542_s10 = smov 72  }
  0xa6   :  { %194 = vrot.lane.b32.xlu0 %v3778_v2, %s3523_s23  ;;  %200 = vrot.lane.b32.xlu1 %v3778_v2, %s3530_s22  ;;  %v246_v22 = vld [vmem:[#allocation6 + $0x60] sm:$0xff]  ;;  %v248_v24 = vld [vmem:[#allocation6 + $0x70] sm:$0xff]  ;;  %v255_v28 = vld [vmem:[#allocation6 + $0xa8] sm:$0xff] }
  0xa7   :  { %405 = vmatpush1.bf16.msra.mxu0 %v3788_v12  ;;  %448 = vmatpush1.bf16.msra.mxu1 %v3792_v16  ;;  %v3804_v25 = vpack.c.bf16 %v246_v22, %v242_v20  ;;  %v3806_v26 = vpack.c.bf16 %v248_v24, %v244_v23  ;;  %v253_v29 = vld [vmem:[#allocation6 + $0x98] sm:$0xff]  ;;  %v3810_v30 = vpack.c.bf16 %v255_v28, %v251_v27  ;;  %v250_v32 = vld [vmem:[#allocation6 + $0x80] sm:$0xff]  ;;  %v252_v35 = vld [vmem:[#allocation6 + $0x90] sm:$0xff] }
  0xa8   :  { %406 = vmatprep.subr.bf16.mxu0 %v3794_v17  ;;  %449 = vmatprep.subr.bf16.mxu1 %v3800_v21  ;;  %v257_v31 = vld [vmem:[#allocation6 + $0xb8] sm:$0xff]  ;;  %v254_v33 = vld [vmem:[#allocation6 + $0xa0] sm:$0xff]  ;;  %v256_v36 = vld [vmem:[#allocation6 + $0xb0] sm:$0xff] }
  0xa9   :  { %v3812_v34 = vpack.c.bf16 %v257_v31, %v253_v29  ;;  %v259_v37 = vld [vmem:[#allocation6 + $0xc8] sm:$0xff]  ;;  %v261_v39 = vld [vmem:[#allocation6 + $0xd8] sm:$0xff]  ;;  %v3816_v41 = vpack.c.bf16 %v254_v33, %v250_v32  ;;  %v3818_v42 = vpack.c.bf16 %v256_v36, %v252_v35  ;;  %v258_v43 = vld [vmem:[#allocation6 + $0xc0] sm:$0xff] }
  0xaa   :  { %v263_v38 = vld [vmem:[#allocation6 + $0xe8] sm:$0xff]  ;;  %v265_v40 = vld [vmem:[#allocation6 + $0xf8] sm:$0xff]  ;;  %v262_v44 = vld [vmem:[#allocation6 + $0xe0] sm:$0xff] }
  0xab   :  { %407 = vmatpush1.bf16.msra.mxu0 %v3804_v25  ;;  %450 = vmatpush1.bf16.msra.mxu1 %v3806_v26  ;;  %v3822_v45 = vpack.c.bf16 %v263_v38, %v259_v37  ;;  %v3824_v46 = vpack.c.bf16 %v265_v40, %v261_v39  ;;  %v260_v47 = vld [vmem:[#allocation6 + $0xd0] sm:$0xff]  ;;  %v267_v49 = vld [vmem:[#allocation6 + $0x108] sm:$0xff]  ;;  %v269_v51 = vld [vmem:[#allocation6 + $0x118] sm:$0xff]  ;;  %v3828_v53 = vpack.c.bf16 %v262_v44, %v258_v43 }
  0xac   :  { %408 = vmatprep.subr.bf16.mxu0 %v3810_v30  ;;  %451 = vmatprep.subr.bf16.mxu1 %v3812_v34  ;;  %v264_v48 = vld [vmem:[#allocation6 + $0xf0] sm:$0xff]  ;;  %v271_v50 = vld [vmem:[#allocation6 + $0x128] sm:$0xff]  ;;  %v273_v52 = vld [vmem:[#allocation6 + $0x138] sm:$0xff] }
  0xad   :  { %v3830_v54 = vpack.c.bf16 %v264_v48, %v260_v47  ;;  %v266_v55 = vld [vmem:[#allocation6 + $0x100] sm:$0xff]  ;;  %v3834_v57 = vpack.c.bf16 %v271_v50, %v267_v49  ;;  %v3836_v58 = vpack.c.bf16 %v273_v52, %v269_v51  ;;  %v268_v59 = vld [vmem:[#allocation6 + $0x110] sm:$0xff]  ;;  %v275_v61 = vld [vmem:[#allocation6 + $0x148] sm:$0xff] }
  0xae   :  { %v270_v56 = vld [vmem:[#allocation6 + $0x120] sm:$0xff]  ;;  %v272_v60 = vld [vmem:[#allocation6 + $0x130] sm:$0xff]  ;;  %v279_v62 = vld [vmem:[#allocation6 + $0x168] sm:$0xff] }
  0xaf   :  { %409 = vmatpush1.bf16.msra.mxu0 %v3816_v41  ;;  %452 = vmatpush1.bf16.msra.mxu1 %v3818_v42  ;;  %v277_v63 = vld [vmem:[#allocation6 + $0x158] sm:$0xff]  ;;  %v3840_v4 = vpack.c.bf16 %v270_v56, %v266_v55  ;;  %v3842_v5 = vpack.c.bf16 %v272_v60, %v268_v59  ;;  %v274_v6 = vld [vmem:[#allocation6 + $0x140] sm:$0xff]  ;;  %v3846_v10 = vpack.c.bf16 %v279_v62, %v275_v61  ;;  %v276_v13 = vld [vmem:[#allocation6 + $0x150] sm:$0xff]  ;;  %v4901_v62 = vmov 0.0  }
  0xb0   :  { %410 = vmatprep.subr.bf16.mxu0 %v3822_v45  ;;  %453 = vmatprep.subr.bf16.mxu1 %v3824_v46  ;;  %v281_v3 = vld [vmem:[#allocation6 + $0x178] sm:$0xff]  ;;  %v278_v9 = vld [vmem:[#allocation6 + $0x160] sm:$0xff]  ;;  %v280_v14 = vld [vmem:[#allocation6 + $0x170] sm:$0xff] }
  0xb1   :  { %v3848_v11 = vpack.c.bf16 %v281_v3, %v277_v63  ;;  %v283_v15 = vld [vmem:[#allocation6 + $0x188] sm:$0xff]  ;;  %v285_v19 = vld [vmem:[#allocation6 + $0x198] sm:$0xff]  ;;  %v282_v22 = vld [vmem:[#allocation6 + $0x180] sm:$0xff]  ;;  %v3852_v27 = vpack.c.bf16 %v278_v9, %v274_v6  ;;  %v3854_v28 = vpack.c.bf16 %v280_v14, %v276_v13 }
  0xb2   :  { %v287_v18 = vld [vmem:[#allocation6 + $0x1a8] sm:$0xff]  ;;  %v289_v20 = vld [vmem:[#allocation6 + $0x1b8] sm:$0xff]  ;;  %v286_v23 = vld [vmem:[#allocation6 + $0x1a0] sm:$0xff] }
  0xb3   :  { %411 = vmatpush1.bf16.msra.mxu0 %v3828_v53  ;;  %454 = vmatpush1.bf16.msra.mxu1 %v3830_v54  ;;  %v284_v24 = vld [vmem:[#allocation6 + $0x190] sm:$0xff]  ;;  %v3859_v29 = vld [vmem:[%s4872_s2] sm:$0xff]  ;;  %v3864_v31 = vld [vmem:[%s4872_s2 + $0x8] sm:$0xff]  ;;  %v3870_v33 = vpack.c.bf16 %v287_v18, %v283_v15  ;;  %v3872_v35 = vpack.c.bf16 %v289_v20, %v285_v19  ;;  %v3883_v48 = vpack.c.bf16 %v286_v23, %v282_v22  ;;  %v4949_v19 = vmov 0 }
  0xb4   :  { %412 = vmatprep.subr.bf16.mxu0 %v3834_v57  ;;  %455 = vmatprep.subr.bf16.mxu1 %v3836_v58  ;;  %4945 = vst [vmem:[#allocation21_spill] sm:$0xff] %v3859_v29  ;;  %4946 = vst [vmem:[#allocation22_spill] sm:$0xff] %v3864_v31  ;;  %v3866_v32 = vld [vmem:[#allocation2] sm:$0xff]  ;;  %v288_v36 = vld [vmem:[#allocation6 + $0x1b0] sm:$0xff]  ;;  %v3183_v38 = vpack.i.bf16 %v3864_v31, %v3859_v29 }
  0xb5   :  { %4947 = vst [vmem:[#allocation23_spill] sm:$0xff] %v3866_v32  ;;  %v291_v37 = vld [vmem:[#allocation6 + $0x1c8] sm:$0xff]  ;;  %v293_v43 = vld [vmem:[#allocation6 + $0x1d8] sm:$0xff]  ;;  %v3885_v49 = vpack.c.bf16 %v288_v36, %v284_v24  ;;  %v290_v50 = vld [vmem:[#allocation6 + $0x1c0] sm:$0xff] }
  0xb6   :  { %v3876_v39 = vld [vmem:[#allocation2 + $0x8] sm:$0xff]  ;;  %v297_v44 = vld [vmem:[#allocation6 + $0x1f8] sm:$0xff]  ;;  %3184 = vrot.lane.b32.xlu0 %v3183_v38, %s3531_s7  ;;  %v294_v55 = vld [vmem:[#allocation6 + $0x1e0] sm:$0xff] }
  0xb7   :  { %413 = vmatpush1.bf16.msra.mxu0 %v3840_v4  ;;  %456 = vmatpush1.bf16.msra.mxu1 %v3842_v5  ;;  %4948 = vst [vmem:[#allocation24_spill] sm:$0xff] %v3876_v39  ;;  %v295_v40 = vld [vmem:[#allocation6 + $0x1e8] sm:$0xff]  ;;  %v3188_v47 = vpack.i.bf16 %v3876_v39, %v3866_v32  ;;  %v3891_v52 = vpack.c.bf16 %v297_v44, %v293_v43  ;;  %v292_v56 = vld [vmem:[#allocation6 + $0x1d0] sm:$0xff]  ;;  %vm3917_vm3 = vmpackc.low %vm4924_vm2, %vm4924_vm2 }
  0xb8   :  { %414 = vmatprep.subr.bf16.mxu0 %v3846_v10  ;;  %457 = vmatprep.subr.bf16.mxu1 %v3848_v11  ;;  %v3889_v51 = vpack.c.bf16 %v295_v40, %v291_v37  ;;  %v296_v59 = vld [vmem:[#allocation6 + $0x1f0] sm:$0xff]  ;;  %v3896_v60 = vpack.c.bf16 %v294_v55, %v290_v50  ;;  %v4950_v19 = vsel %vm3917_vm3, 4294967295, %v4949_v19  ;;  %v302_v20 = vld [vmem:[#allocation7 + $0x20] sm:$0xff]  ;;  %v301_v24 = vld [vmem:[#allocation7 + $0x18] sm:$0xff] }
  0xb9   :  { %3189 = vrot.lane.b32.xlu1 %v3188_v47, %s3523_s23  ;;  %v3898_v61 = vpack.c.bf16 %v296_v59, %v292_v56  ;;  %4951 = vst [vmem:[#allocation25_spill] sm:$0xff] %v4950_v19  ;;  %v298_v22 = vld [vmem:[#allocation7] sm:$0xff]  ;;  %v305_v37 = vld [vmem:[#allocation7 + $0x38] sm:$0xff]  ;;  %v308_v38 = vld [vmem:[#allocation7 + $0x50] sm:$0xff] }
  0xba   :  { %v3932_v36 = vpack.c.bf16 %v301_v24, %v298_v22  ;;  %v304_v40 = vld [vmem:[#allocation7 + $0x30] sm:$0xff]  ;;  %v3935_v43 = vpack.c.bf16 %v308_v38, %v305_v37  ;;  %v307_v44 = vld [vmem:[#allocation7 + $0x48] sm:$0xff]  ;;  %v314_v55 = vld [vmem:[#allocation7 + $0x80] sm:$0xff] }
  0xbb   :  { %415 = vmatpush1.bf16.msra.mxu0 %v3852_v27  ;;  %458 = vmatpush1.bf16.msra.mxu1 %v3854_v28  ;;  %v3938_v47 = vpack.c.bf16 %v307_v44, %v304_v40  ;;  %v311_v50 = vld [vmem:[#allocation7 + $0x68] sm:$0xff]  ;;  %v310_v59 = vld [vmem:[#allocation7 + $0x60] sm:$0xff]  ;;  %v325_v38 = vld [vmem:[#allocation7 + $0xd8] sm:$0xff] }
  0xbc   :  { %416 = vmatprep.subr.bf16.mxu0 %v3870_v33  ;;  %459 = vmatprep.subr.bf16.mxu1 %v3872_v35  ;;  %v3941_v56 = vpack.c.bf16 %v314_v55, %v311_v50  ;;  %v326_v22 = vld [vmem:[#allocation7 + $0xe0] sm:$0xff]  ;;  %v329_v44 = vld [vmem:[#allocation7 + $0xf8] sm:$0xff]  ;;  %v332_v50 = vld [vmem:[#allocation7 + $0x110] sm:$0xff] }
  0xbd   :  { %v322_v37 = vld [vmem:[#allocation7 + $0xc0] sm:$0xff]  ;;  %v3959_v55 = vpack.c.bf16 %v332_v50, %v329_v44 }
  0xbe   :  { %4952 = vst [vmem:[#allocation26_spill] sm:$0xff] %v3941_v56  ;;  %v3956_v40 = vpack.c.bf16 %v325_v38, %v322_v37  ;;  %v4887_v38 = vlaneseq  ;;  %v3980_v50 = vld [vmem:[#allocation9] ss:$0 sm:$0xff] }
  0xbf   :  { %417 = vmatpush1.bf16.msra.mxu0 %v3883_v48  ;;  %460 = vmatpush1.bf16.msra.mxu1 %v3885_v49  ;;  %4958 = vst [vmem:[#allocation32_spill] sm:$0xff] %v3959_v55  ;;  %4963 = vst [vmem:[#allocation37_spill] sm:$0xff] %v3980_v50 }
  0xc0   :  { %418 = vmatprep.subr.bf16.mxu0 %v3889_v51  ;;  %461 = vmatprep.subr.bf16.mxu1 %v3891_v52  ;;  %4957 = vst [vmem:[#allocation31_spill] sm:$0xff] %v3956_v40  ;;  %v3973_v44 = vand.u32 127, %v4887_v38 }
  0xc2   :  { %4962 = vst [vmem:[#allocation36_spill] sm:$0xff] %v3973_v44  ;;  %vm182_vm5 = vcmp.ge.s32.totalorder %v3973_v44, 32  ;;  %vm183_vm6 = vcmp.lt.s32.totalorder %v3973_v44, 64  ;;  %vm186_vm7 = vcmp.ge.s32.totalorder %v3973_v44, 64  ;;  %vm187_vm8 = vcmp.lt.s32.totalorder %v3973_v44, 96 }
  0xc3   :  { %419 = vmatpush1.bf16.msra.mxu0 %v3896_v60  ;;  %462 = vmatpush1.bf16.msra.mxu1 %v3898_v61  ;;  %vm179_vm9 = vcmp.lt.s32.totalorder %v3973_v44, 32  ;;  %vm184_vm10 = vmand %vm182_vm5, %vm183_vm6 }
  0xc4   :  { %2960 = vmatprep.subr.bf16.mxu0 %v4901_v62  ;;  %vm188_vm11 = vmand %vm186_vm7, %vm187_vm8 }
  0xc5   :  { %v3996_v19 = vsel %vm188_vm11, 1.0, %v4901_v62 }
  0xc6   :  { %4966 = vst [vmem:[#allocation40_spill] sm:$0xff] %v3996_v19 }
 0x114   :  { %v193_v63 = vpop.permute.xlu0 %192  ;;  %v199_v3 = vpop.permute.xlu1 %198 }
 0x115   :  { %v205_v6 = vsel %vm204_vm0, %v3773_v1, %v193_v63  ;;  %v313_v63 = vld [vmem:[#allocation7 + $0x78] sm:$0xff] }
 0x116   :  { %v3910_v15 = vsel %vm207_vm1, %v205_v6, %v199_v3  ;;  %v3944_v3 = vpack.c.bf16 %v313_v63, %v310_v59  ;;  %v317_v6 = vld [vmem:[#allocation7 + $0x98] sm:$0xff]  ;;  %v328_v59 = vld [vmem:[#allocation7 + $0xf0] sm:$0xff]  ;;  %v331_v63 = vld [vmem:[#allocation7 + $0x108] sm:$0xff] }
 0x118   :  { %v195_v9 = vpop.permute.xlu0 %194  ;;  %v201_v13 = vpop.permute.xlu1 %200  ;;  %4953 = vst [vmem:[#allocation27_spill] sm:$0xff] %v3944_v3 }
 0x119   :  { %v206_v14 = vsel %vm204_vm0, %v3778_v2, %v195_v9  ;;  %v299_v2 = vld [vmem:[#allocation7 + $0x8] sm:$0xff]  ;;  %v320_v9 = vld [vmem:[#allocation7 + $0xb0] sm:$0xff] }
 0x11a   :  { %v3913_v18 = vsel %vm207_vm1, %v206_v14, %v201_v13  ;;  %v3930_v23 = vpack.c.bf16 %v302_v20, %v299_v2  ;;  %v3947_v13 = vpack.c.bf16 %v320_v9, %v317_v6  ;;  %v316_v14 = vld [vmem:[#allocation7 + $0x90] sm:$0xff]  ;;  %v323_v20 = vld [vmem:[#allocation7 + $0xc8] sm:$0xff]  ;;  %v3962_v6 = vpack.c.bf16 %v331_v63, %v328_v59 }
 0x11b   :  { %v2829_v1 = vpack.c.bf16 %v3913_v18, %v3910_v15  ;;  %v3953_v24 = vpack.c.bf16 %v326_v22, %v323_v20  ;;  %v335_v9 = vld [vmem:[#allocation7 + $0x128] sm:$0xff]  ;;  %v334_v20 = vld [vmem:[#allocation7 + $0x120] sm:$0xff]  ;;  %v337_v22 = vld [vmem:[#allocation7 + $0x138] sm:$0xff] }
 0x11c   :  { %572 = vmatprep.subr.bf16.mxu1 %v3930_v23  ;;  %4954 = vst [vmem:[#allocation28_spill] sm:$0xff] %v3947_v13  ;;  %4959 = vst [vmem:[#allocation33_spill] sm:$0xff] %v3962_v6  ;;  %v3968_v37 = vpack.c.bf16 %v337_v22, %v334_v20  ;;  %v3988_v20 = vsel %vm184_vm10, 1.0, %v4901_v62 }
 0x11d   :  { %2830 = vmatmul.mubr.msk.bf16.vlgmr.msra.gmra.mrb[0].mxu0 %vm3917_vm3, %v2829_v1  ;;  %2833 = vmatmul.mubr.msk.bf16.vlgmr.msra.gmra.mrb[0].mxu1 %vm3917_vm3, %v2829_v1  ;;  %v319_v1 = vld [vmem:[#allocation7 + $0xa8] sm:$0xff]  ;;  %4956 = vst [vmem:[#allocation30_spill] sm:$0xff] %v3953_v24  ;;  %4965 = vst [vmem:[#allocation39_spill] sm:$0xff] %v3988_v20 }
 0x11e   :  { %604 = vmatprep.mubr.bf16.mxu1 %v4888_v0  ;;  %2966 = vmatprep.mubr.msk.bf16.mxu0 %vm3533_vm4, %v4901_v62  ;;  %v3950_v2 = vpack.c.bf16 %v319_v1, %v316_v14  ;;  %v338_v14 = vld [vmem:[#allocation7 + $0x140] sm:$0xff]  ;;  %4961 = vst [vmem:[#allocation35_spill] sm:$0xff] %v3968_v37 }
 0x11f   :  { %573 = vmatpush1.bf16.msra.mxu1 %v3932_v36  ;;  %v3965_v1 = vpack.c.bf16 %v338_v14, %v335_v9  ;;  %v3985_v14 = vsel %vm179_vm9, 1.0, %v4901_v62 }
 0x120   :  { %574 = vmatprep.subr.bf16.mxu1 %v3935_v43  ;;  %4955 = vst [vmem:[#allocation29_spill] sm:$0xff] %v3950_v2  ;;  %4964 = vst [vmem:[#allocation38_spill] sm:$0xff] %v3985_v14 }
 0x121   :  { %4960 = vst [vmem:[#allocation34_spill] sm:$0xff] %v3965_v1 }
 0x123   :  { %575 = vmatpush1.bf16.msra.mxu1 %v3938_v47 }
 0x124   :  { %576 = vmatprep.subr.bf16.mxu1 %v3941_v56 }
 0x127   :  { %577 = vmatpush1.bf16.msra.mxu1 %v3944_v3 }
 0x128   :  { %578 = vmatprep.subr.bf16.mxu1 %v3947_v13  ;;  %v3185_v59 = vpop.permute.xlu0 %3184 }
 0x12b   :  { %579 = vmatpush1.bf16.msra.mxu1 %v3950_v2  ;;  %v3190_v2 = vpop.permute.xlu1 %3189 }
 0x12c   :  { %580 = vmatprep.subr.bf16.mxu1 %v3953_v24  ;;  %v3186_v24 = vunpack.i.l.bf16 %v3185_v59 }
 0x12f   :  { %581 = vmatpush1.bf16.msra.mxu1 %v3956_v40  ;;  %v3187_v40 = vunpack.i.h.bf16 %v3185_v59 }
 0x130   :  { %582 = vmatprep.subr.bf16.mxu1 %v3959_v55 }
 0x133   :  { %583 = vmatpush1.bf16.msra.mxu1 %v3962_v6 }
 0x134   :  { %584 = vmatprep.subr.bf16.mxu1 %v3965_v1 }
 0x137   :  { %585 = vmatpush1.bf16.msra.mxu1 %v3968_v37 }
 0x1f0   :  { %v438_v63 = vpop.f32.mrb[0].mxu0  ;;  %v3982_v9 = vpop.f32.mrb[0].mxu1 }
 0x1f1   :  { %v490_v22 = vadd.f32 %v3980_v50, %v438_v63  ;;  %v3991_v38 = vpop.f32.mrb[1].mxu0  ;;  %v3993_v0 = vpop.f32.mrb[1].mxu1 }
 0x1f2   :  { %v442_v39 = vpop.f32.mrb[2].mxu0  ;;  %v3998_v32 = vpop.f32.mrb[2].mxu1 }
 0x1f3   :  { %v491_v31 = vadd.f32 %v3980_v50, %v442_v39  ;;  %v4001_v29 = vpop.f32.mrb[3].mxu0  ;;  %v4003_v44 = vpop.f32.mrb[3].mxu1  ;;  %v492_v37 = vmul.f32 %v490_v22, %v3985_v14  ;;  %v494_v63 = vmul.f32 %v490_v22, %v3988_v20  ;;  %v496_v1 = vmul.f32 %v490_v22, %v3996_v19  ;;  %v4014_v39 = vld [vmem:[%s4871_s1] sm:$0xff]  ;;  %v4019_v50 = vld [vmem:[%s4871_s1 + $0x8] sm:$0xff] }
 0x1f4   :  { %4967 = vst [vmem:[#allocation41_spill] sm:$0xff] %v4014_v39  ;;  %4968 = vst [vmem:[#allocation42_spill] sm:$0xff] %v4019_v50  ;;  %v231_v59 = vsel %vm229_vm12, %v4019_v50, %v3187_v40  ;;  %v230_v3 = vsel %vm229_vm12, %v4014_v39, %v3186_v24  ;;  %v345_v50 = vld [vmem:[#allocation7 + $0x178] sm:$0xff] }
 0x1f5   :  { %v493_v6 = vmul.f32 %v491_v31, %v3985_v14  ;;  %v495_v62 = vmul.f32 %v491_v31, %v3988_v20  ;;  %v497_v55 = vmul.f32 %v491_v31, %v3996_v19  ;;  %v3192_v20 = vunpack.i.h.bf16 %v3190_v2 }
 0x1f6   :  { %v3191_v31 = vunpack.i.l.bf16 %v3190_v2  ;;  %v4969_v19 = vmov 0.0  }
 0x1f7   :  { %v499_v22 = vpack.c.bf16 %v493_v6, %v492_v37  ;;  %v500_v13 = vpack.c.bf16 %v495_v62, %v494_v63  ;;  %v501_v14 = vpack.c.bf16 %v497_v55, %v496_v1  ;;  %v4030_v6 = vsel %vm204_vm0, %v231_v59, %v3192_v20  ;;  %v300_v62 = vld [vmem:[#allocation7 + $0x10] sm:$0xff]  ;;  %v303_v55 = vld [vmem:[#allocation7 + $0x28] sm:$0xff]  ;;  %v318_v20 = vld [vmem:[#allocation7 + $0xa0] sm:$0xff] }
 0x1f8   :  { %v4027_v56 = vsel %vm204_vm0, %v230_v3, %v3191_v31  ;;  %4971 = vst [vmem:[#allocation44_spill] sm:$0xff] %v4030_v6  ;;  %v4037_v40 = vpack.c.bf16 %v303_v55, %v300_v62  ;;  %v309_v3 = vld [vmem:[#allocation7 + $0x58] sm:$0xff]  ;;  %v312_v1 = vld [vmem:[#allocation7 + $0x70] sm:$0xff]  ;;  %v315_v37 = vld [vmem:[#allocation7 + $0x88] sm:$0xff] }
 0x1f9   :  { %2961 = vmatpush3.bf16.msra.mxu0 %v499_v22  ;;  %4970 = vst [vmem:[#allocation43_spill] sm:$0xff] %v4027_v56  ;;  %v4035_v2 = vpack.c.bf16 %v4030_v6, %v4027_v56  ;;  %v321_v63 = vld [vmem:[#allocation7 + $0xb8] sm:$0xff]  ;;  %v324_v31 = vld [vmem:[#allocation7 + $0xd0] sm:$0xff]  ;;  %v327_v59 = vld [vmem:[#allocation7 + $0xe8] sm:$0xff] }
 0x1fa   :  { %2962 = vmatprep.subr.bf16.mxu0 %v4969_v19  ;;  %v4053_v22 = vpack.c.bf16 %v321_v63, %v318_v20  ;;  %v4057_v62 = vpack.c.bf16 %v327_v59, %v324_v31  ;;  %v330_v55 = vld [vmem:[#allocation7 + $0x100] sm:$0xff]  ;;  %v341_v63 = vld [vmem:[#allocation7 + $0x158] sm:$0xff]  ;;  %v344_v31 = vld [vmem:[#allocation7 + $0x170] sm:$0xff] }
 0x1fb   :  { %v4070_v59 = vpack.c.bf16 %v344_v31, %v341_v63  ;;  %v342_v56 = vld [vmem:[#allocation7 + $0x160] sm:$0xff] }
 0x1fd   :  { %2963 = vmatpush3.bf16.msra.mxu0 %v500_v13  ;;  %v306_v13 = vld [vmem:[#allocation7 + $0x40] sm:$0xff]  ;;  %586 = vmatprep.subr.bf16.mxu1 %v4070_v59 }
 0x1fe   :  { %2964 = vmatprep.subr.bf16.mxu0 %v4969_v19  ;;  %v4043_v24 = vpack.c.bf16 %v309_v3, %v306_v13  ;;  %v333_v13 = vld [vmem:[#allocation7 + $0x118] sm:$0xff] }
 0x1ff   :  { %v4061_v3 = vpack.c.bf16 %v333_v13, %v330_v55  ;;  %v340_v55 = vld [vmem:[#allocation7 + $0x150] sm:$0xff]  ;;  %v343_v13 = vld [vmem:[#allocation7 + $0x168] sm:$0xff] }
 0x200   :  { %v4072_v6 = vpack.c.bf16 %v343_v13, %v340_v55 }
 0x201   :  { %2965 = vmatpush3.bf16.msra.mxu0 %v501_v14  ;;  %v4049_v14 = vpack.c.bf16 %v315_v37, %v312_v1  ;;  %v336_v1 = vld [vmem:[#allocation7 + $0x130] sm:$0xff]  ;;  %v339_v37 = vld [vmem:[#allocation7 + $0x148] sm:$0xff] }
 0x202   :  { %2970 = vmatprep.subr.bf16.mxu0 %v4969_v19  ;;  %v4065_v20 = vpack.c.bf16 %v339_v37, %v336_v1  ;;  %v4075_v1 = vpack.c.bf16 %v345_v50, %v342_v56  ;;  %587 = vmatpush1.bf16.msra.mxu1 %v4072_v6  ;;  %v4973_v56 = vmov 0  }
 0x203   :  { %707 = vmatprep.subr.bf16.mxu1 %v3784_v7  ;;  %v4115_v7 = vld [vmem:[#allocation9 + $0x1] ss:$0 sm:$0xff] }
 0x204   :  { %2967 = vmatmul.mubr.msk.bf16.vlgmr.msra.gmra.mrb[4].mxu0 %vm4923_vm13, %v4035_v2  ;;  %4972 = vst [vmem:[#allocation45_spill] sm:$0xff] %v4065_v20 }
 0x205   :  { %2971 = vmatpush3.bf16.msra.mxu0 %v4037_v40  ;;  %2986 = vmatprep.mubr.msk.bf16.mxu0 %vm3533_vm4, %v4969_v19 }
 0x206   :  { %2972 = vmatprep.subr.bf16.mxu0 %v4969_v19 }
 0x209   :  { %2973 = vmatpush3.bf16.msra.mxu0 %v4043_v24 }
 0x20a   :  { %2974 = vmatprep.subr.bf16.mxu0 %v4969_v19 }
 0x20d   :  { %2975 = vmatpush3.bf16.msra.mxu0 %v4049_v14 }
 0x20e   :  { %2976 = vmatprep.subr.bf16.mxu0 %v4969_v19 }
 0x211   :  { %2977 = vmatpush3.bf16.msra.mxu0 %v4053_v22 }
 0x212   :  { %2978 = vmatprep.subr.bf16.mxu0 %v4969_v19 }
 0x215   :  { %2979 = vmatpush3.bf16.msra.mxu0 %v4057_v62 }
 0x216   :  { %2980 = vmatprep.subr.bf16.mxu0 %v4969_v19 }
 0x219   :  { %2981 = vmatpush3.bf16.msra.mxu0 %v4061_v3 }
 0x21a   :  { %2982 = vmatprep.subr.bf16.mxu0 %v4969_v19 }
 0x21d   :  { %2983 = vmatpush3.bf16.msra.mxu0 %v4065_v20 }
 0x21e   :  { %2984 = vmatprep.subr.bf16.mxu0 %v4969_v19 }
 0x221   :  { %2985 = vmatpush3.bf16.msra.mxu0 %v4075_v1 }
 0x222   :  { %750 = vmatprep.subr.bf16.mxu0 %v3786_v8 }
 0x2d7   :  { %v540_v37 = vpop.f32.mrb[4].mxu0 }
 0x2d8   :  { %v2968_v63 = vpop.f32.mrb[5].mxu0 }
 0x2d9   :  { %v543_v31 = vpop.f32.mrb[6].mxu0 }
 0x2da   :  { %v547_v39 = vpack.c.bf16 %v543_v31, %v540_v37  ;;  %v2969_v20 = vpop.f32.mrb[7].mxu0  ;;  %v212_v37 = vsel %vm4924_vm2, %v3913_v18, 0.0 }
 0x2dc   :  { %605 = vmatmul.mubr.bf16.vlgmr.msra.gmra.mrb[4].mxu1 %v547_v39  ;;  %2987 = vmatmul.mubr.bf16.vlgmr.msra.gmra.mrb[8].mxu0 %v547_v39 }
 0x2dd   :  { %708 = vmatpush1.bf16.msra.mxu1 %v3788_v12  ;;  %751 = vmatpush1.bf16.msra.mxu0 %v3792_v16 }
 0x2de   :  { %709 = vmatprep.subr.bf16.mxu1 %v3794_v17  ;;  %752 = vmatprep.subr.bf16.mxu0 %v3800_v21  ;;  %v4118_v17 = vld [vmem:[#allocation9 + $0x2] ss:$0 sm:$0xff] }
 0x2df   :  { %739 = vmatprep.mubr.bf16.mxu1 %v4973_v56  ;;  %782 = vmatprep.mubr.bf16.mxu0 %v4973_v56 }
 0x2e1   :  { %710 = vmatpush1.bf16.msra.mxu1 %v3804_v25  ;;  %753 = vmatpush1.bf16.msra.mxu0 %v3806_v26 }
 0x2e2   :  { %711 = vmatprep.subr.bf16.mxu1 %v3810_v30  ;;  %754 = vmatprep.subr.bf16.mxu0 %v3812_v34 }
 0x2e5   :  { %712 = vmatpush1.bf16.msra.mxu1 %v3816_v41  ;;  %755 = vmatpush1.bf16.msra.mxu0 %v3818_v42 }
 0x2e6   :  { %713 = vmatprep.subr.bf16.mxu1 %v3822_v45  ;;  %756 = vmatprep.subr.bf16.mxu0 %v3824_v46 }
 0x2e9   :  { %714 = vmatpush1.bf16.msra.mxu1 %v3828_v53  ;;  %757 = vmatpush1.bf16.msra.mxu0 %v3830_v54 }
 0x2ea   :  { %715 = vmatprep.subr.bf16.mxu1 %v3834_v57  ;;  %758 = vmatprep.subr.bf16.mxu0 %v3836_v58 }
 0x2ed   :  { %716 = vmatpush1.bf16.msra.mxu1 %v3840_v4  ;;  %759 = vmatpush1.bf16.msra.mxu0 %v3842_v5 }
 0x2ee   :  { %717 = vmatprep.subr.bf16.mxu1 %v3846_v10  ;;  %760 = vmatprep.subr.bf16.mxu0 %v3848_v11 }
 0x2f1   :  { %718 = vmatpush1.bf16.msra.mxu1 %v3852_v27  ;;  %761 = vmatpush1.bf16.msra.mxu0 %v3854_v28 }
 0x2f2   :  { %719 = vmatprep.subr.bf16.mxu1 %v3870_v33  ;;  %762 = vmatprep.subr.bf16.mxu0 %v3872_v35 }
 0x2f5   :  { %720 = vmatpush1.bf16.msra.mxu1 %v3883_v48  ;;  %763 = vmatpush1.bf16.msra.mxu0 %v3885_v49 }
 0x2f6   :  { %721 = vmatprep.subr.bf16.mxu1 %v3889_v51  ;;  %764 = vmatprep.subr.bf16.mxu0 %v3891_v52  ;;  %v4127_v51 = vld [vmem:[#allocation9 + $0x4] ss:$0 sm:$0xff]  ;;  %v4129_v52 = vld [vmem:[#allocation9 + $0x3] ss:$0 sm:$0xff] }
 0x2f7   :  { %v691_v50 = vadd.f32 %v4127_v51, %v4003_v44 }
 0x2f9   :  { %722 = vmatpush1.bf16.msra.mxu1 %v3896_v60  ;;  %765 = vmatpush1.bf16.msra.mxu0 %v3898_v61  ;;  %v690_v60 = vadd.f32 %v4127_v51, %v3993_v0 }
 0x2fa   :  { %2990 = vmatprep.subr.bf16.mxu1 %v4969_v19  ;;  %846 = vmatprep.subr.bf16.mxu0 %v3930_v23 }
 0x3af   :  { %v606_v8 = vpop.f32.mrb[4].mxu1  ;;  %v649_v12 = vpop.f32.mrb[8].mxu0 }
 0x3b0   :  { %v656_v16 = vadd.f32 %v606_v8, %v3991_v38  ;;  %v608_v21 = vpop.f32.mrb[5].mxu1  ;;  %v2988_v25 = vpop.f32.mrb[9].mxu0  ;;  %v211_v38 = vsel %vm4924_vm2, %v3910_v15, 0.0 }
 0x3b1   :  { %v672_v26 = vadd.f32 %v608_v21, %v3982_v9  ;;  %v610_v30 = vpop.f32.mrb[6].mxu1  ;;  %v652_v34 = vpop.f32.mrb[10].mxu0  ;;  %v688_v9 = vadd.f32 %v4129_v52, %v649_v12 }
 0x3b2   :  { %v658_v41 = vadd.f32 %v4115_v7, %v656_v16  ;;  %v657_v42 = vadd.f32 %v610_v30, %v4001_v29  ;;  %v612_v45 = vpop.f32.mrb[7].mxu1  ;;  %v2989_v46 = vpop.f32.mrb[11].mxu0  ;;  %v689_v0 = vadd.f32 %v4129_v52, %v652_v34  ;;  %v4974_v34 = vld [vmem:[#allocation26_spill] sm:$0xff] }
 0x3b3   :  { %v674_v53 = vadd.f32 %v4118_v17, %v672_v26  ;;  %v673_v54 = vadd.f32 %v612_v45, %v3998_v32  ;;  %v4976_v45 = vld [vmem:[#allocation28_spill] sm:$0xff]  ;;  %v4977_v46 = vld [vmem:[#allocation29_spill] sm:$0xff] }
 0x3b4   :  { %v2835_v57 = vmul.f32 -1.442695, %v658_v41  ;;  %v659_v58 = vadd.f32 %v4115_v7, %v657_v42  ;;  %v4975_v42 = vld [vmem:[#allocation27_spill] sm:$0xff] }
 0x3b5   :  { %v2837_v4 = vmul.f32 -1.442695, %v674_v53  ;;  %v675_v5 = vadd.f32 %v4118_v17, %v673_v54  ;;  %v4978_v53 = vld [vmem:[#allocation30_spill] sm:$0xff]  ;;  %v4979_v54 = vld [vmem:[#allocation31_spill] sm:$0xff] }
 0x3b6   :  { %3206 = vpow2.f32 %v2835_v57  ;;  %v2836_v10 = vmul.f32 -1.442695, %v659_v58  ;;  %v4980_v57 = vld [vmem:[#allocation32_spill] sm:$0xff]  ;;  %v4983_v58 = vld [vmem:[#allocation35_spill] sm:$0xff] }
 0x3b7   :  { %3208 = vpow2.f32 %v2837_v4  ;;  %v2838_v11 = vmul.f32 -1.442695, %v675_v5  ;;  %v4984_v5 = vld [vmem:[#allocation37_spill] sm:$0xff] }
 0x3b8   :  { %3210 = vpow2.f32 %v2836_v10 }
 0x3b9   :  { %3212 = vpow2.f32 %v2838_v11 }
 0x3c0   :  { %v3207_v27 = vpop.eup %3206 }
 0x3c1   :  { %v3209_v28 = vpop.eup %3208  ;;  %v666_v29 = vadd.f32 1.0, %v3207_v27 }
 0x3c2   :  { %v3211_v33 = vpop.eup %3210  ;;  %v682_v35 = vadd.f32 1.0, %v3209_v28 }
 0x3c3   :  { %v3213_v48 = vpop.eup %3212  ;;  %3214 = vrcp.f32 %v666_v29  ;;  %v667_v32 = vadd.f32 1.0, %v3211_v33 }
 0x3c4   :  { %3216 = vrcp.f32 %v682_v35  ;;  %v683_v49 = vadd.f32 1.0, %v3213_v48 }
 0x3c5   :  { %3218 = vrcp.f32 %v667_v32  ;;  %v4986_v32 = vld [vmem:[#allocation39_spill] sm:$0xff] }
 0x3c6   :  { %3220 = vrcp.f32 %v683_v49 }
 0x3cd   :  { %v3215_v61 = vpop.eup %3214 }
 0x3ce   :  { %v3217_v23 = vpop.eup %3216  ;;  %v692_v39 = vmul.f32 %v3215_v61, %v690_v60  ;;  %v4987_v60 = vld [vmem:[#allocation40_spill] sm:$0xff] }
 0x3cf   :  { %v3219_v20 = vpop.eup %3218  ;;  %v702_v55 = vmul.f32 %v3217_v23, %v211_v38  ;;  %v698_v15 = vsub.f32 1.0, %v3217_v23 }
 0x3d0   :  { %v3221_v13 = vpop.eup %3220  ;;  %v694_v63 = vadd.f32 %v692_v39, %v688_v9  ;;  %v693_v31 = vmul.f32 %v3219_v20, %v691_v50 }
 0x3d1   :  { %v703_v8 = vmul.f32 %v3221_v13, %v212_v37  ;;  %v699_v44 = vsub.f32 1.0, %v3221_v13  ;;  %v4991_v13 = vlaneseq }
 0x3d2   :  { %3222 = vtanh.f32 %v694_v63  ;;  %v695_v16 = vadd.f32 %v693_v31, %v689_v0 }
 0x3d3   :  { %v4214_v37 = vshrl.u32 %v4991_v13, 7 }
 0x3d4   :  { %3224 = vtanh.f32 %v695_v16  ;;  %v4993_v16 = vmov 0 }
 0x3d5   :  { %v4217_v0 = vadd.s32 8, %v4214_v37 }
 0x3dc   :  { %v3223_v21 = vpop.eup %3222 }
 0x3dd   :  { %v700_v25 = vmul.f32 %v3223_v21, %v698_v15 }
 0x3de   :  { %v3225_v12 = vpop.eup %3224 }
 0x3df   :  { %v701_v26 = vmul.f32 %v3225_v12, %v699_v44  ;;  %v4141_v30 = vadd.f32 %v702_v55, %v700_v25 }
 0x3e1   :  { %v4143_v41 = vadd.f32 %v703_v8, %v701_v26  ;;  %v4992_v8 = vld [vmem:[#allocation36_spill] sm:$0xff] }
 0x3e2   :  { %vm4221_vm14 = vcmp.eq.s32.totalorder %v4214_v37, %v4992_v8  ;;  %vm4227_vm15 = vcmp.eq.s32.totalorder %v4217_v0, %v4992_v8 }
 0x3e3   :  { %v706_v18 = vpack.c.bf16 %v4143_v41, %v4141_v30  ;;  %v4994_v16 = vsel %vm4221_vm14, 4294967295, %v4993_v16 }
 0x3e4   :  { %4995 = vst [vmem:[#allocation26_spill] sm:$0xff] %v4994_v16  ;;  %v1856_v16 = vld [vmem:[#allocation12 + $0xb0] sm:$0xff] }
 0x3e5   :  { %740 = vmatmul.mubr.bf16.vlgmr.msra.gmra.mrb[8].mxu1 %v706_v18  ;;  %783 = vmatmul.mubr.bf16.vlgmr.msra.gmra.mrb[12].mxu0 %v706_v18 }
 0x3e6   :  { %2996 = vmatprep.mubr.msk.bf16.mxu1 %vm3533_vm4, %v4969_v19  ;;  %847 = vmatpush1.bf16.msra.mxu0 %v3932_v36  ;;  %v4981_v36 = vld [vmem:[#allocation33_spill] sm:$0xff] }
 0x3e7   :  { %848 = vmatprep.subr.bf16.mxu0 %v3935_v43  ;;  %878 = vmatprep.mubr.bf16.mxu0 %v4973_v56  ;;  %v4982_v43 = vld [vmem:[#allocation34_spill] sm:$0xff] }
 0x3ea   :  { %849 = vmatpush1.bf16.msra.mxu0 %v3938_v47 }
 0x3eb   :  { %850 = vmatprep.subr.bf16.mxu0 %v4974_v34 }
 0x3ee   :  { %851 = vmatpush1.bf16.msra.mxu0 %v4975_v42 }
 0x3ef   :  { %852 = vmatprep.subr.bf16.mxu0 %v4976_v45 }
 0x3f2   :  { %853 = vmatpush1.bf16.msra.mxu0 %v4977_v46 }
 0x3f3   :  { %854 = vmatprep.subr.bf16.mxu0 %v4978_v53  ;;  %v4998_v53 = vld [vmem:[#allocation21_spill] sm:$0xff] }
 0x3f6   :  { %855 = vmatpush1.bf16.msra.mxu0 %v4979_v54  ;;  %v1016_v54 = vsel %vm229_vm12, %v4998_v53, 0.0 }
 0x3f7   :  { %856 = vmatprep.subr.bf16.mxu0 %v4980_v57  ;;  %v4999_v57 = vld [vmem:[#allocation22_spill] sm:$0xff] }
 0x3fa   :  { %857 = vmatpush1.bf16.msra.mxu0 %v4981_v36  ;;  %v1019_v36 = vsel %vm229_vm12, %v4999_v57, 0.0 }
 0x3fb   :  { %858 = vmatprep.subr.bf16.mxu0 %v4982_v43  ;;  %v1022_v43 = vadd.f32 %v1019_v36, %v1016_v54 }
 0x3fe   :  { %859 = vmatpush1.bf16.msra.mxu0 %v4983_v58  ;;  %v1023_v58 = vrot.slane %v1022_v43, 4 }
 0x3ff   :  { %860 = vmatprep.subr.bf16.mxu0 %v4070_v59 }
 0x402   :  { %861 = vmatpush1.bf16.msra.mxu0 %v4072_v6  ;;  %v4985_v6 = vld [vmem:[#allocation38_spill] sm:$0xff] }
 0x403   :  { %3020 = vmatprep.subr.bf16.mxu0 %v4969_v19 }
 0x4b8   :  { %v741_v47 = vpop.f32.mrb[8].mxu1  ;;  %v4166_v4 = vpop.f32.mrb[12].mxu0 }
 0x4b9   :  { %v793_v10 = vadd.f32 %v4984_v5, %v741_v47  ;;  %v4169_v11 = vpop.f32.mrb[9].mxu1  ;;  %v4171_v27 = vpop.f32.mrb[13].mxu0  ;;  %v1024_v47 = vadd.f32 %v1023_v58, %v1022_v43 }
 0x4ba   :  { %v745_v28 = vpop.f32.mrb[10].mxu1  ;;  %v4173_v29 = vpop.f32.mrb[14].mxu0 }
 0x4bb   :  { %v794_v33 = vadd.f32 %v4984_v5, %v745_v28  ;;  %v4176_v35 = vpop.f32.mrb[11].mxu1  ;;  %v4178_v59 = vpop.f32.mrb[15].mxu0  ;;  %v795_v48 = vmul.f32 %v793_v10, %v4985_v6  ;;  %v797_v49 = vmul.f32 %v793_v10, %v4986_v32  ;;  %v799_v61 = vmul.f32 %v793_v10, %v4987_v60 }
 0x4bc   :  { %v1025_v5 = vrot.slane %v1024_v47, 2 }
 0x4bd   :  { %v796_v23 = vmul.f32 %v794_v33, %v4985_v6  ;;  %v798_v38 = vmul.f32 %v794_v33, %v4986_v32  ;;  %v800_v50 = vmul.f32 %v794_v33, %v4987_v60 }
 0x4be   :  { %v1026_v10 = vadd.f32 %v1025_v5, %v1024_v47 }
 0x4bf   :  { %v801_v9 = vpack.c.bf16 %v796_v23, %v795_v48  ;;  %v802_v39 = vpack.c.bf16 %v798_v38, %v797_v49  ;;  %v803_v20 = vpack.c.bf16 %v800_v50, %v799_v61 }
 0x4c0   :  { %v1027_v28 = vrot.slane %v1026_v10, 1 }
 0x4c1   :  { %2991 = vmatpush3.bf16.msra.mxu1 %v801_v9 }
 0x4c2   :  { %2992 = vmatprep.subr.bf16.mxu1 %v4969_v19  ;;  %v1028_v33 = vadd.f32 %v1027_v28, %v1026_v10 }
 0x4c4   :  { %v1029_v48 = vsel %vm4221_vm14, %v1028_v33, 0.0  ;;  %v1030_v49 = vsel %vm4227_vm15, %v1028_v33, 0.0 }
 0x4c5   :  { %2993 = vmatpush3.bf16.msra.mxu1 %v802_v39  ;;  %v1031_v61 = vsel %vm229_vm12, %v1029_v48, 0.0  ;;  %v1034_v23 = vsel %vm229_vm12, %v1030_v49, 0.0 }
 0x4c6   :  { %2994 = vmatprep.subr.bf16.mxu1 %v4969_v19 }
 0x4c9   :  { %2995 = vmatpush3.bf16.msra.mxu1 %v803_v20 }
 0x4ca   :  { %3000 = vmatprep.subr.bf16.mxu1 %v4969_v19 }
 0x4cc   :  { %2997 = vmatmul.mubr.msk.bf16.vlgmr.msra.gmra.mrb[12].mxu1 %vm4923_vm13, %v4035_v2  ;;  %v4988_v2 = vld [vmem:[#allocation45_spill] sm:$0xff] }
 0x4cd   :  { %3001 = vmatpush3.bf16.msra.mxu1 %v4037_v40  ;;  %3016 = vmatprep.mubr.msk.bf16.mxu1 %vm3533_vm4, %v4969_v19  ;;  %v4989_v40 = vld [vmem:[#allocation41_spill] sm:$0xff] }
 0x4ce   :  { %3002 = vmatprep.subr.bf16.mxu1 %v4969_v19 }
 0x4d1   :  { %3003 = vmatpush3.bf16.msra.mxu1 %v4043_v24  ;;  %v980_v24 = vsel %vm229_vm12, %v4989_v40, 0.0 }
 0x4d2   :  { %3004 = vmatprep.subr.bf16.mxu1 %v4969_v19  ;;  %981 = vadd.xlane.f32.xlu0 %v980_v24 }
 0x4d5   :  { %3005 = vmatpush3.bf16.msra.mxu1 %v4049_v14  ;;  %v4990_v14 = vld [vmem:[#allocation42_spill] sm:$0xff] }
 0x4d6   :  { %3006 = vmatprep.subr.bf16.mxu1 %v4969_v19 }
 0x4d9   :  { %3007 = vmatpush3.bf16.msra.mxu1 %v4053_v22  ;;  %v983_v22 = vsel %vm229_vm12, %v4990_v14, 0.0 }
 0x4da   :  { %3008 = vmatprep.subr.bf16.mxu1 %v4969_v19  ;;  %984 = vadd.xlane.f32.xlu1 %v983_v22 }
 0x4dd   :  { %3009 = vmatpush3.bf16.msra.mxu1 %v4057_v62  ;;  %v986_v62 = vadd.f32 %v983_v22, %v980_v24 }
 0x4de   :  { %3010 = vmatprep.subr.bf16.mxu1 %v4969_v19  ;;  %1017 = vadd.xlane.f32.xlu1 %v1016_v54 }
 0x4e1   :  { %3011 = vmatpush3.bf16.msra.mxu1 %v4061_v3  ;;  %v987_v3 = vrot.slane %v986_v62, 4 }
 0x4e2   :  { %3012 = vmatprep.subr.bf16.mxu1 %v4969_v19  ;;  %1032 = vadd.xlane.f32.xlu1 %v1031_v61 }
 0x4e3   :  { %v988_v55 = vadd.f32 %v987_v3, %v986_v62 }
 0x4e5   :  { %3013 = vmatpush3.bf16.msra.mxu1 %v4988_v2  ;;  %v989_v63 = vrot.slane %v988_v55, 2 }
 0x4e6   :  { %3014 = vmatprep.subr.bf16.mxu1 %v4969_v19 }
 0x4e9   :  { %3015 = vmatpush3.bf16.msra.mxu1 %v4075_v1  ;;  %v990_v1 = vadd.f32 %v989_v63, %v988_v55 }
 0x4ea   :  { %3028 = vmatprep.subr.bf16.mxu1 %v4969_v19 }
 0x4eb   :  { %v991_v31 = vrot.slane %v990_v1, 1 }
 0x4ed   :  { %v992_v21 = vadd.f32 %v991_v31, %v990_v1 }
 0x4ef   :  { %v998_v44 = vsel %vm4221_vm14, %v992_v21, 0.0  ;;  %v999_v25 = vsel %vm4227_vm15, %v992_v21, 0.0 }
 0x4f0   :  { %v1000_v12 = vsel %vm229_vm12, %v998_v44, 0.0  ;;  %v1003_v26 = vsel %vm229_vm12, %v999_v25, 0.0 }
 0x4f1   :  { %1001 = vadd.xlane.f32.xlu0 %v1000_v12 }
 0x4f5   :  { %1004 = vadd.xlane.f32.xlu0 %v1003_v26 }
 0x4f9   :  { %1020 = vadd.xlane.f32.xlu0 %v1019_v36 }
 0x4fd   :  { %1035 = vadd.xlane.f32.xlu0 %v1034_v23 }
 0x55f   :  { %v982_v54 = vpop.xlane.xlu0 %981 }
 0x567   :  { %v985_v5 = vpop.xlane.xlu1 %984 }
 0x59f   :  { %v838_v18 = vpop.f32.mrb[12].mxu1 }
 0x5a0   :  { %v2998_v34 = vpop.f32.mrb[13].mxu1 }
 0x5a1   :  { %v841_v42 = vpop.f32.mrb[14].mxu1 }
 0x5a2   :  { %v845_v45 = vpack.c.bf16 %v841_v42, %v838_v18  ;;  %v2999_v46 = vpop.f32.mrb[15].mxu1  ;;  %v964_v18 = vadd.f32 %v4127_v51, %v4171_v27  ;;  %v1002_v27 = vpop.xlane.xlu0 %1001 }
 0x5a3   :  { %v1006_v33 = vadd.f32 %v1002_v27, %v982_v54  ;;  %v3534_v27 = vmov 33  }
 0x5a4   :  { %879 = vmatmul.mubr.bf16.vlgmr.msra.gmra.mrb[16].mxu0 %v845_v45  ;;  %3017 = vmatmul.mubr.bf16.vlgmr.msra.gmra.mrb[16].mxu1 %v845_v45 }
 0x5a5   :  { %3024 = vmatprep.mubr.msk.bf16.mxu0 %vm3533_vm4, %v4969_v19  ;;  %3030 = vmatprep.mubr.msk.bf16.mxu1 %vm3533_vm4, %v4969_v19  ;;  %vm1008_vm5 = vcmp.gt.f32.partialorder %v1006_v33, 0.0 }
 0x5a6   :  { %v1005_v10 = vpop.xlane.xlu0 %1004  ;;  %3193 = vset.pattern.permute.xlu1 %v3534_v27  ;;  %3194 = vset.pattern.permute.xlu0 %v3534_v27 }
 0x5a7   :  { %v1007_v48 = vadd.f32 %v1005_v10, %v985_v5 }
 0x5a9   :  { %vm1009_vm6 = vcmp.gt.f32.partialorder %v1007_v48, 0.0 }
 0x677   :  { %v880_v38 = vpop.f32.mrb[16].mxu0  ;;  %v923_v50 = vpop.f32.mrb[16].mxu1 }
 0x678   :  { %v930_v9 = vadd.f32 %v880_v38, %v4169_v11  ;;  %v882_v39 = vpop.f32.mrb[17].mxu0  ;;  %v3018_v20 = vpop.f32.mrb[17].mxu1  ;;  %v962_v45 = vadd.f32 %v4129_v52, %v923_v50 }
 0x679   :  { %v946_v2 = vadd.f32 %v882_v39, %v4166_v4  ;;  %v884_v40 = vpop.f32.mrb[18].mxu0  ;;  %v926_v24 = vpop.f32.mrb[18].mxu1  ;;  %v3298_v39 = vld [vmem:[%s4870_s0] sm:$0xff] }
 0x67a   :  { %v932_v14 = vadd.f32 %v4115_v7, %v930_v9  ;;  %v931_v22 = vadd.f32 %v884_v40, %v4176_v35  ;;  %v886_v62 = vpop.f32.mrb[19].mxu0  ;;  %v3019_v3 = vpop.f32.mrb[19].mxu1  ;;  %v963_v36 = vadd.f32 %v4129_v52, %v926_v24  ;;  %v5000_v40 = vld [vmem:[#allocation23_spill] sm:$0xff]  ;;  %v5001_v24 = vld [vmem:[#allocation24_spill] sm:$0xff] }
 0x67b   :  { %v947_v55 = vadd.f32 %v886_v62, %v4173_v29  ;;  %v948_v1 = vadd.f32 %v4118_v17, %v946_v2 }
 0x67c   :  { %v2840_v13 = vmul.f32 -1.442695, %v932_v14  ;;  %v933_v63 = vadd.f32 %v4115_v7, %v931_v22  ;;  %v1058_v14 = vsel %vm229_vm12, %v5001_v24, 0.0 }
 0x67d   :  { %v949_v31 = vadd.f32 %v4118_v17, %v947_v55  ;;  %v2842_v4 = vmul.f32 -1.442695, %v948_v1  ;;  %v965_v17 = vadd.f32 %v4127_v51, %v4178_v59 }
 0x67e   :  { %3226 = vpow2.f32 %v2840_v13  ;;  %v2841_v11 = vmul.f32 -1.442695, %v933_v63 }
 0x67f   :  { %v2843_v21 = vmul.f32 -1.442695, %v949_v31 }
 0x680   :  { %3228 = vpow2.f32 %v2841_v11 }
 0x681   :  { %3230 = vpow2.f32 %v2842_v4 }
 0x682   :  { %3232 = vpow2.f32 %v2843_v21 }
 0x688   :  { %v3227_v44 = vpop.eup %3226 }
 0x689   :  { %v940_v35 = vadd.f32 1.0, %v3227_v44 }
 0x68a   :  { %v3229_v25 = vpop.eup %3228 }
 0x68b   :  { %3234 = vrcp.f32 %v940_v35  ;;  %v941_v12 = vadd.f32 1.0, %v3229_v25  ;;  %v3231_v29 = vpop.eup %3230  ;;  %v1018_v35 = vpop.xlane.xlu1 %1017 }
 0x68c   :  { %v3233_v26 = vpop.eup %3232  ;;  %v956_v7 = vadd.f32 1.0, %v3231_v29  ;;  %v1021_v25 = vpop.xlane.xlu0 %1020  ;;  %v1094_v29 = vld [vmem:[%s4878_s8] sm:$0xff] }
 0x68d   :  { %3236 = vrcp.f32 %v941_v12  ;;  %v957_v34 = vadd.f32 1.0, %v3233_v26  ;;  %v1095_v26 = vld [vmem:[%s4878_s8 + $0x8] sm:$0xff] }
 0x68e   :  { %3238 = vrcp.f32 %v956_v7  ;;  %v1096_v7 = vld [vmem:[%s4878_s8 + $0x10] sm:$0xff] }
 0x68f   :  { %3240 = vrcp.f32 %v957_v34  ;;  %v1033_v12 = vpop.xlane.xlu1 %1032  ;;  %v1099_v34 = vpack.c.bf16 %v1095_v26, %v1094_v29 }
 0x691   :  { %3021 = vmatpush3.bf16.msra.mxu0 %v1099_v34 }
 0x692   :  { %3022 = vmatprep.subr.bf16.mxu0 %v4969_v19 }
 0x695   :  { %v3235_v42 = vpop.eup %3234 }
 0x696   :  { %v966_v46 = vmul.f32 %v3235_v42, %v964_v18  ;;  %v1036_v18 = vpop.xlane.xlu0 %1035  ;;  %v1097_v42 = vld [vmem:[%s4878_s8 + $0x18] sm:$0xff] }
 0x697   :  { %v3237_v53 = vpop.eup %3236 }
 0x698   :  { %v968_v57 = vadd.f32 %v966_v46, %v962_v45  ;;  %v967_v43 = vmul.f32 %v3237_v53, %v965_v17  ;;  %v3239_v47 = vpop.eup %3238  ;;  %v1037_v17 = vadd.f32 %v1033_v12, %v1018_v35  ;;  %v1100_v45 = vpack.c.bf16 %v1097_v42, %v1096_v7 }
 0x699   :  { %v3241_v28 = vpop.eup %3240  ;;  %v972_v51 = vsub.f32 1.0, %v3239_v47  ;;  %v976_v61 = vmul.f32 %v3239_v47, %v4141_v30  ;;  %v1055_v30 = vsel %vm229_vm12, %v5000_v40, 0.0  ;;  %v1038_v46 = vadd.f32 %v1036_v18, %v1021_v25 }
 0x69a   :  { %3242 = vtanh.f32 %v968_v57  ;;  %v969_v58 = vadd.f32 %v967_v43, %v963_v36  ;;  %v973_v23 = vsub.f32 1.0, %v3241_v28  ;;  %v977_v9 = vmul.f32 %v3241_v28, %v4143_v41  ;;  %v3299_v41 = vld [vmem:[%s4870_s0 + $0x8] sm:$0xff]  ;;  %3023 = vmatpush3.bf16.msra.mxu0 %v1100_v45 }
 0x69b   :  { %v1061_v62 = vadd.f32 %v1058_v14, %v1055_v30  ;;  %vm1039_vm7 = vcmp.gt.f32.partialorder %v1037_v17, 0.0  ;;  %vm1040_vm8 = vcmp.gt.f32.partialorder %v1038_v46, 0.0  ;;  %3034 = vmatprep.subr.bf16.mxu0 %v4969_v19 }
 0x69c   :  { %3244 = vtanh.f32 %v969_v58 }
 0x69d   :  { %v1062_v3 = vrot.slane %v1061_v62, 4 }
 0x69f   :  { %v1063_v55 = vadd.f32 %v1062_v3, %v1061_v62 }
 0x6a1   :  { %v1064_v13 = vrot.slane %v1063_v55, 2 }
 0x6a3   :  { %v1065_v63 = vadd.f32 %v1064_v13, %v1063_v55 }
 0x6a4   :  { %v3243_v59 = vpop.eup %3242 }
 0x6a5   :  { %v974_v49 = vmul.f32 %v3243_v59, %v972_v51  ;;  %v1066_v1 = vrot.slane %v1065_v63, 1 }
 0x6a6   :  { %v3245_v38 = vpop.eup %3244 }
 0x6a7   :  { %v4266_v52 = vadd.f32 %v976_v61, %v974_v49  ;;  %v975_v50 = vmul.f32 %v3245_v38, %v973_v23  ;;  %v1067_v11 = vadd.f32 %v1066_v1, %v1065_v63 }
 0x6a9   :  { %v1014_v20 = vsel %vm1008_vm5, %v4266_v52, %v3298_v39  ;;  %v979_v2 = vadd.f32 %v977_v9, %v975_v50  ;;  %v1069_v31 = vsel %vm4227_vm15, %v1067_v11, 0.0  ;;  %v1068_v4 = vsel %vm4221_vm14, %v1067_v11, 0.0 }
 0x6aa   :  { %1047 = vrot.lane.b32.xlu1 %v1014_v20, %s3523_s23  ;;  %v1073_v21 = vsel %vm229_vm12, %v1069_v31, 0.0  ;;  %v1070_v44 = vsel %vm229_vm12, %v1068_v4, 0.0  ;;  %v4925_v39 = vmov 32   ;;  %v4322_v20 = vld [vmem:[#allocation4 + $0x8] sm:$0xff] }
 0x6ab   :  { %v1015_v22 = vsel %vm1009_vm6, %v979_v2, %v3299_v41  ;;  %vm1149_vm11 = vcmp.gt.f32.partialorder %v4322_v20, 0.0 }
 0x6ac   :  { %1049 = vrot.lane.b32.xlu0 %v1015_v22, %s3523_s23 }
 0x6cb   :  { %1059 = vadd.xlane.f32.xlu0 %v1058_v14 }
 0x6ce   :  { %1056 = vadd.xlane.f32.xlu1 %v1055_v30  ;;  %v1281_v30 = vsel %vm229_vm12, %v4322_v20, 0.0 }
 0x6cf   :  { %1074 = vadd.xlane.f32.xlu0 %v1073_v21 }
 0x6d2   :  { %1071 = vadd.xlane.f32.xlu1 %v1070_v44 }
 0x71c   :  { %v1048_v53 = vpop.permute.xlu1 %1047 }
 0x71d   :  { %v1053_v54 = vsel %vm1039_vm7, %v4266_v52, %v1048_v53 }
 0x71e   :  { %1086 = vrot.lane.b32.xlu1 %v1053_v54, %s3523_s23  ;;  %v1050_v57 = vpop.permute.xlu0 %1049 }
 0x71f   :  { %v1054_v36 = vsel %vm1040_vm8, %v979_v2, %v1050_v57 }
 0x720   :  { %1088 = vrot.lane.b32.xlu0 %v1054_v36, %s3523_s23 }
 0x758   :  { %v1060_v58 = vpop.xlane.xlu0 %1059 }
 0x75b   :  { %v1057_v43 = vpop.xlane.xlu1 %1056 }
 0x75c   :  { %v1075_v5 = vpop.xlane.xlu0 %1074 }
 0x75d   :  { %v1077_v28 = vadd.f32 %v1075_v5, %v1060_v58 }
 0x75f   :  { %v1072_v47 = vpop.xlane.xlu1 %1071  ;;  %vm1079_vm10 = vcmp.gt.f32.partialorder %v1077_v28, 0.0 }
 0x760   :  { %v1076_v10 = vadd.f32 %v1072_v47, %v1057_v43 }
 0x762   :  { %vm1078_vm9 = vcmp.gt.f32.partialorder %v1076_v10, 0.0 }
 0x790   :  { %v1087_v51 = vpop.permute.xlu1 %1086 }
 0x791   :  { %v4308_v33 = vsel %vm1078_vm9, %v4266_v52, %v1087_v51 }
 0x792   :  { %v1089_v59 = vpop.permute.xlu0 %1088 }
 0x793   :  { %v4310_v48 = vsel %vm1079_vm10, %v979_v2, %v1089_v59  ;;  %v4324_v2 = vld [vmem:[#allocation4] sm:$0xff] }
 0x794   :  { %v1098_v49 = vpack.c.bf16 %v4310_v48, %v4308_v33  ;;  %v1278_v40 = vsel %vm229_vm12, %v4324_v2, 0.0  ;;  %vm1148_vm5 = vcmp.gt.f32.partialorder %v4324_v2, 0.0 }
 0x795   :  { %v1284_v14 = vadd.f32 %v1281_v30, %v1278_v40 }
 0x796   :  { %1102 = vrot.lane.b32.xlu1 %v1098_v49, %s3530_s22 }
 0x797   :  { %v1285_v13 = vrot.slane %v1284_v14, 4 }
 0x799   :  { %v1286_v11 = vadd.f32 %v1285_v13, %v1284_v14 }
 0x79b   :  { %v1287_v44 = vrot.slane %v1286_v11, 2 }
 0x79d   :  { %v1288_v12 = vadd.f32 %v1287_v44, %v1286_v11 }
 0x79f   :  { %v1289_v34 = vrot.slane %v1288_v12, 1 }
 0x7a1   :  { %v1290_v57 = vadd.f32 %v1289_v34, %v1288_v12  ;;  %v3301_v34 = vld [vmem:[%s4871_s1] sm:$0xff] }
 0x7a3   :  { %v1291_v58 = vsel %vm4221_vm14, %v1290_v57, 0.0 }
 0x7a4   :  { %v1293_v47 = vsel %vm229_vm12, %v1291_v58, 0.0 }
 0x808   :  { %v1103_v61 = vpop.permute.xlu1 %1102 }
 0x809   :  { %3025 = vmatmul.mubr.msk.bf16.vlgmr.msra.gmra.mrb[20].mxu0 %vm204_vm0, %v1103_v61 }
 0x80a   :  { %3036 = vmatprep.mubr.msk.bf16.mxu0 %vm3533_vm4, %v4969_v19 }
 0x8dc   :  { %v1141_v23 = vpop.f32.mrb[20].mxu0 }
 0x8dd   :  { %1152 = vperm.xlu1 %3193, %v1141_v23   ;;  %v3026_v38 = vpop.f32.mrb[21].mxu0 }
 0x8de   :  { %v1144_v50 = vpop.f32.mrb[22].mxu0 }
 0x8df   :  { %v1216_v9 = vpack.c.bf16 %v1144_v50, %v1141_v23  ;;  %1157 = vperm.xlu0 %3194, %v1144_v50   ;;  %v3027_v52 = vpop.f32.mrb[23].mxu0 }
 0x8e0   :  { %v1292_v52 = vsel %vm4227_vm15, %v1290_v57, 0.0 }
 0x8e1   :  { %3195 = vset.pattern.permute.xlu1 %v4925_v39  ;;  %3029 = vmatpush3.bf16.msra.mxu1 %v1216_v9 }
 0x8e2   :  { %1172 = vperm.xlu1 %3195, %v1141_v23   ;;  %3040 = vmatprep.subr.bf16.mxu1 %v4969_v19 }
 0x8e3   :  { %3196 = vset.pattern.permute.xlu0 %v4973_v56 }
 0x8e6   :  { %1176 = vperm.xlu1 %3195, %v1144_v50  }
 0x8ea   :  { %3197 = vset.pattern.permute.xlu1 %v4973_v56 }
 0x95c   :  { %v1153_v24 = vpop.permute.xlu1 %1152 }
 0x95d   :  { %v1160_v41 = vsel %vm4221_vm14, %v1153_v24, 0.0 }
 0x95e   :  { %v1158_v22 = vpop.permute.xlu0 %1157  ;;  %v1162_v3 = vsel %vm229_vm12, %v1160_v41, 0.0 }
 0x95f   :  { %v1161_v62 = vsel %vm4227_vm15, %v1158_v22, 0.0 }
 0x960   :  { %v1163_v55 = vsel %vm229_vm12, %v1161_v62, 0.0 }
 0x961   :  { %v1164_v63 = vadd.f32 %v1163_v55, %v1162_v3  ;;  %v1173_v21 = vpop.permute.xlu1 %1172 }
 0x963   :  { %v1165_v1 = vrot.slane %v1164_v63, 4 }
 0x965   :  { %v1166_v31 = vadd.f32 %v1165_v1, %v1164_v63  ;;  %v1177_v26 = vpop.permute.xlu1 %1176 }
 0x967   :  { %v1167_v4 = vrot.slane %v1166_v31, 2 }
 0x969   :  { %v1168_v35 = vadd.f32 %v1167_v4, %v1166_v31 }
 0x96b   :  { %v1169_v25 = vrot.slane %v1168_v35, 1 }
 0x96d   :  { %v1170_v29 = vadd.f32 %v1169_v25, %v1168_v35 }
 0x96f   :  { %v1179_v7 = vadd.f32 %v1173_v21, %v1170_v29  ;;  %v1180_v18 = vadd.f32 %v1177_v26, %v1170_v29 }
 0x971   :  { %v1183_v42 = vmul.f32 0.2, %v1179_v7  ;;  %v1184_v17 = vmul.f32 0.2, %v1180_v18  ;;  %vm1182_vm6 = vcmp.gt.f32.partialorder %v1180_v18, 0.0  ;;  %vm1181_vm7 = vcmp.gt.f32.partialorder %v1179_v7, 0.0 }
 0x973   :  { %v1186_v45 = vsel %vm1182_vm6, %v1180_v18, %v1184_v17  ;;  %v1185_v46 = vsel %vm1181_vm7, %v1179_v7, %v1183_v42  ;;  %v3300_v18 = vld [vmem:[%s4872_s2] sm:$0xff] }
 0x974   :  { %v1188_v53 = vsel %vm1149_vm11, %v1186_v45, -1e+30  ;;  %v1187_v54 = vsel %vm1148_vm5, %v1185_v46, -1e+30  ;;  %v1317_v42 = vadd.f32 %v3301_v34, %v3300_v18 }
 0x975   :  { %v1192_v36 = vsel %vm229_vm12, %v1188_v53, -inf  ;;  %v1189_v43 = vsel %vm229_vm12, %v1187_v54, -inf }
 0x976   :  { %1193 = vmax.xlane.f32.xlu1 %v1192_v36  ;;  %1190 = vmax.xlane.f32.xlu0 %v1189_v43 }
 0x97a   :  { %1279 = vadd.xlane.f32.xlu1 %v1278_v40  ;;  %v1296_v40 = vsel %vm229_vm12, %v1292_v52, 0.0 }
 0x97e   :  { %1294 = vadd.xlane.f32.xlu1 %v1293_v47  ;;  %v2849_v47 = vld [vmem:[#allocation9 + $0x6] ss:$0 sm:$0xff] }
 0x98f   :  { %1309 = vrot.lane.b32.xlu1 %v4308_v33, %s3530_s22 }
 0xa03   :  { %v1194_v5 = vpop.xlane.xlu1 %1193  ;;  %v1191_v10 = vpop.xlane.xlu0 %1190 }
 0xa04   :  { %v1196_v28 = vsub.f32 %v1188_v53, %v1194_v5  ;;  %v1195_v51 = vsub.f32 %v1187_v54, %v1191_v10  ;;  %v3302_v53 = vld [vmem:[%s4872_s2 + $0x8] sm:$0xff]  ;;  %v3304_v5 = vld [vmem:[#allocation2] sm:$0xff]  ;;  %s3537_s2 = smov 48  }
 0xa05   :  { %v3303_v54 = vld [vmem:[%s4871_s1 + $0x8] sm:$0xff]  ;;  %v1319_v10 = vadd.f32 %v3304_v5, %v1317_v42  ;;  %s3536_s1 = smov 96  }
 0xa06   :  { %v1199_v59 = vmul.f32 1.442695, %v1196_v28  ;;  %v1197_v49 = vmul.f32 1.442695, %v1195_v51  ;;  %v1318_v57 = vadd.f32 %v3303_v54, %v3302_v53 }
 0xa07   :  { %v1280_v29 = vpop.xlane.xlu1 %1279  ;;  %v1321_v52 = vadd.f32 %v1319_v10, %v4324_v2 }
 0xa08   :  { %3246 = vpow2.f32 %v1199_v59 }
 0xa09   :  { %3248 = vpow2.f32 %v1197_v49 }
 0xa0b   :  { %v1295_v7 = vpop.xlane.xlu1 %1294 }
 0xa0c   :  { %v1299_v17 = vadd.f32 %v1295_v7, %v1280_v29 }
 0xa0e   :  { %vm1301_vm9 = vcmp.gt.f32.partialorder %v1299_v17, 0.0 }
 0xa0f   :  { %v1310_v28 = vpop.permute.xlu1 %1309 }
 0xa12   :  { %v3247_v61 = vpop.eup %3246 }
 0xa13   :  { %v3249_v23 = vpop.eup %3248  ;;  %v1202_v9 = vsel %vm1149_vm11, %v3247_v61, 0.0  ;;  %v3305_v61 = vld [vmem:[#allocation2 + $0x8] sm:$0xff] }
 0xa14   :  { %v1201_v38 = vsel %vm1148_vm5, %v3249_v23, 0.0  ;;  %v1206_v33 = vsel %vm229_vm12, %v1202_v9, 0.0  ;;  %v1320_v23 = vadd.f32 %v3305_v61, %v1318_v57  ;;  %vm1437_vm5 = vcmp.lt.s32.totalorder %v4217_v0, %v4992_v8 }
 0xa15   :  { %v1203_v50 = vsel %vm229_vm12, %v1201_v38, 0.0 }
 0xa16   :  { %1204 = vadd.xlane.f32.xlu0 %v1203_v50 }
 0xa1a   :  { %1207 = vadd.xlane.f32.xlu0 %v1206_v33 }
 0xa1e   :  { %1282 = vadd.xlane.f32.xlu0 %v1281_v30  ;;  %v2845_v30 = vld [vmem:[#allocation9 + $0x5] ss:$0 sm:$0xff] }
 0xa22   :  { %1297 = vadd.xlane.f32.xlu0 %v1296_v40 }
 0xa38   :  { %1311 = vrot.lane.b32.xlu0 %v4310_v48, %s3530_s22 }
 0xaa3   :  { %v1205_v24 = vpop.xlane.xlu0 %1204 }
 0xaa4   :  { %v1209_v14 = vmax.f32 %v1205_v24, 1e-30 }
 0xaa6   :  { %3250 = vrcp.f32 %v1209_v14  ;;  %v1322_v14 = vadd.f32 %v1320_v23, %v4322_v20 }
 0xaa7   :  { %v1208_v41 = vpop.xlane.xlu0 %1207 }
 0xaa8   :  { %v1210_v22 = vmax.f32 %v1208_v41, 1e-30 }
 0xaaa   :  { %3252 = vrcp.f32 %v1210_v22  ;;  %v1323_v22 = vsel %vm229_vm12, %v1321_v52, 0.0 }
 0xaab   :  { %v1283_v26 = vpop.xlane.xlu0 %1282 }
 0xaaf   :  { %v1298_v45 = vpop.xlane.xlu0 %1297 }
 0xab0   :  { %v3251_v62 = vpop.eup %3250  ;;  %v1300_v36 = vadd.f32 %v1298_v45, %v1283_v26 }
 0xab1   :  { %v1213_v55 = vmul.f32 %v3251_v62, %v1201_v38  ;;  %v1326_v62 = vsel %vm229_vm12, %v1322_v14, 0.0 }
 0xab2   :  { %vm1302_vm11 = vcmp.gt.f32.partialorder %v1300_v36, 0.0 }
 0xab3   :  { %v1312_v38 = vpop.permute.xlu0 %1311 }
 0xab4   :  { %v3253_v3 = vpop.eup %3252 }
 0xab5   :  { %v1214_v13 = vmul.f32 %v3253_v3, %v1202_v9  ;;  %v1329_v3 = vadd.f32 %v1326_v62, %v1323_v22 }
 0xab7   :  { %v1215_v63 = vpack.c.bf16 %v1214_v13, %v1213_v55  ;;  %v1330_v55 = vrot.slane %v1329_v3, 4 }
 0xab9   :  { %3031 = vmatmul.mubr.msk.bf16.vlgmr.msra.gmra.mrb[20].mxu1 %vm229_vm12, %v1215_v63  ;;  %v1331_v13 = vadd.f32 %v1330_v55, %v1329_v3 }
 0xaba   :  { %3042 = vmatprep.mubr.msk.bf16.mxu1 %vm3533_vm4, %v4969_v19 }
 0xabb   :  { %v1332_v63 = vrot.slane %v1331_v13, 2 }
 0xb8c   :  { %v1259_v1 = vpop.f32.mrb[20].mxu1 }
 0xb8d   :  { %v1260_v11 = vadd.f32 %v2845_v30, %v1259_v1  ;;  %v3032_v48 = vpop.f32.mrb[21].mxu1 }
 0xb8e   :  { %v1262_v31 = vpop.f32.mrb[22].mxu1 }
 0xb8f   :  { %v1268_v4 = vmin.f32 %v1260_v11, 0.0  ;;  %v1263_v21 = vadd.f32 %v2845_v30, %v1262_v31  ;;  %v3033_v44 = vpop.f32.mrb[23].mxu1  ;;  %vm1266_vm8 = vcmp.gt.f32.partialorder %v1260_v11, 0.0  ;;  %v1333_v30 = vadd.f32 %v1332_v63, %v1331_v13 }
 0xb91   :  { %v1270_v35 = vmul.f32 1.442695, %v1268_v4  ;;  %v1269_v25 = vmin.f32 %v1263_v21, 0.0  ;;  %vm1267_vm10 = vcmp.gt.f32.partialorder %v1263_v21, 0.0  ;;  %v1334_v1 = vrot.slane %v1333_v30, 1 }
 0xb93   :  { %3254 = vpow2.f32 %v1270_v35  ;;  %v1272_v12 = vmul.f32 1.442695, %v1269_v25 }
 0xb95   :  { %3256 = vpow2.f32 %v1272_v12 }
 0xb9d   :  { %v3255_v46 = vpop.eup %3254 }
 0xb9e   :  { %v2847_v43 = vadd.f32 -1.0, %v3255_v46 }
 0xb9f   :  { %v3257_v58 = vpop.eup %3256 }
 0xba0   :  { %v1276_v51 = vsel %vm1266_vm8, %v1260_v11, %v2847_v43  ;;  %v2848_v59 = vadd.f32 -1.0, %v3257_v58  ;;  %v1335_v11 = vadd.f32 %v1334_v1, %v1333_v30 }
 0xba1   :  { %v4375_v49 = vsel %vm1301_vm9, %v1276_v51, %v1310_v28 }
 0xba2   :  { %v1277_v50 = vsel %vm1267_vm10, %v1263_v21, %v2848_v59  ;;  %v1347_v9 = vmul.f32 %v2849_v47, %v4375_v49  ;;  %v1340_v48 = vmax.f32 %v1335_v11, 1.0 }
 0xba3   :  { %v4378_v33 = vsel %vm1302_vm11, %v1277_v50, %v1312_v38 }
 0xba4   :  { %v1349_v40 = vsel %vm204_vm0, %v1347_v9, 0.0  ;;  %v1348_v24 = vmul.f32 %v2849_v47, %v4378_v33  ;;  %3258 = vrsqrt.f32 %v1340_v48 }
 0xba5   :  { %1350 = vadd.xlane.f32.xlu1 %v1349_v40  ;;  %v5002_v40 = vld [vmem:[#allocation44_spill] sm:$0xff] }
 0xba6   :  { %v1352_v41 = vsel %vm204_vm0, %v1348_v24, 0.0 }
 0xba7   :  { %1353 = vadd.xlane.f32.xlu0 %v1352_v41 }
 0xba9   :  { %1324 = vadd.xlane.f32.xlu1 %v1323_v22 }
 0xbab   :  { %1327 = vadd.xlane.f32.xlu0 %v1326_v62 }
 0xbae   :  { %v3259_v31 = vpop.eup %3258 }
 0xbaf   :  { %v1355_v4 = vmul.f32 %v3259_v31, %v1321_v52  ;;  %v1356_v21 = vmul.f32 %v3259_v31, %v1322_v14  ;;  %v5003_v14 = vld [vmem:[#allocation43_spill] sm:$0xff] }
 0xbb1   :  { %v1357_v12 = vpack.c.bf16 %v1356_v21, %v1355_v4 }
 0xbba   :  { %1406 = vrot.lane.b32.xlu1 %v2849_v47, %s3536_s1  ;;  %v3198_v47 = vpack.i.bf16 %v4322_v20, %v4324_v2 }
 0xc32   :  { %v1351_v44 = vpop.xlane.xlu1 %1350 }
 0xc34   :  { %v1354_v35 = vpop.xlane.xlu0 %1353 }
 0xc35   :  { %v1358_v25 = vpack.c.bf16 %v1354_v35, %v1351_v44 }
 0xc36   :  { %v1325_v29 = vpop.xlane.xlu1 %1324 }
 0xc37   :  { %3035 = vmatpush3.bf16.msra.mxu0 %v1358_v25  ;;  %v1336_v7 = vmax.f32 %v1325_v29, 1.0  ;;  %v1455_v25 = vcvt.s32.f32 %v4214_v37 }
 0xc38   :  { %3046 = vmatprep.subr.bf16.mxu0 %v4969_v19  ;;  %v1328_v26 = vpop.xlane.xlu0 %1327 }
 0xc39   :  { %v1337_v18 = vmax.f32 %v1328_v26, 1.0  ;;  %3260 = vrsqrt.f32 %v1336_v7 }
 0xc3a   :  { %3037 = vmatmul.mubr.msk.bf16.vlgmr.msra.gmra.mrb[24].mxu0 %vm229_vm12, %v1357_v12  ;;  %v1407_v45 = vpop.permute.xlu1 %1406 }
 0xc3b   :  { %3048 = vmatprep.mubr.msk.bf16.mxu0 %vm3533_vm4, %v4969_v19  ;;  %3262 = vrsqrt.f32 %v1337_v18  ;;  %v1775_v18 = vld [vmem:[#allocation10 + $0x28] sm:$0xff] }
 0xc43   :  { %v3261_v34 = vpop.eup %3260 }
 0xc45   :  { %v3263_v42 = vpop.eup %3262 }
 0xd0d   :  { %v1396_v17 = vpop.f32.mrb[24].mxu0 }
 0xd0e   :  { %v1403_v46 = vmul.f32 %v3261_v34, %v1396_v17  ;;  %v3038_v53 = vpop.f32.mrb[25].mxu0 }
 0xd0f   :  { %v1399_v54 = vpop.f32.mrb[26].mxu0 }
 0xd10   :  { %v1409_v57 = vadd.f32 %v1407_v45, %v1403_v46  ;;  %v1404_v36 = vmul.f32 %v3263_v42, %v1399_v54  ;;  %v3039_v43 = vpop.f32.mrb[27].mxu0 }
 0xd12   :  { %3264 = vtanh.f32 %v1409_v57  ;;  %v1410_v58 = vadd.f32 %v1407_v45, %v1404_v36  ;;  %1413 = vperm.xlu0 %3196, %v1409_v57  }
 0xd14   :  { %1418 = vperm.xlu1 %3197, %v1410_v58   ;;  %3266 = vtanh.f32 %v1410_v58  ;;  %v1770_v58 = vld [vmem:[#allocation10] sm:$0xff] }
 0xd16   :  { %3203 = vset.pattern.permute.xlu0 %v3534_v27 }
 0xd18   :  { %3199 = vrot.lane.b32.xlu1 %v3198_v47, %s3537_s2  ;;  %v1774_v47 = vld [vmem:[#allocation10 + $0x20] sm:$0xff] }
 0xd1c   :  { %v3265_v5 = vpop.eup %3264 }
 0xd1d   :  { %1461 = vperm.xlu1 %3197, %v3265_v5  }
 0xd1e   :  { %v3267_v10 = vpop.eup %3266 }
 0xd21   :  { %1466 = vperm.xlu1 %3197, %v3267_v10   ;;  %v1779_v10 = vld [vmem:[#allocation10 + $0x48] sm:$0xff] }
 0xd25   :  { %3204 = vset.pattern.permute.xlu1 %v4925_v39  ;;  %v1835_v39 = vld [vmem:[#allocation12 + $0x8] sm:$0xff] }
 0xd91   :  { %v1414_v28 = vpop.permute.xlu0 %1413 }
 0xd92   :  { %v1421_v51 = vsel %vm4221_vm14, %v1414_v28, 0.0 }
 0xd93   :  { %v1419_v59 = vpop.permute.xlu1 %1418  ;;  %v1423_v2 = vsel %vm229_vm12, %v1421_v51, 0.0  ;;  %v4449_v51 = vpack.c.bf16 %v1774_v47, %v1770_v58 }
 0xd94   :  { %v1422_v20 = vsel %vm4227_vm15, %v1419_v59, 0.0  ;;  %vm1436_vm15 = vcmp.lt.s32.totalorder %v4214_v37, %v4992_v8  ;;  %v1771_v37 = vld [vmem:[#allocation10 + $0x8] sm:$0xff] }
 0xd95   :  { %v1424_v27 = vsel %vm229_vm12, %v1422_v20, 0.0  ;;  %v4434_v53 = vpack.c.bf16 %v1775_v18, %v1771_v37  ;;  %v1778_v20 = vld [vmem:[#allocation10 + $0x40] sm:$0xff] }
 0xd96   :  { %v1425_v61 = vadd.f32 %v1424_v27, %v1423_v2  ;;  %v1782_v2 = vld [vmem:[#allocation10 + $0x60] sm:$0xff] }
 0xd97   :  { %v3200_v23 = vpop.permute.xlu1 %3199  ;;  %v1826_v37 = vld [vmem:[#allocation10 + $0x1c0] sm:$0xff] }
 0xd98   :  { %v1426_v38 = vrot.slane %v1425_v61, 4  ;;  %v3202_v50 = vunpack.i.h.bf16 %v3200_v23  ;;  %v3201_v9 = vunpack.i.l.bf16 %v3200_v23  ;;  %v1791_v23 = vld [vmem:[#allocation10 + $0xa8] sm:$0xff]  ;;  %v1830_v18 = vld [vmem:[#allocation10 + $0x1e0] sm:$0xff] }
 0xd9a   :  { %v1427_v52 = vadd.f32 %v1426_v38, %v1425_v61  ;;  %v1527_v24 = vsel %vm4923_vm13, %v5002_v40, %v3202_v50  ;;  %v1526_v41 = vsel %vm4923_vm13, %v5003_v14, %v3201_v9  ;;  %v1787_v61 = vld [vmem:[#allocation10 + $0x88] sm:$0xff]  ;;  %v4457_v38 = vpack.c.bf16 %v1782_v2, %v1778_v20  ;;  %v1786_v9 = vld [vmem:[#allocation10 + $0x80] sm:$0xff] }
 0xd9b   :  { %v1528_v22 = vpack.c.bf16 %v1527_v24, %v1526_v41  ;;  %v4461_v50 = vpack.c.bf16 %v1791_v23, %v1787_v61  ;;  %v1795_v40 = vld [vmem:[#allocation10 + $0xc8] sm:$0xff] }
 0xd9c   :  { %v1428_v62 = vrot.slane %v1427_v52, 2  ;;  %v1462_v15 = vpop.permute.xlu1 %1461  ;;  %v1799_v24 = vld [vmem:[#allocation10 + $0xe8] sm:$0xff] }
 0xd9d   :  { %3047 = vmatpush3.bf16.msra.mxu0 %v1528_v22  ;;  %v1469_v63 = vmul.f32 %v1462_v15, %v4375_v49  ;;  %v4467_v41 = vpack.c.bf16 %v1799_v24, %v1795_v40  ;;  %v1794_v22 = vld [vmem:[#allocation10 + $0xc0] sm:$0xff]  ;;  %v1803_v15 = vld [vmem:[#allocation10 + $0x108] sm:$0xff] }
 0xd9e   :  { %v1429_v3 = vadd.f32 %v1428_v62, %v1427_v52  ;;  %3058 = vmatprep.subr.bf16.mxu0 %v4969_v19  ;;  %v1790_v52 = vld [vmem:[#allocation10 + $0xa0] sm:$0xff] }
 0xd9f   :  { %v4464_v14 = vpack.c.bf16 %v1790_v52, %v1786_v9  ;;  %v1798_v62 = vld [vmem:[#allocation10 + $0xe0] sm:$0xff] }
 0xda0   :  { %v1430_v55 = vrot.slane %v1429_v3, 1  ;;  %v1467_v13 = vpop.permute.xlu1 %1466 }
 0xda1   :  { %v1470_v30 = vmul.f32 %v1467_v13, %v4378_v33 }
 0xda2   :  { %v1431_v1 = vadd.f32 %v1430_v55, %v1429_v3  ;;  %v1807_v3 = vld [vmem:[#allocation10 + $0x128] sm:$0xff]  ;;  %v4470_v55 = vpack.c.bf16 %v1798_v62, %v1794_v22 }
 0xda3   :  { %v1474_v11 = vpack.c.bf16 %v1470_v30, %v1469_v63  ;;  %v4473_v13 = vpack.c.bf16 %v1807_v3, %v1803_v15  ;;  %v1802_v63 = vld [vmem:[#allocation10 + $0x100] sm:$0xff] }
 0xda4   :  { %vm1432_vm6 = vcmp.gt.f32.partialorder %v1414_v28, %v1431_v1  ;;  %vm1434_vm7 = vcmp.eq.f32.partialorder %v1414_v28, %v1431_v1  ;;  %vm1435_vm8 = vcmp.eq.f32.partialorder %v1419_v59, %v1431_v1  ;;  %vm1433_vm9 = vcmp.gt.f32.partialorder %v1419_v59, %v1431_v1  ;;  %v1783_v28 = vld [vmem:[#allocation10 + $0x68] sm:$0xff]  ;;  %v1806_v30 = vld [vmem:[#allocation10 + $0x120] sm:$0xff] }
 0xda5   :  { %vm1438_vm10 = vmand %vm1434_vm7, %vm1436_vm15  ;;  %3041 = vmatpush3.bf16.msra.mxu1 %v1474_v11  ;;  %v4453_v59 = vpack.c.bf16 %v1783_v28, %v1779_v10  ;;  %v1811_v1 = vld [vmem:[#allocation10 + $0x148] sm:$0xff]  ;;  %v1773_v10 = vld [vmem:[#allocation10 + $0x18] sm:$0xff] }
 0xda6   :  { %vm1439_vm11 = vmand %vm1435_vm8, %vm1437_vm5  ;;  %3052 = vmatprep.subr.bf16.mxu1 %v4969_v19  ;;  %v1815_v11 = vld [vmem:[#allocation10 + $0x168] sm:$0xff]  ;;  %v1777_v28 = vld [vmem:[#allocation10 + $0x38] sm:$0xff]  ;;  %vm2029_vm5 = vcmask 195584  }
 0xda7   :  { %vm1440_vm13 = vmor %vm1432_vm6, %vm1438_vm10  ;;  %v4515_v20 = vpack.c.bf16 %v1777_v28, %v1773_v10  ;;  %vm2689_vm10 = vcmask 269568  }
 0xda8   :  { %vm1441_vm2 = vmor %vm1433_vm9, %vm1439_vm11  ;;  %v2851_v49 = vsel %vm1440_vm13, 1.0, %v4969_v19  ;;  %vm2033_vm13 = vcmask 1043456   ;;  %vm2803_vm11 = vcmask 1040384  }
 0xda9   :  { %v2852_v33 = vsel %vm1441_vm2, 1.0, %v4969_v19  ;;  %v1446_v48 = vsel %vm229_vm12, %v2851_v49, 0.0  ;;  %v4476_v49 = vpack.c.bf16 %v1806_v30, %v1802_v63  ;;  %vm1767_vm2 = vcmask 64512  }
 0xdaa   :  { %v1447_v0 = vsel %vm229_vm12, %v2852_v33, 0.0  ;;  %v4479_v33 = vpack.c.bf16 %v1815_v11, %v1811_v1 }
 0xdab   :  { %v1448_v8 = vadd.f32 %v1447_v0, %v1446_v48  ;;  %v1810_v48 = vld [vmem:[#allocation10 + $0x140] sm:$0xff] }
 0xdac   :  { %v1814_v0 = vld [vmem:[#allocation10 + $0x160] sm:$0xff] }
 0xdad   :  { %v1449_v31 = vrot.slane %v1448_v8, 4 }
 0xdaf   :  { %v1450_v4 = vadd.f32 %v1449_v31, %v1448_v8  ;;  %v1819_v8 = vld [vmem:[#allocation10 + $0x188] sm:$0xff] }
 0xdb0   :  { %v1823_v31 = vld [vmem:[#allocation10 + $0x1a8] sm:$0xff] }
 0xdb1   :  { %v1451_v21 = vrot.slane %v1450_v4, 2 }
 0xdb3   :  { %v1452_v44 = vadd.f32 %v1451_v21, %v1450_v4  ;;  %v4482_v4 = vpack.c.bf16 %v1814_v0, %v1810_v48 }
 0xdb5   :  { %v1453_v35 = vrot.slane %v1452_v44, 1 }
 0xdb7   :  { %v1454_v12 = vadd.f32 %v1453_v35, %v1452_v44  ;;  %v4485_v44 = vpack.c.bf16 %v1823_v31, %v1819_v8  ;;  %v1818_v35 = vld [vmem:[#allocation10 + $0x180] sm:$0xff] }
 0xdb9   :  { %vm1456_vm15 = vcmp.eq.f32.partialorder %v1454_v12, %v1455_v25  ;;  %v1822_v25 = vld [vmem:[#allocation10 + $0x1a0] sm:$0xff]  ;;  %v1827_v12 = vld [vmem:[#allocation10 + $0x1c8] sm:$0xff] }
 0xdba   :  { %v2853_v29 = vsel %vm1456_vm15, 1.0, %v4969_v19  ;;  %vm2792_vm15 = vcmask 326656  }
 0xdbb   :  { %v1473_v26 = vpack.c.bf16 %v2853_v29, %v2853_v29  ;;  %v1831_v29 = vld [vmem:[#allocation10 + $0x1e8] sm:$0xff] }
 0xdbd   :  { %3043 = vmatmul.mubr.msk.bf16.vlgmr.msra.gmra.mrb[24].mxu1 %vm229_vm12, %v1473_v26  ;;  %3049 = vmatmul.mubr.msk.bf16.vlgmr.msra.gmra.mrb[28].mxu0 %vm229_vm12, %v1473_v26  ;;  %v1476_v7 = vsel %vm229_vm12, %v1473_v26, 0  ;;  %v4488_v26 = vpack.c.bf16 %v1822_v25, %v1818_v35 }
 0xdbe   :  { %3053 = vmatpush3.bf16.xpose.msra.mxu1 %v1476_v7  ;;  %3059 = vmatpush3.bf16.xpose.msra.mxu0 %v1476_v7 }
 0xdbf   :  { %3054 = vmatprep.mubr.msk.bf16.mxu1 %vm3533_vm4, %v4969_v19  ;;  %3064 = vmatprep.subr.bf16.mxu1 %v4969_v19 }
 0xdc0   :  { %3060 = vmatprep.mubr.msk.bf16.mxu0 %vm3533_vm4, %v4969_v19  ;;  %3070 = vmatprep.subr.bf16.mxu0 %v4969_v19 }
 0xe90   :  { %v4430_v34 = vpop.f32.mrb[24].mxu1  ;;  %v1563_v42 = vpop.f32.mrb[28].mxu0 }
 0xe91   :  { %5004 = vst [vmem:[#allocation27_spill] sm:$0xff] %v4430_v34  ;;  %v4432_v17 = vpack.c.bf16 %v1563_v42, %v1563_v42  ;;  %v3044_v45 = vpop.f32.mrb[25].mxu1  ;;  %v3050_v46 = vpop.f32.mrb[29].mxu0 }
 0xe92   :  { %v1515_v54 = vpop.f32.mrb[26].mxu1  ;;  %v1566_v57 = vpop.f32.mrb[30].mxu0  ;;  %v4494_v45 = vpack.c.bf16 %v1830_v18, %v1826_v37  ;;  %v4535_v37 = vld [vmem:[#allocation13] ss:$0 sm:$0xff] }
 0xe93   :  { %v3045_v36 = vpop.f32.mrb[27].mxu1  ;;  %1614 = vrot.lane.b32.xlu1 %v4432_v17, %s3538_s17  ;;  %v3051_v43 = vpop.f32.mrb[31].mxu0  ;;  %3055 = vmatmul.mubr.msk.bf16.vlgmr.msra.gmra.mrb[28].mxu1 %vm229_vm12, %v4432_v17  ;;  %5009 = vst [vmem:[#allocation31_spill] sm:$0xff] %v4535_v37 }
 0xe94   :  { %3065 = vmatpush3.bf16.xpose.msra.mxu1 %v1476_v7  ;;  %3066 = vmatprep.mubr.msk.bf16.mxu1 %vm3533_vm4, %v4969_v19  ;;  %v1852_v36 = vld [vmem:[#allocation12 + $0x90] sm:$0xff] }
 0xe95   :  { %1940 = vmatprep.subr.bf16.mxu1 %v4434_v53 }
 0xe97   :  { %1659 = vrot.lane.b32.xlu1 %v4432_v17, %s3536_s1 }
 0xe9b   :  { %1750 = vrot.lane.b32.xlu1 %v4430_v34, %s3523_s23 }
 0xe9f   :  { %1753 = vrot.lane.b32.xlu1 %v4430_v34, %s3530_s22 }
 0xf05   :  { %v1615_v5 = vpop.permute.xlu1 %1614 }
 0xf06   :  { %3061 = vmatmul.mubr.msk.bf16.vlgmr.msra.gmra.mrb[32].mxu0 %vm229_vm12, %v1615_v5 }
 0xf07   :  { %3071 = vmatpush3.bf16.xpose.msra.mxu0 %v1476_v7  ;;  %3072 = vmatprep.mubr.msk.bf16.mxu0 %vm3533_vm4, %v4969_v19  ;;  %v4491_v7 = vpack.c.bf16 %v1831_v29, %v1827_v12 }
 0xf08   :  { %1981 = vmatprep.subr.bf16.mxu0 %v4515_v20 }
 0xf09   :  { %v1660_v27 = vpop.permute.xlu1 %1659 }
 0xf0a   :  { %3067 = vmatmul.mubr.msk.bf16.vlgmr.msra.gmra.mrb[32].mxu1 %vm229_vm12, %v1660_v27 }
 0xf0b   :  { %1941 = vmatpush1.bf16.msra.mxu1 %v4449_v51  ;;  %1972 = vmatprep.mubr.bf16.mxu1 %v4973_v56 }
 0xf0c   :  { %1942 = vmatprep.subr.bf16.mxu1 %v4453_v59 }
 0xf0d   :  { %v1751_v21 = vpop.permute.xlu1 %1750 }
 0xf0e   :  { %v1756_v46 = vsel %vm204_vm0, %v4430_v34, %v1751_v21 }
 0xf0f   :  { %1943 = vmatpush1.bf16.msra.mxu1 %v4457_v38 }
 0xf10   :  { %1944 = vmatprep.subr.bf16.mxu1 %v4461_v50 }
 0xf11   :  { %v1754_v42 = vpop.permute.xlu1 %1753 }
 0xf12   :  { %v4500_v54 = vsel %vm207_vm1, %v1756_v46, %v1754_v42 }
 0xf13   :  { %1945 = vmatpush1.bf16.msra.mxu1 %v4464_v14  ;;  %v4505_v57 = vpack.c.bf16 %v4500_v54, %v4500_v54 }
 0xf14   :  { %1946 = vmatprep.subr.bf16.mxu1 %v4467_v41 }
 0xf17   :  { %1947 = vmatpush1.bf16.msra.mxu1 %v4470_v55 }
 0xf18   :  { %1948 = vmatprep.subr.bf16.mxu1 %v4473_v13 }
 0xf1b   :  { %1949 = vmatpush1.bf16.msra.mxu1 %v4476_v49 }
 0xf1c   :  { %1950 = vmatprep.subr.bf16.mxu1 %v4479_v33 }
 0xf1f   :  { %1951 = vmatpush1.bf16.msra.mxu1 %v4482_v4 }
 0xf20   :  { %1952 = vmatprep.subr.bf16.mxu1 %v4485_v44 }
 0xf23   :  { %1953 = vmatpush1.bf16.msra.mxu1 %v4488_v26 }
 0xf24   :  { %1954 = vmatprep.subr.bf16.mxu1 %v4491_v7 }
 0xf27   :  { %1955 = vmatpush1.bf16.msra.mxu1 %v4494_v45 }
 0xf28   :  { %3076 = vmatprep.subr.bf16.mxu1 %v4969_v19 }
 0xf2a   :  { %2867 = vmatmul.mubr.msk.bf16.vlgmr.msra.gmra.mrb[36].mxu1 %vm3917_vm3, %v4505_v57 }
 0xf2b   :  { %3080 = vmatprep.mubr.msk.bf16.mxu1 %vm3533_vm4, %v4969_v19 }
 0xf66   :  { %v4513_v43 = vpop.f32.mrb[28].mxu1 }
 0xf67   :  { %5006 = vst [vmem:[#allocation28_spill] sm:$0xff] %v4513_v43  ;;  %v3056_v58 = vpop.f32.mrb[29].mxu1  ;;  %v2447_v52 = vsel %vm1767_vm2, %v4513_v43, 0.0 }
 0xf68   :  { %v1610_v47 = vpop.f32.mrb[30].mxu1  ;;  %v2450_v62 = vrot.slane %v2447_v52, 4 }
 0xf69   :  { %v3057_v5 = vpop.f32.mrb[31].mxu1 }
 0xf6a   :  { %v2451_v15 = vadd.f32 %v2450_v62, %v2447_v52 }
 0xf6c   :  { %v2452_v63 = vrot.slane %v2451_v15, 2 }
 0xf6e   :  { %v2453_v1 = vadd.f32 %v2452_v63, %v2451_v15 }
 0xf70   :  { %v2454_v0 = vrot.slane %v2453_v1, 1 }
 0xf72   :  { %v2455_v21 = vadd.f32 %v2454_v0, %v2453_v1  ;;  %v1772_v1 = vld [vmem:[#allocation10 + $0x10] sm:$0xff] }
 0xf74   :  { %v2456_v25 = vsel %vm4221_vm14, %v2455_v21, 0.0 }
 0xf75   :  { %v2457_v18 = vsel %vm1767_vm2, %v2456_v25, 0.0 }
 0xfd9   :  { %v4518_v2 = vpop.f32.mrb[32].mxu0 }
 0xfda   :  { %5007 = vst [vmem:[#allocation29_spill] sm:$0xff] %v4518_v2  ;;  %1760 = vrot.lane.b32.xlu0 %v4518_v2, %s3517_s26  ;;  %v3062_v27 = vpop.f32.mrb[33].mxu0  ;;  %v2465_v3 = vsel %vm1767_vm2, %v4518_v2, 0.0 }
 0xfdb   :  { %v1656_v61 = vpop.f32.mrb[34].mxu0  ;;  %v2468_v30 = vrot.slane %v2465_v3, 4 }
 0xfdc   :  { %v3063_v23 = vpop.f32.mrb[35].mxu0 }
 0xfdd   :  { %v4522_v9 = vpop.f32.mrb[32].mxu1  ;;  %v2469_v11 = vadd.f32 %v2468_v30, %v2465_v3 }
 0xfde   :  { %5008 = vst [vmem:[#allocation30_spill] sm:$0xff] %v4522_v9  ;;  %1764 = vrot.lane.b32.xlu1 %v4522_v9, %s3531_s7  ;;  %v3068_v40 = vpop.f32.mrb[33].mxu1  ;;  %1704 = vrot.lane.b32.xlu0 %v4432_v17, %s3539_s18  ;;  %v2487_v48 = vsel %vm1767_vm2, %v4522_v9, 0.0  ;;  %v1838_v9 = vld [vmem:[#allocation12 + $0x20] sm:$0xff] }
 0xfdf   :  { %v1701_v24 = vpop.f32.mrb[34].mxu1  ;;  %v2470_v8 = vrot.slane %v2469_v11, 2  ;;  %v2490_v31 = vrot.slane %v2487_v48, 4 }
 0xfe0   :  { %v3069_v22 = vpop.f32.mrb[35].mxu1 }
 0xfe1   :  { %v2471_v35 = vadd.f32 %v2470_v8, %v2469_v11  ;;  %v2491_v17 = vadd.f32 %v2490_v31, %v2487_v48  ;;  %v1776_v11 = vld [vmem:[#allocation10 + $0x30] sm:$0xff]  ;;  %v1781_v8 = vld [vmem:[#allocation10 + $0x58] sm:$0xff] }
 0xfe2   :  { %v1785_v31 = vld [vmem:[#allocation10 + $0x78] sm:$0xff]  ;;  %v4553_v21 = vpack.c.bf16 %v1776_v11, %v1772_v1  ;;  %v1796_v11 = vld [vmem:[#allocation10 + $0xd0] sm:$0xff] }
 0xfe3   :  { %v2472_v12 = vrot.slane %v2471_v35, 1  ;;  %v2492_v29 = vrot.slane %v2491_v17, 2  ;;  %v4555_v25 = vpack.c.bf16 %v1785_v31, %v1781_v8  ;;  %v1805_v8 = vld [vmem:[#allocation10 + $0x118] sm:$0xff] }
 0xfe4   :  { %v1809_v31 = vld [vmem:[#allocation10 + $0x138] sm:$0xff] }
 0xfe5   :  { %v2473_v47 = vadd.f32 %v2472_v12, %v2471_v35  ;;  %v2493_v5 = vadd.f32 %v2492_v29, %v2491_v17  ;;  %v1836_v35 = vld [vmem:[#allocation12 + $0x10] sm:$0xff]  ;;  %v1839_v17 = vld [vmem:[#allocation12 + $0x28] sm:$0xff] }
 0xfe6   :  { %v1780_v12 = vld [vmem:[#allocation10 + $0x50] sm:$0xff] }
 0xfe7   :  { %v2474_v24 = vsel %vm4221_vm14, %v2473_v47, 0.0  ;;  %v2494_v22 = vrot.slane %v2493_v5, 1  ;;  %v1784_v29 = vld [vmem:[#allocation10 + $0x70] sm:$0xff]  ;;  %v1793_v47 = vld [vmem:[#allocation10 + $0xb8] sm:$0xff] }
 0xfe8   :  { %v2475_v15 = vsel %vm1767_vm2, %v2474_v24, 0.0  ;;  %v1788_v24 = vld [vmem:[#allocation10 + $0x90] sm:$0xff] }
 0xfe9   :  { %v2495_v63 = vadd.f32 %v2494_v22, %v2493_v5  ;;  %v1792_v22 = vld [vmem:[#allocation10 + $0xb0] sm:$0xff] }
 0xffd   :  { %v1974_v42 = vpop.f32.mrb[36].mxu1  ;;  %2458 = vadd.xlane.f32.xlu0 %v2457_v18 }
 0xffe   :  { %v2022_v46 = vadd.f32 %v4535_v37, %v1974_v42  ;;  %v4539_v58 = vpop.f32.mrb[37].mxu1 }
 0xfff   :  { %v1978_v10 = vpop.f32.mrb[38].mxu1 }
0x1000   :  { %v2023_v28 = vmul.f32 %v2022_v46, %v4985_v6  ;;  %v2024_v27 = vmul.f32 %v2022_v46, %v4986_v32  ;;  %v2025_v61 = vmul.f32 %v2022_v46, %v4987_v60  ;;  %v1979_v23 = vpop.f32.mrb[39].mxu1  ;;  %v1789_v46 = vld [vmem:[#allocation10 + $0x98] sm:$0xff]  ;;  %v4561_v10 = vpack.c.bf16 %v1839_v17, %v1836_v35 }
0x1001   :  { %2466 = vadd.xlane.f32.xlu0 %v2465_v3  ;;  %v1845_v23 = vld [vmem:[#allocation12 + $0x58] sm:$0xff] }
0x1002   :  { %v2027_v40 = vpack.c.bf16 %v2024_v27, %v2023_v28  ;;  %2448 = vadd.xlane.f32.xlu1 %v2447_v52  ;;  %v2028_v62 = vpack.c.bf16 %v2025_v61, %v2025_v61  ;;  %v2496_v52 = vsel %vm4221_vm14, %v2495_v63, 0.0  ;;  %5010 = vst [vmem:[#allocation32_spill] sm:$0xff] %v4561_v10  ;;  %v4566_v27 = vpack.c.bf16 %v1784_v29, %v1780_v12  ;;  %v1842_v61 = vld [vmem:[#allocation12 + $0x40] sm:$0xff]  ;;  %v1857_v29 = vld [vmem:[#allocation12 + $0xb8] sm:$0xff] }
0x1003   :  { %v2497_v3 = vsel %vm1767_vm2, %v2496_v52, 0.0  ;;  %v4575_v63 = vpack.c.bf16 %v1845_v23, %v1842_v61  ;;  %v1848_v52 = vld [vmem:[#allocation12 + $0x70] sm:$0xff]  ;;  %v1854_v12 = vld [vmem:[#allocation12 + $0xa0] sm:$0xff] }
0x1004   :  { %3077 = vmatpush3.bf16.msra.mxu1 %v2027_v40  ;;  %v2035_v30 = vsel %vm2033_vm13, %v2028_v62, 0  ;;  %v4570_v40 = vpack.c.bf16 %v1793_v47, %v1789_v46  ;;  %v1797_v62 = vld [vmem:[#allocation10 + $0xd8] sm:$0xff]  ;;  %v1860_v23 = vld [vmem:[#allocation12 + $0xd0] sm:$0xff] }
0x1005   :  { %3078 = vmatprep.subr.bf16.mxu1 %v4969_v19  ;;  %5012 = vst [vmem:[#allocation34_spill] sm:$0xff] %v4575_v63  ;;  %v1813_v46 = vld [vmem:[#allocation10 + $0x158] sm:$0xff] }
0x1006   :  { %2476 = vadd.xlane.f32.xlu1 %v2475_v15  ;;  %v1801_v15 = vld [vmem:[#allocation10 + $0xf8] sm:$0xff] }
0x1007   :  { %v4584_v1 = vpack.c.bf16 %v1801_v15, %v1797_v62  ;;  %v1817_v47 = vld [vmem:[#allocation10 + $0x178] sm:$0xff]  ;;  %v1812_v62 = vld [vmem:[#allocation10 + $0x150] sm:$0xff] }
0x1008   :  { %3079 = vmatpush3.bf16.msra.mxu1 %v2035_v30  ;;  %v4580_v30 = vpack.c.bf16 %v1792_v22, %v1788_v24  ;;  %v1863_v24 = vld [vmem:[#allocation12 + $0xe8] sm:$0xff]  ;;  %v4604_v22 = vpack.c.bf16 %v1817_v47, %v1813_v46  ;;  %v1816_v15 = vld [vmem:[#allocation10 + $0x170] sm:$0xff]  ;;  %v1833_v46 = vld [vmem:[#allocation10 + $0x1f8] sm:$0xff] }
0x1009   :  { %3084 = vmatprep.subr.bf16.mxu1 %v4969_v19 }
0x100a   :  { %2488 = vadd.xlane.f32.xlu1 %v2487_v48 }
0x100e   :  { %2498 = vadd.xlane.f32.xlu1 %v2497_v3  ;;  %v1851_v3 = vld [vmem:[#allocation12 + $0x88] sm:$0xff] }
0x100f   :  { %v4587_v35 = vpack.c.bf16 %v1851_v3, %v1848_v52  ;;  %v1821_v52 = vld [vmem:[#allocation10 + $0x198] sm:$0xff] }
0x1010   :  { %v1825_v3 = vld [vmem:[#allocation10 + $0x1b8] sm:$0xff] }
0x1011   :  { %5013 = vst [vmem:[#allocation35_spill] sm:$0xff] %v4587_v35 }
0x104c   :  { %v1761_v0 = vpop.permute.xlu0 %1760 }
0x104d   :  { %v1768_v48 = vsel %vm1767_vm2, %v4513_v43, %v1761_v0  ;;  %v1800_v0 = vld [vmem:[#allocation10 + $0xf0] sm:$0xff] }
0x104e   :  { %v4590_v17 = vpack.c.bf16 %v1800_v0, %v1796_v11  ;;  %v4607_v11 = vpack.c.bf16 %v1863_v24, %v1860_v23  ;;  %v4610_v0 = vpack.c.bf16 %v1816_v15, %v1812_v62  ;;  %v1872_v24 = vld [vmem:[#allocation12 + $0x130] sm:$0xff]  ;;  %v1875_v62 = vld [vmem:[#allocation12 + $0x148] sm:$0xff] }
0x104f   :  { %v1844_v43 = vld [vmem:[#allocation12 + $0x50] sm:$0xff] }
0x1050   :  { %v1765_v18 = vpop.permute.xlu1 %1764  ;;  %v1705_v42 = vpop.permute.xlu0 %1704  ;;  %5015 = vst [vmem:[#allocation45_spill] sm:$0xff] %v4607_v11 }
0x1051   :  { %v1769_v5 = vsel %vm229_vm12, %v1768_v48, %v1765_v18  ;;  %3073 = vmatmul.mubr.msk.bf16.vlgmr.msra.gmra.mrb[36].mxu0 %vm229_vm12, %v1705_v42  ;;  %v4594_v48 = vpack.c.bf16 %v1809_v31, %v1805_v8  ;;  %v1804_v18 = vld [vmem:[#allocation10 + $0x110] sm:$0xff]  ;;  %v1866_v8 = vld [vmem:[#allocation12 + $0x100] sm:$0xff]  ;;  %v1869_v31 = vld [vmem:[#allocation12 + $0x118] sm:$0xff] }
0x1052   :  { %v4563_v28 = vpack.c.bf16 %v1769_v5, %v1769_v5  ;;  %1982 = vmatpush1.bf16.msra.mxu0 %v4553_v21  ;;  %2013 = vmatprep.mubr.bf16.mxu0 %v4973_v56  ;;  %v1808_v42 = vld [vmem:[#allocation10 + $0x130] sm:$0xff]  ;;  %v4597_v5 = vpack.c.bf16 %v1857_v29, %v1854_v12  ;;  %v4614_v12 = vpack.c.bf16 %v1825_v3, %v1821_v52 }
0x1053   :  { %1983 = vmatprep.subr.bf16.mxu0 %v4555_v25  ;;  %v4600_v61 = vpack.c.bf16 %v1808_v42, %v1804_v18  ;;  %v1820_v29 = vld [vmem:[#allocation10 + $0x190] sm:$0xff]  ;;  %v1829_v42 = vld [vmem:[#allocation10 + $0x1d8] sm:$0xff]  ;;  %v4617_v47 = vpack.c.bf16 %v1869_v31, %v1866_v8  ;;  %v4627_v8 = vpack.c.bf16 %v1875_v62, %v1872_v24 }
0x1054   :  { %5011 = vst [vmem:[#allocation33_spill] sm:$0xff] %v4563_v28  ;;  %3081 = vmatmul.mubr.msk.bf16.vlgmr.msra.gmra.mrb[40].mxu1 %vm2029_vm5, %v4563_v28  ;;  %5014 = vst [vmem:[#allocation37_spill] sm:$0xff] %v4597_v5  ;;  %v1824_v18 = vld [vmem:[#allocation10 + $0x1b0] sm:$0xff]  ;;  %v4624_v15 = vpack.c.bf16 %v1833_v46, %v1829_v42  ;;  %v1837_v42 = vld [vmem:[#allocation12 + $0x18] sm:$0xff] }
0x1055   :  { %3085 = vmatpush3.bf16.msra.mxu1 %v4561_v10  ;;  %3100 = vmatprep.mubr.msk.bf16.mxu1 %vm3533_vm4, %v4969_v19  ;;  %5016 = vst [vmem:[#allocation41_spill] sm:$0xff] %v4617_v47  ;;  %v4620_v23 = vpack.c.bf16 %v1824_v18, %v1820_v29  ;;  %v1828_v52 = vld [vmem:[#allocation10 + $0x1d0] sm:$0xff]  ;;  %5017 = vst [vmem:[#allocation42_spill] sm:$0xff] %v4627_v8  ;;  %v4634_v29 = vpack.c.bf16 %v1838_v9, %v1835_v39  ;;  %v1834_v18 = vld [vmem:[#allocation12] sm:$0xff] }
0x1056   :  { %1984 = vmatpush1.bf16.msra.mxu0 %v4566_v27  ;;  %3086 = vmatprep.subr.bf16.mxu1 %v4969_v19  ;;  %v1832_v3 = vld [vmem:[#allocation10 + $0x1f0] sm:$0xff]  ;;  %v1841_v46 = vld [vmem:[#allocation12 + $0x38] sm:$0xff]  ;;  %v4638_v24 = vpack.c.bf16 %v1837_v42, %v1834_v18  ;;  %v1847_v39 = vld [vmem:[#allocation12 + $0x68] sm:$0xff] }
0x1057   :  { %1985 = vmatprep.subr.bf16.mxu0 %v4570_v40  ;;  %v4630_v31 = vpack.c.bf16 %v1832_v3, %v1828_v52  ;;  %v4642_v62 = vpack.c.bf16 %v1844_v43, %v1841_v46  ;;  %v1840_v52 = vld [vmem:[#allocation12 + $0x30] sm:$0xff]  ;;  %v1843_v3 = vld [vmem:[#allocation12 + $0x48] sm:$0xff]  ;;  %v1850_v9 = vld [vmem:[#allocation12 + $0x80] sm:$0xff] }
0x1058   :  { %v4648_v2 = vpack.c.bf16 %v1843_v3, %v1840_v52  ;;  %v4652_v18 = vpack.c.bf16 %v1850_v9, %v1847_v39  ;;  %v1846_v43 = vld [vmem:[#allocation12 + $0x60] sm:$0xff]  ;;  %v1849_v42 = vld [vmem:[#allocation12 + $0x78] sm:$0xff]  ;;  %v1855_v52 = vld [vmem:[#allocation12 + $0xa8] sm:$0xff] }
0x1059   :  { %3087 = vmatpush3.bf16.msra.mxu1 %v4575_v63  ;;  %v1853_v46 = vld [vmem:[#allocation12 + $0x98] sm:$0xff]  ;;  %v4655_v34 = vpack.c.bf16 %v1849_v42, %v1846_v43  ;;  %v1859_v3 = vld [vmem:[#allocation12 + $0xc8] sm:$0xff]  ;;  %v4661_v39 = vpack.c.bf16 %v1855_v52, %v1852_v36  ;;  %v1868_v42 = vld [vmem:[#allocation12 + $0x110] sm:$0xff] }
0x105a   :  { %1986 = vmatpush1.bf16.msra.mxu0 %v4580_v30  ;;  %3088 = vmatprep.subr.bf16.mxu1 %v4969_v19  ;;  %v1865_v43 = vld [vmem:[#allocation12 + $0xf8] sm:$0xff]  ;;  %v1871_v36 = vld [vmem:[#allocation12 + $0x128] sm:$0xff]  ;;  %v1874_v52 = vld [vmem:[#allocation12 + $0x140] sm:$0xff] }
0x105b   :  { %1987 = vmatprep.subr.bf16.mxu0 %v4584_v1  ;;  %v1870_v63 = vld [vmem:[#allocation12 + $0x120] sm:$0xff]  ;;  %v1873_v10 = vld [vmem:[#allocation12 + $0x138] sm:$0xff] }
0x105c   :  { %v1878_v28 = vld [vmem:[#allocation12 + $0x160] sm:$0xff] }
0x105d   :  { %3089 = vmatpush3.bf16.msra.mxu1 %v4587_v35  ;;  %v1867_v35 = vld [vmem:[#allocation12 + $0x108] sm:$0xff] }
0x105e   :  { %1988 = vmatpush1.bf16.msra.mxu0 %v4590_v17  ;;  %3090 = vmatprep.subr.bf16.mxu1 %v4969_v19 }
0x105f   :  { %1989 = vmatprep.subr.bf16.mxu0 %v4594_v48 }
0x1061   :  { %3091 = vmatpush3.bf16.msra.mxu1 %v4597_v5  ;;  %v1864_v5 = vld [vmem:[#allocation12 + $0xf0] sm:$0xff] }
0x1062   :  { %1990 = vmatpush1.bf16.msra.mxu0 %v4600_v61  ;;  %3092 = vmatprep.subr.bf16.mxu1 %v4969_v19 }
0x1063   :  { %1991 = vmatprep.subr.bf16.mxu0 %v4604_v22 }
0x1065   :  { %3093 = vmatpush3.bf16.msra.mxu1 %v4607_v11  ;;  %v1861_v11 = vld [vmem:[#allocation12 + $0xd8] sm:$0xff] }
0x1066   :  { %1992 = vmatpush1.bf16.msra.mxu0 %v4610_v0  ;;  %3094 = vmatprep.subr.bf16.mxu1 %v4969_v19 }
0x1067   :  { %1993 = vmatprep.subr.bf16.mxu0 %v4614_v12 }
0x1069   :  { %3095 = vmatpush3.bf16.msra.mxu1 %v4617_v47  ;;  %v1858_v47 = vld [vmem:[#allocation12 + $0xc0] sm:$0xff] }
0x106a   :  { %1994 = vmatpush1.bf16.msra.mxu0 %v4620_v23  ;;  %3096 = vmatprep.subr.bf16.mxu1 %v4969_v19 }
0x106b   :  { %1995 = vmatprep.subr.bf16.mxu0 %v4624_v15 }
0x106d   :  { %3097 = vmatpush3.bf16.msra.mxu1 %v4627_v8  ;;  %v1862_v8 = vld [vmem:[#allocation12 + $0xe0] sm:$0xff] }
0x106e   :  { %1996 = vmatpush1.bf16.msra.mxu0 %v4630_v31  ;;  %3098 = vmatprep.subr.bf16.mxu1 %v4969_v19  ;;  %v4664_v9 = vpack.c.bf16 %v1862_v8, %v1859_v3  ;;  %v4673_v8 = vpack.c.bf16 %v1867_v35, %v1864_v5  ;;  %v4676_v3 = vpack.c.bf16 %v1874_v52, %v1871_v36  ;;  %v1876_v35 = vld [vmem:[#allocation12 + $0x150] sm:$0xff]  ;;  %v1879_v5 = vld [vmem:[#allocation12 + $0x168] sm:$0xff]  ;;  %v1881_v36 = vld [vmem:[#allocation12 + $0x178] sm:$0xff] }
0x106f   :  { %2102 = vmatprep.subr.bf16.mxu0 %v4634_v29  ;;  %v4685_v60 = vpack.c.bf16 %v1879_v5, %v1876_v35  ;;  %v4688_v52 = vpack.c.bf16 %v1881_v36, %v1878_v28 }
0x1071   :  { %2870 = vmatmul.mubr.msk.bf16.vlgmr.msra.gmra.mrb[40].mxu0 %vm3917_vm3, %v4505_v57  ;;  %v4658_v57 = vpack.c.bf16 %v1856_v16, %v1853_v46  ;;  %v4667_v16 = vpack.c.bf16 %v1861_v11, %v1858_v47  ;;  %v4670_v46 = vpack.c.bf16 %v1868_v42, %v1865_v43  ;;  %v4679_v11 = vpack.c.bf16 %v1873_v10, %v1870_v63  ;;  %v1877_v47 = vld [vmem:[#allocation12 + $0x158] sm:$0xff]  ;;  %v1880_v43 = vld [vmem:[#allocation12 + $0x170] sm:$0xff] }
0x1072   :  { %2103 = vmatpush1.bf16.msra.mxu0 %v4638_v24  ;;  %2134 = vmatprep.mubr.bf16.mxu0 %v4973_v56  ;;  %v4683_v42 = vpack.c.bf16 %v1880_v43, %v1877_v47  ;;  %vm5018_vm3 = vcmask 785408  }
0x1073   :  { %2104 = vmatprep.subr.bf16.mxu0 %v4642_v62  ;;  %3099 = vmatpush3.bf16.msra.mxu1 %v4688_v52 }
0x1074   :  { %2250 = vmatprep.subr.bf16.mxu1 %v4515_v20 }
0x1076   :  { %2105 = vmatpush1.bf16.msra.mxu0 %v4648_v2 }
0x1077   :  { %2106 = vmatprep.subr.bf16.mxu0 %v4652_v18 }
0x107a   :  { %2107 = vmatpush1.bf16.msra.mxu0 %v4655_v34 }
0x107b   :  { %2108 = vmatprep.subr.bf16.mxu0 %v4658_v57 }
0x107e   :  { %2109 = vmatpush1.bf16.msra.mxu0 %v4661_v39 }
0x107f   :  { %2110 = vmatprep.subr.bf16.mxu0 %v4664_v9 }
0x1082   :  { %2111 = vmatpush1.bf16.msra.mxu0 %v4667_v16 }
0x1083   :  { %2112 = vmatprep.subr.bf16.mxu0 %v4670_v46 }
0x1086   :  { %2113 = vmatpush1.bf16.msra.mxu0 %v4673_v8 }
0x1087   :  { %2114 = vmatprep.subr.bf16.mxu0 %v4676_v3 }
0x108a   :  { %2115 = vmatpush1.bf16.msra.mxu0 %v4679_v11 }
0x108b   :  { %2116 = vmatprep.subr.bf16.mxu0 %v4683_v42 }
0x108e   :  { %2117 = vmatpush1.bf16.msra.mxu0 %v4685_v60 }
0x108f   :  { %2209 = vmatprep.subr.bf16.mxu0 %v4434_v53 }
0x1124   :  { %v4694_v10 = vpop.f32.mrb[36].mxu0 }
0x1125   :  { %v3074_v63 = vpop.f32.mrb[37].mxu0  ;;  %vm2562_vm8 = vcmp.gt.f32.partialorder %v4694_v10, 0.0 }
0x1126   :  { %v1746_v47 = vpop.f32.mrb[38].mxu0 }
0x1127   :  { %v3075_v43 = vpop.f32.mrb[39].mxu0  ;;  %v2071_v35 = vpop.f32.mrb[40].mxu1 }
0x1128   :  { %v2077_v5 = vpack.c.bf16 %v2071_v35, %v2071_v35  ;;  %v3082_v32 = vpop.f32.mrb[41].mxu1  ;;  %v5023_v43 = vld [vmem:[#allocation33_spill] sm:$0xff]  ;;  %v5024_v35 = vld [vmem:[#allocation32_spill] sm:$0xff] }
0x1129   :  { %v2074_v6 = vpop.f32.mrb[42].mxu1 }
0x112a   :  { %v3083_v37 = vpop.f32.mrb[43].mxu1  ;;  %2135 = vmatmul.mubr.bf16.vlgmr.msra.gmra.mrb[44].mxu0 %v2077_v5  ;;  %3101 = vmatmul.mubr.bf16.vlgmr.msra.gmra.mrb[44].mxu1 %v2077_v5  ;;  %v5025_v5 = vld [vmem:[#allocation34_spill] sm:$0xff] }
0x112b   :  { %2210 = vmatpush1.bf16.msra.mxu0 %v4449_v51  ;;  %2251 = vmatpush1.bf16.msra.mxu1 %v4553_v21 }
0x112c   :  { %2211 = vmatprep.subr.bf16.mxu0 %v4453_v59  ;;  %2252 = vmatprep.subr.bf16.mxu1 %v4555_v25  ;;  %v4730_v59 = vld [vmem:[#allocation13 + $0x1] ss:$0 sm:$0xff] }
0x112d   :  { %2241 = vmatprep.mubr.bf16.mxu0 %v4973_v56  ;;  %2282 = vmatprep.mubr.bf16.mxu1 %v4973_v56 }
0x112f   :  { %2212 = vmatpush1.bf16.msra.mxu0 %v4457_v38  ;;  %2253 = vmatpush1.bf16.msra.mxu1 %v4566_v27  ;;  %v4737_v27 = vld [vmem:[#allocation13 + $0x4] ss:$0 sm:$0xff] }
0x1130   :  { %2213 = vmatprep.subr.bf16.mxu0 %v4461_v50  ;;  %2254 = vmatprep.subr.bf16.mxu1 %v4570_v40  ;;  %v4739_v40 = vld [vmem:[#allocation13 + $0x3] ss:$0 sm:$0xff] }
0x1133   :  { %2214 = vmatpush1.bf16.msra.mxu0 %v4464_v14  ;;  %2255 = vmatpush1.bf16.msra.mxu1 %v4580_v30 }
0x1134   :  { %2215 = vmatprep.subr.bf16.mxu0 %v4467_v41  ;;  %2256 = vmatprep.subr.bf16.mxu1 %v4584_v1  ;;  %v4733_v41 = vld [vmem:[#allocation13 + $0x2] ss:$0 sm:$0xff] }
0x1137   :  { %2216 = vmatpush1.bf16.msra.mxu0 %v4470_v55  ;;  %2257 = vmatpush1.bf16.msra.mxu1 %v4590_v17 }
0x1138   :  { %2217 = vmatprep.subr.bf16.mxu0 %v4473_v13  ;;  %2258 = vmatprep.subr.bf16.mxu1 %v4594_v48  ;;  %v1758_v48 = vsel %vm5018_vm3, %v4500_v54, 0.0  ;;  %v5019_v54 = vld [vmem:[#allocation31_spill] sm:$0xff]  ;;  %vm2811_vm3 = vcmask 875520  }
0x113b   :  { %2218 = vmatpush1.bf16.msra.mxu0 %v4476_v49  ;;  %2259 = vmatpush1.bf16.msra.mxu1 %v4600_v61 }
0x113c   :  { %2219 = vmatprep.subr.bf16.mxu0 %v4479_v33  ;;  %2260 = vmatprep.subr.bf16.mxu1 %v4604_v22 }
0x113f   :  { %2220 = vmatpush1.bf16.msra.mxu0 %v4482_v4  ;;  %2261 = vmatpush1.bf16.msra.mxu1 %v4610_v0 }
0x1140   :  { %2221 = vmatprep.subr.bf16.mxu0 %v4485_v44  ;;  %2262 = vmatprep.subr.bf16.mxu1 %v4614_v12 }
0x1143   :  { %2222 = vmatpush1.bf16.msra.mxu0 %v4488_v26  ;;  %2263 = vmatpush1.bf16.msra.mxu1 %v4620_v23 }
0x1144   :  { %v2015_v6 = vpop.f32.mrb[40].mxu0  ;;  %2223 = vmatprep.subr.bf16.mxu0 %v4491_v7  ;;  %2264 = vmatprep.subr.bf16.mxu1 %v4624_v15 }
0x1145   :  { %v2017_v32 = vpop.f32.mrb[41].mxu0 }
0x1146   :  { %v2019_v53 = vpop.f32.mrb[42].mxu0  ;;  %v2200_v30 = vadd.f32 %v4737_v27, %v2017_v32  ;;  %v5027_v32 = vld [vmem:[#allocation37_spill] sm:$0xff] }
0x1147   :  { %v2020_v51 = vpop.f32.mrb[43].mxu0  ;;  %2224 = vmatpush1.bf16.msra.mxu0 %v4494_v45  ;;  %2265 = vmatpush1.bf16.msra.mxu1 %v4630_v31  ;;  %v5028_v53 = vld [vmem:[#allocation45_spill] sm:$0xff] }
0x1148   :  { %3104 = vmatprep.subr.bf16.mxu0 %v4969_v19  ;;  %2341 = vmatprep.subr.bf16.mxu1 %v4634_v29  ;;  %v5029_v51 = vld [vmem:[#allocation41_spill] sm:$0xff] }
0x11fd   :  { %v2136_v38 = vpop.f32.mrb[44].mxu0  ;;  %v2177_v50 = vpop.f32.mrb[44].mxu1 }
0x11fe   :  { %v2183_v14 = vadd.f32 %v2136_v38, %v4539_v58  ;;  %v2138_v55 = vpop.f32.mrb[45].mxu0  ;;  %v3102_v13 = vpop.f32.mrb[45].mxu1  ;;  %v2199_v61 = vadd.f32 %v4739_v40, %v2177_v50  ;;  %v5030_v38 = vld [vmem:[#allocation42_spill] sm:$0xff] }
0x11ff   :  { %v2191_v49 = vadd.f32 %v2138_v55, %v2015_v6  ;;  %v2140_v33 = vpop.f32.mrb[46].mxu0  ;;  %v2180_v4 = vpop.f32.mrb[46].mxu1  ;;  %v5026_v6 = vld [vmem:[#allocation35_spill] sm:$0xff] }
0x1200   :  { %v2184_v44 = vadd.f32 %v4730_v59, %v2183_v14  ;;  %v2141_v26 = vpop.f32.mrb[47].mxu0  ;;  %v3103_v7 = vpop.f32.mrb[47].mxu1 }
0x1201   :  { %v2192_v45 = vadd.f32 %v4733_v41, %v2191_v49 }
0x1202   :  { %v2872_v20 = vmul.f32 -1.442695, %v2184_v44 }
0x1203   :  { %v2873_v37 = vmul.f32 -1.442695, %v2192_v45 }
0x1204   :  { %3268 = vpow2.f32 %v2872_v20 }
0x1205   :  { %3270 = vpow2.f32 %v2873_v37 }
0x120e   :  { %v3269_v21 = vpop.eup %3268 }
0x120f   :  { %v3271_v25 = vpop.eup %3270  ;;  %v2188_v58 = vadd.f32 1.0, %v3269_v21 }
0x1210   :  { %v2196_v28 = vadd.f32 1.0, %v3271_v25 }
0x1211   :  { %3272 = vrcp.f32 %v2188_v58 }
0x1212   :  { %3274 = vrcp.f32 %v2196_v28 }
0x121b   :  { %v3273_v1 = vpop.eup %3272 }
0x121c   :  { %v3275_v17 = vpop.eup %3274  ;;  %v2201_v22 = vmul.f32 %v3273_v1, %v2200_v30 }
0x121d   :  { %v2206_v0 = vmul.f32 %v3275_v17, %v1758_v48  ;;  %v2204_v23 = vsub.f32 1.0, %v3275_v17 }
0x121e   :  { %v2202_v12 = vadd.f32 %v2201_v22, %v2199_v61 }
0x1220   :  { %3276 = vtanh.f32 %v2202_v12 }
0x122a   :  { %v3277_v15 = vpop.eup %3276 }
0x122b   :  { %v2205_v31 = vmul.f32 %v3277_v15, %v2204_v23 }
0x122d   :  { %v4745_v29 = vadd.f32 %v2206_v0, %v2205_v31  ;;  %v2459_v31 = vpop.xlane.xlu0 %2458 }
0x122f   :  { %v2208_v36 = vpack.c.bf16 %v4745_v29, %v4745_v29 }
0x1231   :  { %2242 = vmatmul.mubr.bf16.vlgmr.msra.gmra.mrb[48].mxu0 %v2208_v36  ;;  %2283 = vmatmul.mubr.bf16.vlgmr.msra.gmra.mrb[48].mxu1 %v2208_v36 }
0x1232   :  { %3108 = vmatprep.mubr.msk.bf16.mxu0 %vm3533_vm4, %v4969_v19  ;;  %2342 = vmatpush1.bf16.msra.mxu1 %v4638_v24 }
0x1233   :  { %2343 = vmatprep.subr.bf16.mxu1 %v4642_v62  ;;  %2373 = vmatprep.mubr.bf16.mxu1 %v4973_v56 }
0x1236   :  { %2344 = vmatpush1.bf16.msra.mxu1 %v4648_v2 }
0x1237   :  { %2345 = vmatprep.subr.bf16.mxu1 %v4652_v18 }
0x123a   :  { %2346 = vmatpush1.bf16.msra.mxu1 %v4655_v34 }
0x123b   :  { %2347 = vmatprep.subr.bf16.mxu1 %v4658_v57 }
0x123e   :  { %2348 = vmatpush1.bf16.msra.mxu1 %v4661_v39  ;;  %v5020_v39 = vld [vmem:[#allocation38_spill] sm:$0xff] }
0x123f   :  { %2349 = vmatprep.subr.bf16.mxu1 %v4664_v9 }
0x1242   :  { %2350 = vmatpush1.bf16.msra.mxu1 %v4667_v16  ;;  %v5021_v16 = vld [vmem:[#allocation39_spill] sm:$0xff] }
0x1243   :  { %2351 = vmatprep.subr.bf16.mxu1 %v4670_v46 }
0x1246   :  { %2352 = vmatpush1.bf16.msra.mxu1 %v4673_v8  ;;  %v5022_v8 = vld [vmem:[#allocation40_spill] sm:$0xff] }
0x1247   :  { %2353 = vmatprep.subr.bf16.mxu1 %v4676_v3 }
0x124a   :  { %2354 = vmatpush1.bf16.msra.mxu1 %v4679_v11 }
0x124b   :  { %2355 = vmatprep.subr.bf16.mxu1 %v4683_v42 }
0x124e   :  { %2356 = vmatpush1.bf16.msra.mxu1 %v4685_v60 }
0x124f   :  { %3132 = vmatprep.subr.bf16.mxu1 %v4969_v19 }
0x1304   :  { %v2243_v56 = vpop.f32.mrb[48].mxu0  ;;  %v2284_v34 = vpop.f32.mrb[48].mxu1 }
0x1305   :  { %v2291_v2 = vadd.f32 %v5019_v54, %v2243_v56  ;;  %v2245_v24 = vpop.f32.mrb[49].mxu0  ;;  %v4769_v62 = vpop.f32.mrb[49].mxu1 }
0x1306   :  { %v2247_v18 = vpop.f32.mrb[50].mxu0  ;;  %v2288_v57 = vpop.f32.mrb[50].mxu1  ;;  %v2439_v22 = vadd.f32 %v4737_v27, %v4769_v62  ;;  %v2510_v62 = vld [vmem:[#allocation15 + $0x8] sm:$0xff] }
0x1307   :  { %v2292_v9 = vmul.f32 %v2291_v2, %v5020_v39  ;;  %v2293_v46 = vmul.f32 %v2291_v2, %v5021_v16  ;;  %v2294_v3 = vmul.f32 %v2291_v2, %v5022_v8  ;;  %v2248_v11 = vpop.f32.mrb[51].mxu0  ;;  %v2289_v42 = vpop.f32.mrb[51].mxu1  ;;  %v5031_v18 = vld [vmem:[#allocation27_spill] sm:$0xff]  ;;  %v2512_v16 = vld [vmem:[#allocation15 + $0x18] sm:$0xff] }
0x1308   :  { %v2511_v57 = vld [vmem:[#allocation15 + $0x10] sm:$0xff] }
0x1309   :  { %v2295_v60 = vpack.c.bf16 %v2293_v46, %v2292_v9  ;;  %v2296_v63 = vpack.c.bf16 %v2294_v3, %v2294_v3  ;;  %v2467_v46 = vpop.xlane.xlu0 %2466  ;;  %v2515_v8 = vpack.c.bf16 %v2512_v16, %v2511_v57 }
0x130b   :  { %3105 = vmatpush3.bf16.msra.mxu0 %v2295_v60  ;;  %v2298_v47 = vsel %vm2033_vm13, %v2296_v63, 0 }
0x130c   :  { %3106 = vmatprep.subr.bf16.mxu0 %v4969_v19 }
0x130f   :  { %3107 = vmatpush3.bf16.msra.mxu0 %v2298_v47 }
0x1310   :  { %3112 = vmatprep.subr.bf16.mxu0 %v4969_v19 }
0x1312   :  { %3109 = vmatmul.mubr.msk.bf16.vlgmr.msra.gmra.mrb[52].mxu0 %vm2029_vm5, %v5023_v43  ;;  %vm2809_vm5 = vcmask 588800  }
0x1313   :  { %3113 = vmatpush3.bf16.msra.mxu0 %v5024_v35  ;;  %3128 = vmatprep.mubr.msk.bf16.mxu0 %vm3533_vm4, %v4969_v19 }
0x1314   :  { %3114 = vmatprep.subr.bf16.mxu0 %v4969_v19 }
0x1317   :  { %3115 = vmatpush3.bf16.msra.mxu0 %v5025_v5 }
0x1318   :  { %3116 = vmatprep.subr.bf16.mxu0 %v4969_v19 }
0x131b   :  { %3117 = vmatpush3.bf16.msra.mxu0 %v5026_v6 }
0x131c   :  { %3118 = vmatprep.subr.bf16.mxu0 %v4969_v19 }
0x131f   :  { %3119 = vmatpush3.bf16.msra.mxu0 %v5027_v32 }
0x1320   :  { %3120 = vmatprep.subr.bf16.mxu0 %v4969_v19 }
0x1323   :  { %3121 = vmatpush3.bf16.msra.mxu0 %v5028_v53 }
0x1324   :  { %3122 = vmatprep.subr.bf16.mxu0 %v4969_v19 }
0x1327   :  { %3123 = vmatpush3.bf16.msra.mxu0 %v5029_v51 }
0x1328   :  { %3124 = vmatprep.subr.bf16.mxu0 %v4969_v19 }
0x132b   :  { %3125 = vmatpush3.bf16.msra.mxu0 %v5030_v38 }
0x132c   :  { %3126 = vmatprep.subr.bf16.mxu0 %v4969_v19 }
0x132f   :  { %3127 = vmatpush3.bf16.msra.mxu0 %v4688_v52 }
0x1330   :  { %3140 = vmatprep.subr.bf16.mxu0 %v4969_v19 }
0x13e5   :  { %v2334_v50 = vpop.f32.mrb[52].mxu0 }
0x13e6   :  { %v2340_v14 = vpack.c.bf16 %v2334_v50, %v2334_v50  ;;  %v3110_v55 = vpop.f32.mrb[53].mxu0 }
0x13e7   :  { %v2337_v13 = vpop.f32.mrb[54].mxu0  ;;  %v2657_v55 = vsel %vm1767_vm2, %v4694_v10, 0.0 }
0x13e8   :  { %v3111_v49 = vpop.f32.mrb[55].mxu0  ;;  %2374 = vmatmul.mubr.bf16.vlgmr.msra.gmra.mrb[52].mxu1 %v2340_v14  ;;  %3129 = vmatmul.mubr.bf16.vlgmr.msra.gmra.mrb[56].mxu0 %v2340_v14  ;;  %v5032_v14 = vmov 32   ;;  %v2660_v13 = vrot.slane %v2657_v55, 4 }
0x13e9   :  { %3136 = vmatprep.mubr.msk.bf16.mxu1 %vm3533_vm4, %v4969_v19  ;;  %3142 = vmatprep.mubr.msk.bf16.mxu0 %vm3533_vm4, %v4969_v19 }
0x14bb   :  { %v2375_v33 = vpop.f32.mrb[52].mxu1  ;;  %v2416_v4 = vpop.f32.mrb[56].mxu0 }
0x14bc   :  { %v2422_v44 = vadd.f32 %v2375_v33, %v2245_v24  ;;  %v2377_v26 = vpop.f32.mrb[53].mxu1  ;;  %v3130_v52 = vpop.f32.mrb[57].mxu0  ;;  %v2438_v12 = vadd.f32 %v4739_v40, %v2416_v4  ;;  %v2509_v40 = vld [vmem:[#allocation15] sm:$0xff] }
0x14bd   :  { %v2430_v7 = vadd.f32 %v2377_v26, %v2284_v34  ;;  %v2379_v45 = vpop.f32.mrb[54].mxu1  ;;  %v2419_v20 = vpop.f32.mrb[58].mxu0  ;;  %v2514_v9 = vpack.c.bf16 %v2510_v62, %v2509_v40 }
0x14be   :  { %v2423_v37 = vadd.f32 %v4730_v59, %v2422_v44  ;;  %v2380_v21 = vpop.f32.mrb[55].mxu1  ;;  %v3131_v25 = vpop.f32.mrb[59].mxu0  ;;  %v2661_v44 = vadd.f32 %v2660_v13, %v2657_v55 }
0x14bf   :  { %v2431_v28 = vadd.f32 %v4733_v41, %v2430_v7  ;;  %v2449_v41 = vpop.xlane.xlu1 %2448  ;;  %3133 = vmatpush3.bf16.msra.mxu1 %v2514_v9 }
0x14c0   :  { %v2875_v58 = vmul.f32 -1.442695, %v2423_v37  ;;  %v2460_v34 = vadd.f32 %v2459_v31, %v2449_v41  ;;  %3134 = vmatprep.subr.bf16.mxu1 %v4969_v19  ;;  %v2662_v45 = vrot.slane %v2661_v44, 2 }
0x14c1   :  { %v2876_v30 = vmul.f32 -1.442695, %v2431_v28 }
0x14c2   :  { %3278 = vpow2.f32 %v2875_v58  ;;  %vm2461_vm12 = vcmp.gt.f32.partialorder %v2460_v34, 0.0  ;;  %v2663_v21 = vadd.f32 %v2662_v45, %v2661_v44 }
0x14c3   :  { %3280 = vpow2.f32 %v2876_v30  ;;  %v2477_v39 = vpop.xlane.xlu1 %2476  ;;  %3135 = vmatpush3.bf16.msra.mxu1 %v2515_v8 }
0x14c4   :  { %v2478_v3 = vadd.f32 %v2477_v39, %v2467_v46  ;;  %3146 = vmatprep.subr.bf16.mxu1 %v4969_v19  ;;  %v2664_v30 = vrot.slane %v2663_v21, 1 }
0x14c6   :  { %vm2479_vm6 = vcmp.gt.f32.partialorder %v2478_v3, 0.0 }
0x14c7   :  { %v2489_v42 = vpop.xlane.xlu1 %2488 }
0x14cb   :  { %v2499_v60 = vpop.xlane.xlu1 %2498 }
0x14cc   :  { %v3279_v1 = vpop.eup %3278  ;;  %v2500_v63 = vadd.f32 %v2499_v60, %v2489_v42  ;;  %v2881_v60 = vld [vmem:[#allocation13 + $0x6] ss:$0 sm:$0xff] }
0x14cd   :  { %v2427_v17 = vadd.f32 1.0, %v3279_v1  ;;  %v3281_v48 = vpop.eup %3280 }
0x14ce   :  { %v2435_v61 = vadd.f32 1.0, %v3281_v48  ;;  %vm2501_vm7 = vcmp.gt.f32.partialorder %v2500_v63, 0.0  ;;  %v2665_v48 = vadd.f32 %v2664_v30, %v2663_v21  ;;  %v2723_v30 = vld [vmem:[%s4883_s13 + $0x8] sm:$0xff] }
0x14cf   :  { %3282 = vrcp.f32 %v2427_v17 }
0x14d0   :  { %3284 = vrcp.f32 %v2435_v61 }
0x14d9   :  { %v3283_v0 = vpop.eup %3282 }
0x14da   :  { %v2440_v59 = vmul.f32 %v3283_v0, %v2439_v22  ;;  %v3285_v15 = vpop.eup %3284 }
0x14db   :  { %v2443_v36 = vsub.f32 1.0, %v3285_v15  ;;  %v2445_v2 = vmul.f32 %v3285_v15, %v4745_v29 }
0x14dc   :  { %v2441_v23 = vadd.f32 %v2440_v59, %v2438_v12  ;;  %v2666_v12 = vsel %vm4221_vm14, %v2665_v48, 0.0  ;;  %v2725_v48 = vld [vmem:[%s4883_s13 + $0x18] sm:$0xff] }
0x14dd   :  { %v2667_v59 = vsel %vm1767_vm2, %v2666_v12, 0.0 }
0x14de   :  { %3286 = vtanh.f32 %v2441_v23 }
0x14e8   :  { %v3287_v56 = vpop.eup %3286 }
0x14e9   :  { %v2444_v54 = vmul.f32 %v3287_v56, %v2443_v36 }
0x14eb   :  { %v2446_v24 = vadd.f32 %v2445_v2, %v2444_v54 }
0x14ed   :  { %v2464_v27 = vsel %vm2461_vm12, %v2446_v24, %v5031_v18 }
0x14ee   :  { %2483 = vrot.lane.b32.xlu0 %v2464_v27, %s3523_s23  ;;  %v2878_v27 = vld [vmem:[#allocation13 + $0x5] ss:$0 sm:$0xff] }
0x1560   :  { %v2484_v29 = vpop.permute.xlu0 %2483 }
0x1561   :  { %v2486_v11 = vsel %vm2479_vm6, %v2446_v24, %v2484_v29 }
0x1562   :  { %2505 = vrot.lane.b32.xlu1 %v2486_v11, %s3523_s23 }
0x15d4   :  { %v2506_v47 = vpop.permute.xlu1 %2505 }
0x15d5   :  { %v2508_v43 = vsel %vm2501_vm7, %v2446_v24, %v2506_v47 }
0x15d6   :  { %v2513_v35 = vpack.c.bf16 %v2508_v43, %v2508_v43 }
0x15d8   :  { %2517 = vrot.lane.b32.xlu0 %v2513_v35, %s3530_s22 }
0x164a   :  { %v2518_v5 = vpop.permute.xlu0 %2517 }
0x164b   :  { %3137 = vmatmul.mubr.msk.bf16.vlgmr.msra.gmra.mrb[56].mxu1 %vm204_vm0, %v2518_v5 }
0x164c   :  { %3150 = vmatprep.mubr.msk.bf16.mxu1 %vm3533_vm4, %v4969_v19 }
0x171e   :  { %v2556_v6 = vpop.f32.mrb[56].mxu1 }
0x171f   :  { %v2599_v32 = vpack.c.bf16 %v2556_v6, %v2556_v6  ;;  %2577 = vperm.xlu1 %3204, %v2556_v6   ;;  %2565 = vperm.xlu0 %3203, %v2556_v6   ;;  %v3138_v53 = vpop.f32.mrb[57].mxu1 }
0x1720   :  { %v2559_v51 = vpop.f32.mrb[58].mxu1 }
0x1721   :  { %v3139_v38 = vpop.f32.mrb[59].mxu1  ;;  %v2609_v50 = vsel %vm2033_vm13, %v2599_v32, 0  ;;  %vm5037_vm13 = vcmask 392192  }
0x1722   :  { %3141 = vmatpush3.bf16.msra.mxu0 %v2609_v50 }
0x1723   :  { %3205 = vset.pattern.permute.xlu0 %v5032_v14 }
0x179e   :  { %v2566_v49 = vpop.permute.xlu0 %2565  ;;  %v2578_v28 = vpop.permute.xlu1 %2577 }
0x179f   :  { %v2568_v4 = vsel %vm4221_vm14, %v2566_v49, 0.0 }
0x17a0   :  { %v2569_v26 = vsel %vm1767_vm2, %v2568_v4, 0.0 }
0x17a1   :  { %v2570_v52 = vrot.slane %v2569_v26, 4 }
0x17a3   :  { %v2571_v7 = vadd.f32 %v2570_v52, %v2569_v26 }
0x17a5   :  { %v2572_v20 = vrot.slane %v2571_v7, 2 }
0x17a7   :  { %v2573_v37 = vadd.f32 %v2572_v20, %v2571_v7 }
0x17a9   :  { %v2574_v25 = vrot.slane %v2573_v37, 1 }
0x17ab   :  { %v2575_v58 = vadd.f32 %v2574_v25, %v2573_v37 }
0x17ad   :  { %v2580_v1 = vadd.f32 %v2578_v28, %v2575_v58  ;;  %v5034_v58 = vld [vmem:[#allocation29_spill] sm:$0xff]  ;;  %v2722_v28 = vld [vmem:[%s4883_s13] sm:$0xff] }
0x17af   :  { %vm2581_vm4 = vcmp.gt.f32.partialorder %v2580_v1, 0.0  ;;  %v2582_v17 = vmul.f32 0.2, %v2580_v1 }
0x17b1   :  { %v2583_v61 = vsel %vm2581_vm4, %v2580_v1, %v2582_v17  ;;  %v2727_v1 = vpack.c.bf16 %v2723_v30, %v2722_v28  ;;  %v2724_v17 = vld [vmem:[%s4883_s13 + $0x10] sm:$0xff] }
0x17b2   :  { %v2584_v22 = vsel %vm2562_vm8, %v2583_v61, -1e+30  ;;  %v2728_v61 = vpack.c.bf16 %v2725_v48, %v2724_v17 }
0x17b3   :  { %v2585_v0 = vsel %vm1767_vm2, %v2584_v22, -inf  ;;  %3147 = vmatpush3.bf16.msra.mxu1 %v2727_v1 }
0x17b4   :  { %2586 = vmax.xlane.f32.xlu1 %v2585_v0  ;;  %3148 = vmatprep.subr.bf16.mxu1 %v4969_v19 }
0x17b7   :  { %3149 = vmatpush3.bf16.msra.mxu1 %v2728_v61 }
0x17b8   :  { %2668 = vadd.xlane.f32.xlu1 %v2667_v59 }
0x1841   :  { %v2587_v23 = vpop.xlane.xlu1 %2586 }
0x1842   :  { %v2588_v15 = vsub.f32 %v2584_v22, %v2587_v23 }
0x1844   :  { %v2589_v41 = vmul.f32 1.442695, %v2588_v15 }
0x1845   :  { %v2669_v3 = vpop.xlane.xlu1 %2668 }
0x1846   :  { %3288 = vpow2.f32 %v2589_v41 }
0x1850   :  { %v3289_v31 = vpop.eup %3288 }
0x1851   :  { %v2591_v36 = vsel %vm2562_vm8, %v3289_v31, 0.0 }
0x1852   :  { %v2592_v56 = vsel %vm1767_vm2, %v2591_v36, 0.0 }
0x1853   :  { %2593 = vadd.xlane.f32.xlu0 %v2592_v56 }
0x1857   :  { %2658 = vadd.xlane.f32.xlu0 %v2657_v55 }
0x186d   :  { %2675 = vrot.lane.b32.xlu0 %v2508_v43, %s3530_s22 }
0x18e0   :  { %v2594_v34 = vpop.xlane.xlu0 %2593 }
0x18e1   :  { %v2595_v54 = vmax.f32 %v2594_v34, 1e-30 }
0x18e3   :  { %3290 = vrcp.f32 %v2595_v54 }
0x18e4   :  { %v2659_v8 = vpop.xlane.xlu0 %2658 }
0x18e5   :  { %v2670_v29 = vadd.f32 %v2669_v3, %v2659_v8 }
0x18e7   :  { %vm2671_vm9 = vcmp.gt.f32.partialorder %v2670_v29, 0.0 }
0x18e8   :  { %v2676_v63 = vpop.permute.xlu0 %2675 }
0x18ed   :  { %v3291_v2 = vpop.eup %3290 }
0x18ee   :  { %v2597_v24 = vmul.f32 %v3291_v2, %v2591_v36  ;;  %v2729_v36 = vld [vmem:[%s4883_s13 + $0x20] sm:$0x1] }
0x18f0   :  { %v2598_v18 = vpack.c.bf16 %v2597_v24, %v2597_v24 }
0x18f2   :  { %3143 = vmatmul.mubr.msk.bf16.vlgmr.msra.gmra.mrb[60].mxu0 %vm1767_vm2, %v2598_v18  ;;  %v5035_v18 = vld [vmem:[#allocation28_spill] sm:$0xff]  ;;  %vm2795_vm2 = vcmask 457728  }
0x19c5   :  { %v2645_v40 = vpop.f32.mrb[60].mxu0 }
0x19c6   :  { %v2646_v62 = vadd.f32 %v2878_v27, %v2645_v40  ;;  %v3144_v57 = vpop.f32.mrb[61].mxu0  ;;  %v5036_v27 = vld [vmem:[#allocation30_spill] sm:$0xff] }
0x19c7   :  { %v2648_v39 = vpop.f32.mrb[62].mxu0 }
0x19c8   :  { %v2652_v9 = vmin.f32 %v2646_v62, 0.0  ;;  %v3145_v16 = vpop.f32.mrb[63].mxu0  ;;  %vm2651_vm14 = vcmp.gt.f32.partialorder %v2646_v62, 0.0 }
0x19ca   :  { %v2653_v46 = vmul.f32 1.442695, %v2652_v9 }
0x19cc   :  { %3292 = vpow2.f32 %v2653_v46 }
0x19d6   :  { %v3293_v11 = vpop.eup %3292 }
0x19d7   :  { %v2880_v42 = vadd.f32 -1.0, %v3293_v11 }
0x19d9   :  { %v2656_v47 = vsel %vm2651_vm14, %v2646_v62, %v2880_v42 }
0x19da   :  { %v4831_v43 = vsel %vm2671_vm9, %v2656_v47, %v2676_v63 }
0x19db   :  { %v2684_v35 = vmul.f32 %v2881_v60, %v4831_v43 }
0x19dd   :  { %v2685_v5 = vsel %vm204_vm0, %v2684_v35, 0.0 }
0x19de   :  { %2686 = vadd.xlane.f32.xlu1 %v2685_v5 }
0x1a6b   :  { %v2687_v6 = vpop.xlane.xlu1 %2686 }
0x1a6c   :  { %v2688_v32 = vadd.f32 %v2881_v60, %v2687_v6 }
0x1a6e   :  { %v2690_v53 = vsel %vm2689_vm10, %v2688_v32, -inf }
0x1a6f   :  { %v2691_v51 = vrot.slane %v2690_v53, 4 }
0x1a71   :  { %v2692_v38 = vmax.f32 %v2690_v53, %v2691_v51 }
0x1a73   :  { %v2693_v50 = vrot.slane %v2692_v38, 2 }
0x1a75   :  { %v2694_v14 = vmax.f32 %v2692_v38, %v2693_v50 }
0x1a77   :  { %v2695_v55 = vrot.slane %v2694_v14, 1 }
0x1a79   :  { %v2696_v13 = vmax.f32 %v2694_v14, %v2695_v55 }
0x1a7b   :  { %v2697_v49 = vsub.f32 %v2688_v32, %v2696_v13 }
0x1a7d   :  { %v2698_v33 = vmul.f32 1.442695, %v2697_v49 }
0x1a7f   :  { %3294 = vpow2.f32 %v2698_v33 }
0x1a89   :  { %v3295_v4 = vpop.eup %3294 }
0x1a8a   :  { %v2700_v44 = vsel %vm2689_vm10, %v3295_v4, 0.0 }
0x1a8b   :  { %v2701_v26 = vrot.slane %v2700_v44, 4 }
0x1a8d   :  { %v2702_v52 = vadd.f32 %v2701_v26, %v2700_v44 }
0x1a8f   :  { %v2703_v7 = vrot.slane %v2702_v52, 2 }
0x1a91   :  { %v2704_v45 = vadd.f32 %v2703_v7, %v2702_v52 }
0x1a93   :  { %v2705_v20 = vrot.slane %v2704_v45, 1 }
0x1a95   :  { %v2706_v37 = vadd.f32 %v2705_v20, %v2704_v45 }
0x1a97   :  { %3296 = vrcp.f32 %v2706_v37 }
0x1aa1   :  { %v3297_v21 = vpop.eup %3296 }
0x1aa2   :  { %v2708_v25 = vmul.f32 %v3297_v21, %v3295_v4 }
0x1aa4   :  { %2711 = vperm.xlu1 %3204, %v2708_v25  }
0x1aa8   :  { %2774 = vrot.lane.b32.xlu1 %v2597_v24, %s3523_s23 }
0x1aac   :  { %2781 = vrot.lane.b32.xlu1 %v5034_v58, %s3537_s2 }
0x1ab0   :  { %2788 = vrot.lane.b32.xlu1 %v4694_v10, %s3530_s22 }
0x1b23   :  { %v2712_v22 = vpop.permute.xlu1 %2711 }
0x1b24   :  { %v2714_v0 = vmul.f32 %v2712_v22, %v4831_v43 }
0x1b26   :  { %v2715_v12 = vsel %vm204_vm0, %v2714_v0, 0.0 }
0x1b27   :  { %v2716_v59 = vrot.slane %v2715_v12, 4  ;;  %v2775_v39 = vpop.permute.xlu1 %2774 }
0x1b28   :  { %v2791_v16 = vsel %vm204_vm0, %v4831_v43, %v2775_v39 }
0x1b29   :  { %v2717_v23 = vadd.f32 %v2716_v59, %v2715_v12 }
0x1b2b   :  { %v2718_v10 = vrot.slane %v2717_v23, 2  ;;  %v2782_v46 = vpop.permute.xlu1 %2781 }
0x1b2d   :  { %v2719_v15 = vadd.f32 %v2718_v10, %v2717_v23 }
0x1b2f   :  { %v2720_v19 = vrot.slane %v2719_v15, 1  ;;  %v2789_v42 = vpop.permute.xlu1 %2788 }
0x1b31   :  { %v2721_v41 = vadd.f32 %v2720_v19, %v2719_v15 }
0x1b33   :  { %v2726_v31 = vpack.c.bf16 %v2721_v41, %v2721_v41 }
0x1b35   :  { %3151 = vmatmul.mubr.msk.bf16.vlgmr.msra.gmra.mrb[60].mxu1 %vm204_vm0, %v2726_v31 }
0x1c08   :  { %v2767_v56 = vpop.f32.mrb[60].mxu1 }
0x1c09   :  { %v2768_v34 = vadd.f32 %v2767_v56, %v2729_v36  ;;  %v3152_v54 = vpop.f32.mrb[61].mxu1 }
0x1c0a   :  { %v2770_v2 = vpop.f32.mrb[62].mxu1 }
0x1c0b   :  { %2799 = vrot.lane.b32.xlu0 %v2768_v34, %s3523_s23  ;;  %v3153_v24 = vpop.f32.mrb[63].mxu1 }
0x1c0f   :  { %2778 = vrot.lane.b32.xlu0 %v5035_v18, %s3540_s3 }
0x1c13   :  { %2784 = vrot.lane.b32.xlu0 %v5036_v27, %s3541_s24 }
0x1c7d   :  { %v2800_v40 = vpop.permute.xlu0 %2799 }
0x1c7e   :  { %v2802_v62 = vsel %vm204_vm0, %v2721_v41, %v2800_v40 }
0x1c7f   :  { %v2804_v57 = vsel %vm2803_vm11, %v2802_v62, 0.0 }
0x1c80   :  { %2806 = vrot.lane.b32.xlu0 %v2804_v57, %s3542_s10 }
0x1c81   :  { %v2779_v9 = vpop.permute.xlu0 %2778 }
0x1c82   :  { %v2793_v8 = vsel %vm2792_vm15, %v2791_v16, %v2779_v9 }
0x1c83   :  { %v2794_v29 = vsel %vm5037_vm13, %v2793_v8, %v2782_v46 }
0x1c85   :  { %v2785_v3 = vpop.permute.xlu0 %2784 }
0x1c86   :  { %v2796_v11 = vsel %vm2795_vm2, %v2794_v29, %v2785_v3 }
0x1c87   :  { %v2797_v63 = vsel %vm207_vm1, %v2796_v11, %v2789_v42 }
0x1cf2   :  { %v2807_v60 = vpop.permute.xlu0 %2806 }
0x1cf3   :  { %v2810_v47 = vsel %vm2809_vm5, %v2797_v63, %v2807_v60 }
0x1cf4   :  { %v2812_v35 = vsel %vm2811_vm3, %v2810_v47, 0.0 }
0x1cf5   :  { %2813 = vst [vmem:[%s4884_s14] sm:$0xff] %v2812_v35 }
0x1cf6   :  { %2818 = vsyncpa [#allocation3], 1 }
0x1cf7   :  { %2819 = vsyncpa [#allocation5], 1 }
0x1cf8   :  { %2820 = vsyncpa [#allocation8], 1 }
0x1cf9   :  { %2821 = vsyncpa [#allocation11], 1 }
0x1cfa   :  { %2822 = vsyncpa [#allocation14], 1 }

</bundles_post_ra>
